<compile_context>
chip_gen: v7x
topology: tpu7x:2x2x1
jax: 0.10.0
libtpu: 0.0.40
codegen_flags: <defaults>
</compile_context>

<pallas_src>
import math

import jax
import jax.numpy as jnp
from jax import lax
from jax.experimental import pallas as pl
from jax.experimental.pallas import tpu as pltpu

# ---------------- config (small synthetic sizes) ----------------
D_MODEL = 32
NHEAD = 4
DFF = 64
NUM_LAYERS = 2
NUM_QUERIES = 8     # tgt length
MEM_LEN = 16        # memory length (H*W)
BATCH = 2

HEAD_DIM = D_MODEL // NHEAD
SCALE = 1.0 / math.sqrt(HEAD_DIM)


# ---------------- in-kernel helpers ----------------
def _layer_norm(x, g, b, eps=1e-5):
    mu = jnp.mean(x, axis=-1, keepdims=True)
    var = jnp.mean(jnp.square(x - mu), axis=-1, keepdims=True)
    return (x - mu) * lax.rsqrt(var + eps) * g + b


def _attention(q, k, v):
    """Head-batched scaled-dot-product attention (scale pre-folded into q).

    q: (Lq, D) f32, k/v: (Lk, D) f32. Returns (Lq, D) f32.
    Single batched contraction over all heads (no per-head slices / concat).
    """
    Lq, D = q.shape
    Lk = k.shape[0]
    bf16 = jnp.bfloat16
    # (L, D) -> (H, L, head_dim); batch dim (heads) leading for the dot_general.
    qh = jnp.transpose(q.reshape(Lq, NHEAD, HEAD_DIM), (1, 0, 2)).astype(bf16)
    kh = jnp.transpose(k.reshape(Lk, NHEAD, HEAD_DIM), (1, 0, 2)).astype(bf16)
    vh = jnp.transpose(v.reshape(Lk, NHEAD, HEAD_DIM), (1, 0, 2)).astype(bf16)

    s = jnp.einsum('hqd,hkd->hqk', qh, kh, preferred_element_type=jnp.float32)
    s = s - jnp.max(s, axis=-1, keepdims=True)
    p = jnp.exp(s)
    p = p * pl.reciprocal(jnp.sum(p, axis=-1, keepdims=True), approx=True)

    o = jnp.einsum('hqk,hkd->hqd', p.astype(bf16), vh,
                   preferred_element_type=jnp.float32)
    return jnp.transpose(o, (1, 0, 2)).reshape(Lq, D)


# ---------------- fused Pallas kernel (all layers + final norm, one batch element) ----------------
def fused_decoder_kernel(tgt_ref, mem_ref, qpos_ref, pos_ref,
                         sa_wq, sa_wk, sa_wv, sa_bq, sa_bk, sa_bv, sa_wo, sa_bo,
                         ca_wq, ca_wk, ca_wv, ca_bq, ca_bk, ca_bv, ca_wo, ca_bo,
                         w1, b1, w2, b2,
                         g1, be1, g2, be2, g3, be3,
                         ng, nb,
                         out_ref):
    Lq, D = tgt_ref.shape[1], tgt_ref.shape[2]
    num_layers = sa_wq.shape[0]
    bf16 = jnp.bfloat16

    # Activations (one batch element) stay VMEM/vreg resident for the whole decoder.
    x = tgt_ref[0]                         # (Lq, D) f32 residual stream
    qpos = qpos_ref[0]                     # (Lq, D) f32
    mem = mem_ref[0]                       # (Lm, D) f32
    pos = pos_ref[0]                       # (Lm, D) f32
    mem_b = mem.astype(bf16)               # cross-attn V input (matmul operand)
    memk_b = (mem + pos).astype(bf16)      # cross-attn K input (reused every layer)

    for l in range(num_layers):
        # ---- self-attention: q = k = x + query_pos, v = x ----
        q_in_b = (x + qpos).astype(bf16)
        q = jnp.dot(q_in_b, sa_wq[l], preferred_element_type=jnp.float32) + sa_bq[l]
        k = jnp.dot(q_in_b, sa_wk[l], preferred_element_type=jnp.float32) + sa_bk[l]
        v = jnp.dot(x.astype(bf16), sa_wv[l], preferred_element_type=jnp.float32) + sa_bv[l]
        o = _attention(q, k, v)
        sa = jnp.dot(o.astype(bf16), sa_wo[l], preferred_element_type=jnp.float32) + sa_bo[l]
        x = _layer_norm(x + sa, g1[l], be1[l])

        # ---- cross-attention: q = x + query_pos, k = memory + pos, v = memory ----
        cq = jnp.dot((x + qpos).astype(bf16), ca_wq[l],
                     preferred_element_type=jnp.float32) + ca_bq[l]
        ck = jnp.dot(memk_b, ca_wk[l], preferred_element_type=jnp.float32) + ca_bk[l]
        cv = jnp.dot(mem_b, ca_wv[l], preferred_element_type=jnp.float32) + ca_bv[l]
        o = _attention(cq, ck, cv)
        ca = jnp.dot(o.astype(bf16), ca_wo[l], preferred_element_type=jnp.float32) + ca_bo[l]
        x = _layer_norm(x + ca, g2[l], be2[l])

        # ---- feed-forward (ReLU) ----
        h = jnp.maximum(
            jnp.dot(x.astype(bf16), w1[l], preferred_element_type=jnp.float32) + b1[l], 0.0)
        ff = jnp.dot(h.astype(bf16), w2[l], preferred_element_type=jnp.float32) + b2[l]
        x = _layer_norm(x + ff, g3[l], be3[l])

    # ---- final LayerNorm ----
    x = _layer_norm(x, ng[...], nb[...])
    out_ref[...] = x.reshape(1, Lq, D).astype(out_ref.dtype)


# ---------------- wrapper around pallas_call ----------------
def _stack(params, key):
    return jnp.stack([lp[key] for lp in params["layers"]], axis=0)


def transformer_decoder_forward(params, tgt, memory, pos=None, query_pos=None):
    """Matches TransformerDecoder.forward (norm=LayerNorm, return_intermediate=False).

    tgt: (Lq, B, D), memory: (Lm, B, D) -- PyTorch seq-first convention.
    Returns (1, Lq, B, D) to mirror output.unsqueeze(0).
    """
    # Tiny wrapper-side transposes; acceptable at toy sizes (see review note).
    tgt_b = jnp.transpose(tgt, (1, 0, 2))
    mem_b = jnp.transpose(memory, (1, 0, 2))
    qpos_b = (jnp.transpose(query_pos, (1, 0, 2))
              if query_pos is not None else jnp.zeros_like(tgt_b))
    pos_b = (jnp.transpose(pos, (1, 0, 2))
             if pos is not None else jnp.zeros_like(mem_b))

    B, Lq, D = tgt_b.shape
    Lm = mem_b.shape[1]
    bf16 = jnp.bfloat16

    # Stack per-layer weights along a leading layer axis (single kernel invocation).
    sa_w_in = _stack(params, "sa_w_in")   # (L, D, 3D)
    sa_b_in = _stack(params, "sa_b_in")   # (L, 1, 3D)
    ca_w_in = _stack(params, "ca_w_in")
    ca_b_in = _stack(params, "ca_b_in")

    # Host-side preprocessing (free at runtime):
    #  * split fused in_proj into Q/K/V operands (no sub-128-lane slices in-kernel)
    #  * fold 1/sqrt(head_dim) into the Q weight + bias
    #  * cast matmul weights to bf16 (accumulation stays f32 in-kernel)
    sa_wq = (sa_w_in[:, :, :D] * SCALE).astype(bf16)
    sa_wk = sa_w_in[:, :, D:2 * D].astype(bf16)
    sa_wv = sa_w_in[:, :, 2 * D:].astype(bf16)
    sa_bq = sa_b_in[:, :, :D] * SCALE
    sa_bk = sa_b_in[:, :, D:2 * D]
    sa_bv = sa_b_in[:, :, 2 * D:]
    sa_wo = _stack(params, "sa_wo").astype(bf16)
    sa_bo = _stack(params, "sa_bo")

    ca_wq = (ca_w_in[:, :, :D] * SCALE).astype(bf16)
    ca_wk = ca_w_in[:, :, D:2 * D].astype(bf16)
    ca_wv = ca_w_in[:, :, 2 * D:].astype(bf16)
    ca_bq = ca_b_in[:, :, :D] * SCALE
    ca_bk = ca_b_in[:, :, D:2 * D]
    ca_bv = ca_b_in[:, :, 2 * D:]
    ca_wo = _stack(params, "ca_wo").astype(bf16)
    ca_bo = _stack(params, "ca_bo")

    w1 = _stack(params, "w1").astype(bf16)
    b1 = _stack(params, "b1")
    w2 = _stack(params, "w2").astype(bf16)
    b2 = _stack(params, "b2")

    g1, be1 = _stack(params, "g1"), _stack(params, "be1")
    g2, be2 = _stack(params, "g2"), _stack(params, "be2")
    g3, be3 = _stack(params, "g3"), _stack(params, "be3")

    weights = [sa_wq, sa_wk, sa_wv, sa_bq, sa_bk, sa_bv, sa_wo, sa_bo,
               ca_wq, ca_wk, ca_wv, ca_bq, ca_bk, ca_bv, ca_wo, ca_bo,
               w1, b1, w2, b2,
               g1, be1, g2, be2, g3, be3,
               params["norm_g"], params["norm_b"]]

    def full_spec(a):
        nd = a.ndim
        return pl.BlockSpec(a.shape, lambda b, nd=nd: (0,) * nd)

    def act_spec(seq_len):
        return pl.BlockSpec((1, seq_len, D), lambda b: (b, 0, 0))

    in_specs = ([act_spec(Lq), act_spec(Lm), act_spec(Lq), act_spec(Lm)]
                + [full_spec(a) for a in weights])

    out = pl.pallas_call(
        fused_decoder_kernel,
        out_shape=jax.ShapeDtypeStruct((B, Lq, D), jnp.float32),
        grid=(B,),
        in_specs=in_specs,
        out_specs=pl.BlockSpec((1, Lq, D), lambda b: (b, 0, 0)),
        compiler_params=pltpu.CompilerParams(dimension_semantics=("parallel",)),
    )(tgt_b, mem_b, qpos_b, pos_b, *weights)
    return jnp.transpose(out, (1, 0, 2))[None]


# ---------------- deterministic parameter init ----------------
def init_params(key):
    def dense(k, shape):
        return jax.random.normal(k, shape, jnp.float32) * 0.05

    layers = []
    for _ in range(NUM_LAYERS):
        key, *ks = jax.random.split(key, 13)
        layers.append(dict(
            sa_w_in=dense(ks[0], (D_MODEL, 3 * D_MODEL)),   # in_proj_weight.T
            sa_b_in=dense(ks[1], (1, 3 * D_MODEL)),
            sa_wo=dense(ks[2], (D_MODEL, D_MODEL)),          # out_proj.weight.T
            sa_bo=dense(ks[3], (1, D_MODEL)),
            ca_w_in=dense(ks[4], (D_MODEL, 3 * D_MODEL)),
            ca_b_in=dense(ks[5], (1, 3 * D_MODEL)),
            ca_wo=dense(ks[6], (D_MODEL, D_MODEL)),
            ca_bo=dense(ks[7], (1, D_MODEL)),
            w1=dense(ks[8], (D_MODEL, DFF)),                 # linear1.weight.T
            b1=dense(ks[9], (1, DFF)),
            w2=dense(ks[10], (DFF, D_MODEL)),                # linear2.weight.T
            b2=dense(ks[11], (1, D_MODEL)),
            g1=jnp.ones((1, D_MODEL), jnp.float32), be1=jnp.zeros((1, D_MODEL), jnp.float32),
            g2=jnp.ones((1, D_MODEL), jnp.float32), be2=jnp.zeros((1, D_MODEL), jnp.float32),
            g3=jnp.ones((1, D_MODEL), jnp.float32), be3=jnp.zeros((1, D_MODEL), jnp.float32),
        ))
    return dict(layers=layers,
                norm_g=jnp.ones((1, D_MODEL), jnp.float32),
                norm_b=jnp.zeros((1, D_MODEL), jnp.float32))


# ---------------- plain-JAX reference (for correctness check, f32) ----------------
def _ref_mha(q_in, k_in, v_in, w_in, b_in, wo, bo):
    B, _, D = q_in.shape
    dh = D // NHEAD
    q = q_in @ w_in[:, :D] + b_in[0, :D]
    k = k_in @ w_in[:, D:2 * D] + b_in[0, D:2 * D]
    v = v_in @ w_in[:, 2 * D:] + b_in[0, 2 * D:]
    q = q.reshape(B, -1, NHEAD, dh).transpose(0, 2, 1, 3) / math.sqrt(dh)
    k = k.reshape(B, -1, NHEAD, dh).transpose(0, 2, 1, 3)
    v = v.reshape(B, -1, NHEAD, dh).transpose(0, 2, 1, 3)
    s = jnp.einsum("bhqd,bhkd->bhqk", q, k)
    p = jax.nn.softmax(s, axis=-1)
    o = jnp.einsum("bhqk,bhkd->bhqd", p, v)
    o = o.transpose(0, 2, 1, 3).reshape(B, -1, D)
    return o @ wo + bo[0]


def _ref_ln(x, g, b, eps=1e-5):
    mu = x.mean(-1, keepdims=True)
    var = ((x - mu) ** 2).mean(-1, keepdims=True)
    return (x - mu) / jnp.sqrt(var + eps) * g[0] + b[0]


def ref_decoder(params, tgt, memory, pos, query_pos):
    x = jnp.transpose(tgt, (1, 0, 2))
    mem = jnp.transpose(memory, (1, 0, 2))
    qpos = jnp.transpose(query_pos, (1, 0, 2))
    posb = jnp.transpose(pos, (1, 0, 2))
    for p in params["layers"]:
        q_in = x + qpos
        sa = _ref_mha(q_in, q_in, x, p["sa_w_in"], p["sa_b_in"], p["sa_wo"], p["sa_bo"])
        x = _ref_ln(x + sa, p["g1"], p["be1"])
        ca = _ref_mha(x + qpos, mem + posb, mem, p["ca_w_in"], p["ca_b_in"], p["ca_wo"], p["ca_bo"])
        x = _ref_ln(x + ca, p["g2"], p["be2"])
        h = jnp.maximum(x @ p["w1"] + p["b1"][0], 0.0)
        ff = h @ p["w2"] + p["b2"][0]
        x = _ref_ln(x + ff, p["g3"], p["be3"])
    x = _ref_ln(x, params["norm_g"], params["norm_b"])
    return jnp.transpose(x, (1, 0, 2))[None]


# ---------------- main ----------------
if __name__ == "__main__":
    key = jax.random.PRNGKey(0)
    kp, k1, k2, k3, k4 = jax.random.split(key, 5)
    params = init_params(kp)

    tgt = jax.random.normal(k1, (NUM_QUERIES, BATCH, D_MODEL), jnp.float32)
    memory = jax.random.normal(k2, (MEM_LEN, BATCH, D_MODEL), jnp.float32)
    query_pos = jax.random.normal(k3, (NUM_QUERIES, BATCH, D_MODEL), jnp.float32)
    pos = jax.random.normal(k4, (MEM_LEN, BATCH, D_MODEL), jnp.float32)

    out = transformer_decoder_forward(params, tgt, memory, pos=pos, query_pos=query_pos)
    out = jax.block_until_ready(out)
    assert out.shape == (1, NUM_QUERIES, BATCH, D_MODEL), out.shape

    ref = ref_decoder(params, tgt, memory, pos, query_pos)
    err = float(jnp.max(jnp.abs(out - ref)))
    # tolerance accounts for bf16 matmul operands + pl.reciprocal(approx=True) softmax
    assert jnp.allclose(out, ref, atol=2e-2, rtol=2e-2), f"max abs err {err}"

    print("KERNEL_OK")
</pallas_src>

<mosaic_0001>
module attributes {stable_mosaic.version = 11 : i64} {
  func.func @fused_decoder_kernel(%arg0: i32, %arg1: memref<1x8x32xf32, #tpu.memory_space<vmem>>, %arg2: memref<1x16x32xf32, #tpu.memory_space<vmem>>, %arg3: memref<1x8x32xf32, #tpu.memory_space<vmem>>, %arg4: memref<1x16x32xf32, #tpu.memory_space<vmem>>, %arg5: memref<2x32x32xbf16, #tpu.memory_space<vmem>>, %arg6: memref<2x32x32xbf16, #tpu.memory_space<vmem>>, %arg7: memref<2x32x32xbf16, #tpu.memory_space<vmem>>, %arg8: memref<2x1x32xf32, #tpu.memory_space<vmem>>, %arg9: memref<2x1x32xf32, #tpu.memory_space<vmem>>, %arg10: memref<2x1x32xf32, #tpu.memory_space<vmem>>, %arg11: memref<2x32x32xbf16, #tpu.memory_space<vmem>>, %arg12: memref<2x1x32xf32, #tpu.memory_space<vmem>>, %arg13: memref<2x32x32xbf16, #tpu.memory_space<vmem>>, %arg14: memref<2x32x32xbf16, #tpu.memory_space<vmem>>, %arg15: memref<2x32x32xbf16, #tpu.memory_space<vmem>>, %arg16: memref<2x1x32xf32, #tpu.memory_space<vmem>>, %arg17: memref<2x1x32xf32, #tpu.memory_space<vmem>>, %arg18: memref<2x1x32xf32, #tpu.memory_space<vmem>>, %arg19: memref<2x32x32xbf16, #tpu.memory_space<vmem>>, %arg20: memref<2x1x32xf32, #tpu.memory_space<vmem>>, %arg21: memref<2x32x64xbf16, #tpu.memory_space<vmem>>, %arg22: memref<2x1x64xf32, #tpu.memory_space<vmem>>, %arg23: memref<2x64x32xbf16, #tpu.memory_space<vmem>>, %arg24: memref<2x1x32xf32, #tpu.memory_space<vmem>>, %arg25: memref<2x1x32xf32, #tpu.memory_space<vmem>>, %arg26: memref<2x1x32xf32, #tpu.memory_space<vmem>>, %arg27: memref<2x1x32xf32, #tpu.memory_space<vmem>>, %arg28: memref<2x1x32xf32, #tpu.memory_space<vmem>>, %arg29: memref<2x1x32xf32, #tpu.memory_space<vmem>>, %arg30: memref<2x1x32xf32, #tpu.memory_space<vmem>>, %arg31: memref<1x32xf32, #tpu.memory_space<vmem>>, %arg32: memref<1x32xf32, #tpu.memory_space<vmem>>, %arg33: memref<1x8x32xf32, #tpu.memory_space<vmem>>) attributes {dimension_semantics = [#tpu.dimension_semantics<parallel>], iteration_bounds = array<i64: 2>, scalar_prefetch = 0 : i64, scratch_operands = 0 : i64, tpu.core_type = #tpu.core_type<tc>, window_params = [{transform_indices = @transform_0, window_bounds = array<i64: 1, 8, 32>}, {transform_indices = @transform_1, window_bounds = array<i64: 1, 16, 32>}, {transform_indices = @transform_2, window_bounds = array<i64: 1, 8, 32>}, {transform_indices = @transform_3, window_bounds = array<i64: 1, 16, 32>}, {pipeline_mode = #tpu.pipeline_mode<synchronous>, transform_indices = @transform_4, window_bounds = array<i64: 2, 32, 32>}, {pipeline_mode = #tpu.pipeline_mode<synchronous>, transform_indices = @transform_5, window_bounds = array<i64: 2, 32, 32>}, {pipeline_mode = #tpu.pipeline_mode<synchronous>, transform_indices = @transform_6, window_bounds = array<i64: 2, 32, 32>}, {pipeline_mode = #tpu.pipeline_mode<synchronous>, transform_indices = @transform_7, window_bounds = array<i64: 2, 1, 32>}, {pipeline_mode = #tpu.pipeline_mode<synchronous>, transform_indices = @transform_8, window_bounds = array<i64: 2, 1, 32>}, {pipeline_mode = #tpu.pipeline_mode<synchronous>, transform_indices = @transform_9, window_bounds = array<i64: 2, 1, 32>}, {pipeline_mode = #tpu.pipeline_mode<synchronous>, transform_indices = @transform_10, window_bounds = array<i64: 2, 32, 32>}, {pipeline_mode = #tpu.pipeline_mode<synchronous>, transform_indices = @transform_11, window_bounds = array<i64: 2, 1, 32>}, {pipeline_mode = #tpu.pipeline_mode<synchronous>, transform_indices = @transform_12, window_bounds = array<i64: 2, 32, 32>}, {pipeline_mode = #tpu.pipeline_mode<synchronous>, transform_indices = @transform_13, window_bounds = array<i64: 2, 32, 32>}, {pipeline_mode = #tpu.pipeline_mode<synchronous>, transform_indices = @transform_14, window_bounds = array<i64: 2, 32, 32>}, {pipeline_mode = #tpu.pipeline_mode<synchronous>, transform_indices = @transform_15, window_bounds = array<i64: 2, 1, 32>}, {pipeline_mode = #tpu.pipeline_mode<synchronous>, transform_indices = @transform_16, window_bounds = array<i64: 2, 1, 32>}, {pipeline_mode = #tpu.pipeline_mode<synchronous>, transform_indices = @transform_17, window_bounds = array<i64: 2, 1, 32>}, {pipeline_mode = #tpu.pipeline_mode<synchronous>, transform_indices = @transform_18, window_bounds = array<i64: 2, 32, 32>}, {pipeline_mode = #tpu.pipeline_mode<synchronous>, transform_indices = @transform_19, window_bounds = array<i64: 2, 1, 32>}, {pipeline_mode = #tpu.pipeline_mode<synchronous>, transform_indices = @transform_20, window_bounds = array<i64: 2, 32, 64>}, {pipeline_mode = #tpu.pipeline_mode<synchronous>, transform_indices = @transform_21, window_bounds = array<i64: 2, 1, 64>}, {pipeline_mode = #tpu.pipeline_mode<synchronous>, transform_indices = @transform_22, window_bounds = array<i64: 2, 64, 32>}, {pipeline_mode = #tpu.pipeline_mode<synchronous>, transform_indices = @transform_23, window_bounds = array<i64: 2, 1, 32>}, {pipeline_mode = #tpu.pipeline_mode<synchronous>, transform_indices = @transform_24, window_bounds = array<i64: 2, 1, 32>}, {pipeline_mode = #tpu.pipeline_mode<synchronous>, transform_indices = @transform_25, window_bounds = array<i64: 2, 1, 32>}, {pipeline_mode = #tpu.pipeline_mode<synchronous>, transform_indices = @transform_26, window_bounds = array<i64: 2, 1, 32>}, {pipeline_mode = #tpu.pipeline_mode<synchronous>, transform_indices = @transform_27, window_bounds = array<i64: 2, 1, 32>}, {pipeline_mode = #tpu.pipeline_mode<synchronous>, transform_indices = @transform_28, window_bounds = array<i64: 2, 1, 32>}, {pipeline_mode = #tpu.pipeline_mode<synchronous>, transform_indices = @transform_29, window_bounds = array<i64: 2, 1, 32>}, {pipeline_mode = #tpu.pipeline_mode<synchronous>, transform_indices = @transform_30, window_bounds = array<i64: 1, 32>}, {pipeline_mode = #tpu.pipeline_mode<synchronous>, transform_indices = @transform_31, window_bounds = array<i64: 1, 32>}, {transform_indices = @transform_32, window_bounds = array<i64: 1, 8, 32>}]} {
    %c0 = arith.constant 0 : index
    %c0_0 = arith.constant 0 : index
    %c0_1 = arith.constant 0 : index
    %0 = vector.load %arg1[%c0, %c0_0, %c0_1] : memref<1x8x32xf32, #tpu.memory_space<vmem>>, vector<1x8x32xf32>
    %1 = vector.shape_cast %0 : vector<1x8x32xf32> to vector<8x32xf32>
    %c0_2 = arith.constant 0 : index
    %c0_3 = arith.constant 0 : index
    %c0_4 = arith.constant 0 : index
    %2 = vector.load %arg3[%c0_2, %c0_3, %c0_4] : memref<1x8x32xf32, #tpu.memory_space<vmem>>, vector<1x8x32xf32>
    %3 = vector.shape_cast %2 : vector<1x8x32xf32> to vector<8x32xf32>
    %c0_5 = arith.constant 0 : index
    %c0_6 = arith.constant 0 : index
    %c0_7 = arith.constant 0 : index
    %4 = vector.load %arg2[%c0_5, %c0_6, %c0_7] : memref<1x16x32xf32, #tpu.memory_space<vmem>>, vector<1x16x32xf32>
    %5 = vector.shape_cast %4 : vector<1x16x32xf32> to vector<16x32xf32>
    %c0_8 = arith.constant 0 : index
    %c0_9 = arith.constant 0 : index
    %c0_10 = arith.constant 0 : index
    %6 = vector.load %arg4[%c0_8, %c0_9, %c0_10] : memref<1x16x32xf32, #tpu.memory_space<vmem>>, vector<1x16x32xf32>
    %7 = vector.shape_cast %6 : vector<1x16x32xf32> to vector<16x32xf32>
    %8 = arith.truncf %5 : vector<16x32xf32> to vector<16x32xbf16>
    %9 = arith.addf %5, %7 : vector<16x32xf32>
    %10 = arith.truncf %9 : vector<16x32xf32> to vector<16x32xbf16>
    %11 = arith.addf %1, %3 : vector<8x32xf32>
    %12 = arith.truncf %11 : vector<8x32xf32> to vector<8x32xbf16>
    %c0_11 = arith.constant 0 : index
    %c0_12 = arith.constant 0 : index
    %c0_13 = arith.constant 0 : index
    %13 = vector.load %arg5[%c0_11, %c0_12, %c0_13] : memref<2x32x32xbf16, #tpu.memory_space<vmem>>, vector<1x32x32xbf16>
    %14 = vector.shape_cast %13 : vector<1x32x32xbf16> to vector<32x32xbf16>
    %cst = arith.constant dense<0.000000e+00> : vector<8x32xf32>
    %15 = tpu.matmul %12, %14, %cst {dimension_numbers = #tpu.dot_dimension_numbers<[1], [0], [0], [1], [0, 0, 1, 1], [], []>} : vector<8x32xbf16>, vector<32x32xbf16>, vector<8x32xf32> -> vector<8x32xf32>
    %c0_14 = arith.constant 0 : index
    %c0_15 = arith.constant 0 : index
    %c0_16 = arith.constant 0 : index
    %16 = vector.load %arg8[%c0_14, %c0_15, %c0_16] : memref<2x1x32xf32, #tpu.memory_space<vmem>>, vector<1x1x32xf32>
    %17 = vector.shape_cast %16 : vector<1x1x32xf32> to vector<1x32xf32>
    %18 = vector.broadcast %17 : vector<1x32xf32> to vector<8x32xf32>
    %19 = arith.addf %15, %18 : vector<8x32xf32>
    %c0_17 = arith.constant 0 : index
    %c0_18 = arith.constant 0 : index
    %c0_19 = arith.constant 0 : index
    %20 = vector.load %arg6[%c0_17, %c0_18, %c0_19] : memref<2x32x32xbf16, #tpu.memory_space<vmem>>, vector<1x32x32xbf16>
    %21 = vector.shape_cast %20 : vector<1x32x32xbf16> to vector<32x32xbf16>
    %cst_20 = arith.constant dense<0.000000e+00> : vector<8x32xf32>
    %22 = tpu.matmul %12, %21, %cst_20 {dimension_numbers = #tpu.dot_dimension_numbers<[1], [0], [0], [1], [0, 0, 1, 1], [], []>} : vector<8x32xbf16>, vector<32x32xbf16>, vector<8x32xf32> -> vector<8x32xf32>
    %c0_21 = arith.constant 0 : index
    %c0_22 = arith.constant 0 : index
    %c0_23 = arith.constant 0 : index
    %23 = vector.load %arg9[%c0_21, %c0_22, %c0_23] : memref<2x1x32xf32, #tpu.memory_space<vmem>>, vector<1x1x32xf32>
    %24 = vector.shape_cast %23 : vector<1x1x32xf32> to vector<1x32xf32>
    %25 = vector.broadcast %24 : vector<1x32xf32> to vector<8x32xf32>
    %26 = arith.addf %22, %25 : vector<8x32xf32>
    %27 = arith.truncf %1 : vector<8x32xf32> to vector<8x32xbf16>
    %c0_24 = arith.constant 0 : index
    %c0_25 = arith.constant 0 : index
    %c0_26 = arith.constant 0 : index
    %28 = vector.load %arg7[%c0_24, %c0_25, %c0_26] : memref<2x32x32xbf16, #tpu.memory_space<vmem>>, vector<1x32x32xbf16>
    %29 = vector.shape_cast %28 : vector<1x32x32xbf16> to vector<32x32xbf16>
    %cst_27 = arith.constant dense<0.000000e+00> : vector<8x32xf32>
    %30 = tpu.matmul %27, %29, %cst_27 {dimension_numbers = #tpu.dot_dimension_numbers<[1], [0], [0], [1], [0, 0, 1, 1], [], []>} : vector<8x32xbf16>, vector<32x32xbf16>, vector<8x32xf32> -> vector<8x32xf32>
    %c0_28 = arith.constant 0 : index
    %c0_29 = arith.constant 0 : index
    %c0_30 = arith.constant 0 : index
    %31 = vector.load %arg10[%c0_28, %c0_29, %c0_30] : memref<2x1x32xf32, #tpu.memory_space<vmem>>, vector<1x1x32xf32>
    %32 = vector.shape_cast %31 : vector<1x1x32xf32> to vector<1x32xf32>
    %33 = vector.broadcast %32 : vector<1x32xf32> to vector<8x32xf32>
    %34 = arith.addf %30, %33 : vector<8x32xf32>
    %35 = vector.shape_cast %19 : vector<8x32xf32> to vector<8x4x8xf32>
    %36 = tpu.transpose %35, [1, 0, 2] : vector<8x4x8xf32> -> vector<4x8x8xf32>
    %37 = arith.truncf %36 : vector<4x8x8xf32> to vector<4x8x8xbf16>
    %38 = vector.shape_cast %26 : vector<8x32xf32> to vector<8x4x8xf32>
    %39 = tpu.transpose %38, [1, 0, 2] : vector<8x4x8xf32> -> vector<4x8x8xf32>
    %40 = arith.truncf %39 : vector<4x8x8xf32> to vector<4x8x8xbf16>
    %41 = vector.shape_cast %34 : vector<8x32xf32> to vector<8x4x8xf32>
    %42 = tpu.transpose %41, [1, 0, 2] : vector<8x4x8xf32> -> vector<4x8x8xf32>
    %43 = arith.truncf %42 : vector<4x8x8xf32> to vector<4x8x8xbf16>
    "tpu.trace_start"() <{level = 10 : i32, message = "hqd,hkd->hqk"}> : () -> ()
    %cst_31 = arith.constant dense<0.000000e+00> : vector<4x8x8xf32>
    %44 = tpu.matmul %37, %40, %cst_31 {dimension_numbers = #tpu.dot_dimension_numbers<[2], [2], [1], [1], [0, 0, 0, 1, 1, 1], [0], [0]>} : vector<4x8x8xbf16>, vector<4x8x8xbf16>, vector<4x8x8xf32> -> vector<4x8x8xf32>
    "tpu.trace_stop"() : () -> ()
    %cst_32 = arith.constant dense<0xFF800000> : vector<4x8xf32>
    %45 = vector.multi_reduction <maximumf>, %44, %cst_32 [2] : vector<4x8x8xf32> to vector<4x8xf32>
    %46 = vector.shape_cast %45 : vector<4x8xf32> to vector<4x8x1xf32>
    %47 = vector.broadcast %46 : vector<4x8x1xf32> to vector<4x8x8xf32>
    %48 = arith.subf %44, %47 : vector<4x8x8xf32>
    %49 = math.exp %48 : vector<4x8x8xf32>
    %cst_33 = arith.constant dense<0.000000e+00> : vector<4x8xf32>
    %50 = vector.multi_reduction <add>, %49, %cst_33 [2] : vector<4x8x8xf32> to vector<4x8xf32>
    %51 = vector.shape_cast %50 : vector<4x8xf32> to vector<4x8x1xf32>
    %52 = tpu.reciprocal %51 {approx = true} : vector<4x8x1xf32> -> vector<4x8x1xf32>
    %53 = vector.broadcast %52 : vector<4x8x1xf32> to vector<4x8x8xf32>
    %54 = arith.mulf %49, %53 : vector<4x8x8xf32>
    %55 = arith.truncf %54 : vector<4x8x8xf32> to vector<4x8x8xbf16>
    "tpu.trace_start"() <{level = 10 : i32, message = "hqk,hkd->hqd"}> : () -> ()
    %cst_34 = arith.constant dense<0.000000e+00> : vector<4x8x8xf32>
    %56 = tpu.matmul %55, %43, %cst_34 {dimension_numbers = #tpu.dot_dimension_numbers<[2], [1], [1], [2], [0, 0, 0, 1, 1, 2], [0], [0]>} : vector<4x8x8xbf16>, vector<4x8x8xbf16>, vector<4x8x8xf32> -> vector<4x8x8xf32>
    "tpu.trace_stop"() : () -> ()
    %57 = tpu.transpose %56, [1, 0, 2] : vector<4x8x8xf32> -> vector<8x4x8xf32>
    %58 = vector.shape_cast %57 : vector<8x4x8xf32> to vector<8x32xf32>
    %59 = arith.truncf %58 : vector<8x32xf32> to vector<8x32xbf16>
    %c0_35 = arith.constant 0 : index
    %c0_36 = arith.constant 0 : index
    %c0_37 = arith.constant 0 : index
    %60 = vector.load %arg11[%c0_35, %c0_36, %c0_37] : memref<2x32x32xbf16, #tpu.memory_space<vmem>>, vector<1x32x32xbf16>
    %61 = vector.shape_cast %60 : vector<1x32x32xbf16> to vector<32x32xbf16>
    %cst_38 = arith.constant dense<0.000000e+00> : vector<8x32xf32>
    %62 = tpu.matmul %59, %61, %cst_38 {dimension_numbers = #tpu.dot_dimension_numbers<[1], [0], [0], [1], [0, 0, 1, 1], [], []>} : vector<8x32xbf16>, vector<32x32xbf16>, vector<8x32xf32> -> vector<8x32xf32>
    %c0_39 = arith.constant 0 : index
    %c0_40 = arith.constant 0 : index
    %c0_41 = arith.constant 0 : index
    %63 = vector.load %arg12[%c0_39, %c0_40, %c0_41] : memref<2x1x32xf32, #tpu.memory_space<vmem>>, vector<1x1x32xf32>
    %64 = vector.shape_cast %63 : vector<1x1x32xf32> to vector<1x32xf32>
    %65 = vector.broadcast %64 : vector<1x32xf32> to vector<8x32xf32>
    %66 = arith.addf %62, %65 : vector<8x32xf32>
    %67 = arith.addf %1, %66 : vector<8x32xf32>
    %c0_42 = arith.constant 0 : index
    %c0_43 = arith.constant 0 : index
    %c0_44 = arith.constant 0 : index
    %68 = vector.load %arg25[%c0_42, %c0_43, %c0_44] : memref<2x1x32xf32, #tpu.memory_space<vmem>>, vector<1x1x32xf32>
    %69 = vector.shape_cast %68 : vector<1x1x32xf32> to vector<1x32xf32>
    %c0_45 = arith.constant 0 : index
    %c0_46 = arith.constant 0 : index
    %c0_47 = arith.constant 0 : index
    %70 = vector.load %arg26[%c0_45, %c0_46, %c0_47] : memref<2x1x32xf32, #tpu.memory_space<vmem>>, vector<1x1x32xf32>
    %71 = vector.shape_cast %70 : vector<1x1x32xf32> to vector<1x32xf32>
    %cst_48 = arith.constant dense<0.000000e+00> : vector<8xf32>
    %72 = vector.multi_reduction <add>, %67, %cst_48 [1] : vector<8x32xf32> to vector<8xf32>
    %73 = vector.shape_cast %72 : vector<8xf32> to vector<8x1xf32>
    %cst_49 = arith.constant 3.200000e+01 : f32
    %74 = vector.broadcast %cst_49 : f32 to vector<8x1xf32>
    %75 = arith.divf %73, %74 : vector<8x1xf32>
    %76 = vector.broadcast %75 : vector<8x1xf32> to vector<8x32xf32>
    %77 = arith.subf %67, %76 : vector<8x32xf32>
    %78 = arith.mulf %77, %77 : vector<8x32xf32>
    %cst_50 = arith.constant dense<0.000000e+00> : vector<8xf32>
    %79 = vector.multi_reduction <add>, %78, %cst_50 [1] : vector<8x32xf32> to vector<8xf32>
    %80 = vector.shape_cast %79 : vector<8xf32> to vector<8x1xf32>
    %cst_51 = arith.constant 3.200000e+01 : f32
    %81 = vector.broadcast %cst_51 : f32 to vector<8x1xf32>
    %82 = arith.divf %80, %81 : vector<8x1xf32>
    %83 = vector.broadcast %75 : vector<8x1xf32> to vector<8x32xf32>
    %84 = arith.subf %67, %83 : vector<8x32xf32>
    %cst_52 = arith.constant 9.99999974E-6 : f32
    %85 = vector.broadcast %cst_52 : f32 to vector<8x1xf32>
    %86 = arith.addf %82, %85 : vector<8x1xf32>
    %87 = math.rsqrt %86 : vector<8x1xf32>
    %88 = vector.broadcast %87 : vector<8x1xf32> to vector<8x32xf32>
    %89 = arith.mulf %84, %88 : vector<8x32xf32>
    %90 = vector.broadcast %69 : vector<1x32xf32> to vector<8x32xf32>
    %91 = arith.mulf %89, %90 : vector<8x32xf32>
    %92 = vector.broadcast %71 : vector<1x32xf32> to vector<8x32xf32>
    %93 = arith.addf %91, %92 : vector<8x32xf32>
    %94 = arith.addf %93, %3 : vector<8x32xf32>
    %95 = arith.truncf %94 : vector<8x32xf32> to vector<8x32xbf16>
    %c0_53 = arith.constant 0 : index
    %c0_54 = arith.constant 0 : index
    %c0_55 = arith.constant 0 : index
    %96 = vector.load %arg13[%c0_53, %c0_54, %c0_55] : memref<2x32x32xbf16, #tpu.memory_space<vmem>>, vector<1x32x32xbf16>
    %97 = vector.shape_cast %96 : vector<1x32x32xbf16> to vector<32x32xbf16>
    %cst_56 = arith.constant dense<0.000000e+00> : vector<8x32xf32>
    %98 = tpu.matmul %95, %97, %cst_56 {dimension_numbers = #tpu.dot_dimension_numbers<[1], [0], [0], [1], [0, 0, 1, 1], [], []>} : vector<8x32xbf16>, vector<32x32xbf16>, vector<8x32xf32> -> vector<8x32xf32>
    %c0_57 = arith.constant 0 : index
    %c0_58 = arith.constant 0 : index
    %c0_59 = arith.constant 0 : index
    %99 = vector.load %arg16[%c0_57, %c0_58, %c0_59] : memref<2x1x32xf32, #tpu.memory_space<vmem>>, vector<1x1x32xf32>
    %100 = vector.shape_cast %99 : vector<1x1x32xf32> to vector<1x32xf32>
    %101 = vector.broadcast %100 : vector<1x32xf32> to vector<8x32xf32>
    %102 = arith.addf %98, %101 : vector<8x32xf32>
    %c0_60 = arith.constant 0 : index
    %c0_61 = arith.constant 0 : index
    %c0_62 = arith.constant 0 : index
    %103 = vector.load %arg14[%c0_60, %c0_61, %c0_62] : memref<2x32x32xbf16, #tpu.memory_space<vmem>>, vector<1x32x32xbf16>
    %104 = vector.shape_cast %103 : vector<1x32x32xbf16> to vector<32x32xbf16>
    %cst_63 = arith.constant dense<0.000000e+00> : vector<16x32xf32>
    %105 = tpu.matmul %10, %104, %cst_63 {dimension_numbers = #tpu.dot_dimension_numbers<[1], [0], [0], [1], [0, 0, 1, 1], [], []>} : vector<16x32xbf16>, vector<32x32xbf16>, vector<16x32xf32> -> vector<16x32xf32>
    %c0_64 = arith.constant 0 : index
    %c0_65 = arith.constant 0 : index
    %c0_66 = arith.constant 0 : index
    %106 = vector.load %arg17[%c0_64, %c0_65, %c0_66] : memref<2x1x32xf32, #tpu.memory_space<vmem>>, vector<1x1x32xf32>
    %107 = vector.shape_cast %106 : vector<1x1x32xf32> to vector<1x32xf32>
    %108 = vector.broadcast %107 : vector<1x32xf32> to vector<16x32xf32>
    %109 = arith.addf %105, %108 : vector<16x32xf32>
    %c0_67 = arith.constant 0 : index
    %c0_68 = arith.constant 0 : index
    %c0_69 = arith.constant 0 : index
    %110 = vector.load %arg15[%c0_67, %c0_68, %c0_69] : memref<2x32x32xbf16, #tpu.memory_space<vmem>>, vector<1x32x32xbf16>
    %111 = vector.shape_cast %110 : vector<1x32x32xbf16> to vector<32x32xbf16>
    %cst_70 = arith.constant dense<0.000000e+00> : vector<16x32xf32>
    %112 = tpu.matmul %8, %111, %cst_70 {dimension_numbers = #tpu.dot_dimension_numbers<[1], [0], [0], [1], [0, 0, 1, 1], [], []>} : vector<16x32xbf16>, vector<32x32xbf16>, vector<16x32xf32> -> vector<16x32xf32>
    %c0_71 = arith.constant 0 : index
    %c0_72 = arith.constant 0 : index
    %c0_73 = arith.constant 0 : index
    %113 = vector.load %arg18[%c0_71, %c0_72, %c0_73] : memref<2x1x32xf32, #tpu.memory_space<vmem>>, vector<1x1x32xf32>
    %114 = vector.shape_cast %113 : vector<1x1x32xf32> to vector<1x32xf32>
    %115 = vector.broadcast %114 : vector<1x32xf32> to vector<16x32xf32>
    %116 = arith.addf %112, %115 : vector<16x32xf32>
    %117 = vector.shape_cast %102 : vector<8x32xf32> to vector<8x4x8xf32>
    %118 = tpu.transpose %117, [1, 0, 2] : vector<8x4x8xf32> -> vector<4x8x8xf32>
    %119 = arith.truncf %118 : vector<4x8x8xf32> to vector<4x8x8xbf16>
    %120 = vector.shape_cast %109 : vector<16x32xf32> to vector<16x4x8xf32>
    %121 = tpu.transpose %120, [1, 0, 2] : vector<16x4x8xf32> -> vector<4x16x8xf32>
    %122 = arith.truncf %121 : vector<4x16x8xf32> to vector<4x16x8xbf16>
    %123 = vector.shape_cast %116 : vector<16x32xf32> to vector<16x4x8xf32>
    %124 = tpu.transpose %123, [1, 0, 2] : vector<16x4x8xf32> -> vector<4x16x8xf32>
    %125 = arith.truncf %124 : vector<4x16x8xf32> to vector<4x16x8xbf16>
    "tpu.trace_start"() <{level = 10 : i32, message = "hqd,hkd->hqk"}> : () -> ()
    %cst_74 = arith.constant dense<0.000000e+00> : vector<4x8x16xf32>
    %126 = tpu.matmul %119, %122, %cst_74 {dimension_numbers = #tpu.dot_dimension_numbers<[2], [2], [1], [1], [0, 0, 0, 1, 1, 1], [0], [0]>} : vector<4x8x8xbf16>, vector<4x16x8xbf16>, vector<4x8x16xf32> -> vector<4x8x16xf32>
    "tpu.trace_stop"() : () -> ()
    %cst_75 = arith.constant dense<0xFF800000> : vector<4x8xf32>
    %127 = vector.multi_reduction <maximumf>, %126, %cst_75 [2] : vector<4x8x16xf32> to vector<4x8xf32>
    %128 = vector.shape_cast %127 : vector<4x8xf32> to vector<4x8x1xf32>
    %129 = vector.broadcast %128 : vector<4x8x1xf32> to vector<4x8x16xf32>
    %130 = arith.subf %126, %129 : vector<4x8x16xf32>
    %131 = math.exp %130 : vector<4x8x16xf32>
    %cst_76 = arith.constant dense<0.000000e+00> : vector<4x8xf32>
    %132 = vector.multi_reduction <add>, %131, %cst_76 [2] : vector<4x8x16xf32> to vector<4x8xf32>
    %133 = vector.shape_cast %132 : vector<4x8xf32> to vector<4x8x1xf32>
    %134 = tpu.reciprocal %133 {approx = true} : vector<4x8x1xf32> -> vector<4x8x1xf32>
    %135 = vector.broadcast %134 : vector<4x8x1xf32> to vector<4x8x16xf32>
    %136 = arith.mulf %131, %135 : vector<4x8x16xf32>
    %137 = arith.truncf %136 : vector<4x8x16xf32> to vector<4x8x16xbf16>
    "tpu.trace_start"() <{level = 10 : i32, message = "hqk,hkd->hqd"}> : () -> ()
    %cst_77 = arith.constant dense<0.000000e+00> : vector<4x8x8xf32>
    %138 = tpu.matmul %137, %125, %cst_77 {dimension_numbers = #tpu.dot_dimension_numbers<[2], [1], [1], [2], [0, 0, 0, 1, 1, 2], [0], [0]>} : vector<4x8x16xbf16>, vector<4x16x8xbf16>, vector<4x8x8xf32> -> vector<4x8x8xf32>
    "tpu.trace_stop"() : () -> ()
    %139 = tpu.transpose %138, [1, 0, 2] : vector<4x8x8xf32> -> vector<8x4x8xf32>
    %140 = vector.shape_cast %139 : vector<8x4x8xf32> to vector<8x32xf32>
    %141 = arith.truncf %140 : vector<8x32xf32> to vector<8x32xbf16>
    %c0_78 = arith.constant 0 : index
    %c0_79 = arith.constant 0 : index
    %c0_80 = arith.constant 0 : index
    %142 = vector.load %arg19[%c0_78, %c0_79, %c0_80] : memref<2x32x32xbf16, #tpu.memory_space<vmem>>, vector<1x32x32xbf16>
    %143 = vector.shape_cast %142 : vector<1x32x32xbf16> to vector<32x32xbf16>
    %cst_81 = arith.constant dense<0.000000e+00> : vector<8x32xf32>
    %144 = tpu.matmul %141, %143, %cst_81 {dimension_numbers = #tpu.dot_dimension_numbers<[1], [0], [0], [1], [0, 0, 1, 1], [], []>} : vector<8x32xbf16>, vector<32x32xbf16>, vector<8x32xf32> -> vector<8x32xf32>
    %c0_82 = arith.constant 0 : index
    %c0_83 = arith.constant 0 : index
    %c0_84 = arith.constant 0 : index
    %145 = vector.load %arg20[%c0_82, %c0_83, %c0_84] : memref<2x1x32xf32, #tpu.memory_space<vmem>>, vector<1x1x32xf32>
    %146 = vector.shape_cast %145 : vector<1x1x32xf32> to vector<1x32xf32>
    %147 = vector.broadcast %146 : vector<1x32xf32> to vector<8x32xf32>
    %148 = arith.addf %144, %147 : vector<8x32xf32>
    %149 = arith.addf %93, %148 : vector<8x32xf32>
    %c0_85 = arith.constant 0 : index
    %c0_86 = arith.constant 0 : index
    %c0_87 = arith.constant 0 : index
    %150 = vector.load %arg27[%c0_85, %c0_86, %c0_87] : memref<2x1x32xf32, #tpu.memory_space<vmem>>, vector<1x1x32xf32>
    %151 = vector.shape_cast %150 : vector<1x1x32xf32> to vector<1x32xf32>
    %c0_88 = arith.constant 0 : index
    %c0_89 = arith.constant 0 : index
    %c0_90 = arith.constant 0 : index
    %152 = vector.load %arg28[%c0_88, %c0_89, %c0_90] : memref<2x1x32xf32, #tpu.memory_space<vmem>>, vector<1x1x32xf32>
    %153 = vector.shape_cast %152 : vector<1x1x32xf32> to vector<1x32xf32>
    %cst_91 = arith.constant dense<0.000000e+00> : vector<8xf32>
    %154 = vector.multi_reduction <add>, %149, %cst_91 [1] : vector<8x32xf32> to vector<8xf32>
    %155 = vector.shape_cast %154 : vector<8xf32> to vector<8x1xf32>
    %cst_92 = arith.constant 3.200000e+01 : f32
    %156 = vector.broadcast %cst_92 : f32 to vector<8x1xf32>
    %157 = arith.divf %155, %156 : vector<8x1xf32>
    %158 = vector.broadcast %157 : vector<8x1xf32> to vector<8x32xf32>
    %159 = arith.subf %149, %158 : vector<8x32xf32>
    %160 = arith.mulf %159, %159 : vector<8x32xf32>
    %cst_93 = arith.constant dense<0.000000e+00> : vector<8xf32>
    %161 = vector.multi_reduction <add>, %160, %cst_93 [1] : vector<8x32xf32> to vector<8xf32>
    %162 = vector.shape_cast %161 : vector<8xf32> to vector<8x1xf32>
    %cst_94 = arith.constant 3.200000e+01 : f32
    %163 = vector.broadcast %cst_94 : f32 to vector<8x1xf32>
    %164 = arith.divf %162, %163 : vector<8x1xf32>
    %165 = vector.broadcast %157 : vector<8x1xf32> to vector<8x32xf32>
    %166 = arith.subf %149, %165 : vector<8x32xf32>
    %cst_95 = arith.constant 9.99999974E-6 : f32
    %167 = vector.broadcast %cst_95 : f32 to vector<8x1xf32>
    %168 = arith.addf %164, %167 : vector<8x1xf32>
    %169 = math.rsqrt %168 : vector<8x1xf32>
    %170 = vector.broadcast %169 : vector<8x1xf32> to vector<8x32xf32>
    %171 = arith.mulf %166, %170 : vector<8x32xf32>
    %172 = vector.broadcast %151 : vector<1x32xf32> to vector<8x32xf32>
    %173 = arith.mulf %171, %172 : vector<8x32xf32>
    %174 = vector.broadcast %153 : vector<1x32xf32> to vector<8x32xf32>
    %175 = arith.addf %173, %174 : vector<8x32xf32>
    %176 = arith.truncf %175 : vector<8x32xf32> to vector<8x32xbf16>
    %c0_96 = arith.constant 0 : index
    %c0_97 = arith.constant 0 : index
    %c0_98 = arith.constant 0 : index
    %177 = vector.load %arg21[%c0_96, %c0_97, %c0_98] : memref<2x32x64xbf16, #tpu.memory_space<vmem>>, vector<1x32x64xbf16>
    %178 = vector.shape_cast %177 : vector<1x32x64xbf16> to vector<32x64xbf16>
    %cst_99 = arith.constant dense<0.000000e+00> : vector<8x64xf32>
    %179 = tpu.matmul %176, %178, %cst_99 {dimension_numbers = #tpu.dot_dimension_numbers<[1], [0], [0], [1], [0, 0, 1, 1], [], []>} : vector<8x32xbf16>, vector<32x64xbf16>, vector<8x64xf32> -> vector<8x64xf32>
    %c0_100 = arith.constant 0 : index
    %c0_101 = arith.constant 0 : index
    %c0_102 = arith.constant 0 : index
    %180 = vector.load %arg22[%c0_100, %c0_101, %c0_102] : memref<2x1x64xf32, #tpu.memory_space<vmem>>, vector<1x1x64xf32>
    %181 = vector.shape_cast %180 : vector<1x1x64xf32> to vector<1x64xf32>
    %182 = vector.broadcast %181 : vector<1x64xf32> to vector<8x64xf32>
    %183 = arith.addf %179, %182 : vector<8x64xf32>
    %cst_103 = arith.constant 0.000000e+00 : f32
    %184 = vector.broadcast %cst_103 : f32 to vector<8x64xf32>
    %185 = arith.maximumf %183, %184 : vector<8x64xf32>
    %186 = arith.truncf %185 : vector<8x64xf32> to vector<8x64xbf16>
    %c0_104 = arith.constant 0 : index
    %c0_105 = arith.constant 0 : index
    %c0_106 = arith.constant 0 : index
    %187 = vector.load %arg23[%c0_104, %c0_105, %c0_106] : memref<2x64x32xbf16, #tpu.memory_space<vmem>>, vector<1x64x32xbf16>
    %188 = vector.shape_cast %187 : vector<1x64x32xbf16> to vector<64x32xbf16>
    %cst_107 = arith.constant dense<0.000000e+00> : vector<8x32xf32>
    %189 = tpu.matmul %186, %188, %cst_107 {dimension_numbers = #tpu.dot_dimension_numbers<[1], [0], [0], [1], [0, 0, 1, 1], [], []>} : vector<8x64xbf16>, vector<64x32xbf16>, vector<8x32xf32> -> vector<8x32xf32>
    %c0_108 = arith.constant 0 : index
    %c0_109 = arith.constant 0 : index
    %c0_110 = arith.constant 0 : index
    %190 = vector.load %arg24[%c0_108, %c0_109, %c0_110] : memref<2x1x32xf32, #tpu.memory_space<vmem>>, vector<1x1x32xf32>
    %191 = vector.shape_cast %190 : vector<1x1x32xf32> to vector<1x32xf32>
    %192 = vector.broadcast %191 : vector<1x32xf32> to vector<8x32xf32>
    %193 = arith.addf %189, %192 : vector<8x32xf32>
    %194 = arith.addf %175, %193 : vector<8x32xf32>
    %c0_111 = arith.constant 0 : index
    %c0_112 = arith.constant 0 : index
    %c0_113 = arith.constant 0 : index
    %195 = vector.load %arg29[%c0_111, %c0_112, %c0_113] : memref<2x1x32xf32, #tpu.memory_space<vmem>>, vector<1x1x32xf32>
    %196 = vector.shape_cast %195 : vector<1x1x32xf32> to vector<1x32xf32>
    %c0_114 = arith.constant 0 : index
    %c0_115 = arith.constant 0 : index
    %c0_116 = arith.constant 0 : index
    %197 = vector.load %arg30[%c0_114, %c0_115, %c0_116] : memref<2x1x32xf32, #tpu.memory_space<vmem>>, vector<1x1x32xf32>
    %198 = vector.shape_cast %197 : vector<1x1x32xf32> to vector<1x32xf32>
    %cst_117 = arith.constant dense<0.000000e+00> : vector<8xf32>
    %199 = vector.multi_reduction <add>, %194, %cst_117 [1] : vector<8x32xf32> to vector<8xf32>
    %200 = vector.shape_cast %199 : vector<8xf32> to vector<8x1xf32>
    %cst_118 = arith.constant 3.200000e+01 : f32
    %201 = vector.broadcast %cst_118 : f32 to vector<8x1xf32>
    %202 = arith.divf %200, %201 : vector<8x1xf32>
    %203 = vector.broadcast %202 : vector<8x1xf32> to vector<8x32xf32>
    %204 = arith.subf %194, %203 : vector<8x32xf32>
    %205 = arith.mulf %204, %204 : vector<8x32xf32>
    %cst_119 = arith.constant dense<0.000000e+00> : vector<8xf32>
    %206 = vector.multi_reduction <add>, %205, %cst_119 [1] : vector<8x32xf32> to vector<8xf32>
    %207 = vector.shape_cast %206 : vector<8xf32> to vector<8x1xf32>
    %cst_120 = arith.constant 3.200000e+01 : f32
    %208 = vector.broadcast %cst_120 : f32 to vector<8x1xf32>
    %209 = arith.divf %207, %208 : vector<8x1xf32>
    %210 = vector.broadcast %202 : vector<8x1xf32> to vector<8x32xf32>
    %211 = arith.subf %194, %210 : vector<8x32xf32>
    %cst_121 = arith.constant 9.99999974E-6 : f32
    %212 = vector.broadcast %cst_121 : f32 to vector<8x1xf32>
    %213 = arith.addf %209, %212 : vector<8x1xf32>
    %214 = math.rsqrt %213 : vector<8x1xf32>
    %215 = vector.broadcast %214 : vector<8x1xf32> to vector<8x32xf32>
    %216 = arith.mulf %211, %215 : vector<8x32xf32>
    %217 = vector.broadcast %196 : vector<1x32xf32> to vector<8x32xf32>
    %218 = arith.mulf %216, %217 : vector<8x32xf32>
    %219 = vector.broadcast %198 : vector<1x32xf32> to vector<8x32xf32>
    %220 = arith.addf %218, %219 : vector<8x32xf32>
    %221 = arith.addf %220, %3 : vector<8x32xf32>
    %222 = arith.truncf %221 : vector<8x32xf32> to vector<8x32xbf16>
    %c1 = arith.constant 1 : index
    %c0_122 = arith.constant 0 : index
    %c0_123 = arith.constant 0 : index
    %223 = vector.load %arg5[%c1, %c0_122, %c0_123] : memref<2x32x32xbf16, #tpu.memory_space<vmem>>, vector<1x32x32xbf16>
    %224 = vector.shape_cast %223 : vector<1x32x32xbf16> to vector<32x32xbf16>
    %cst_124 = arith.constant dense<0.000000e+00> : vector<8x32xf32>
    %225 = tpu.matmul %222, %224, %cst_124 {dimension_numbers = #tpu.dot_dimension_numbers<[1], [0], [0], [1], [0, 0, 1, 1], [], []>} : vector<8x32xbf16>, vector<32x32xbf16>, vector<8x32xf32> -> vector<8x32xf32>
    %c1_125 = arith.constant 1 : index
    %c0_126 = arith.constant 0 : index
    %c0_127 = arith.constant 0 : index
    %226 = vector.load %arg8[%c1_125, %c0_126, %c0_127] : memref<2x1x32xf32, #tpu.memory_space<vmem>>, vector<1x1x32xf32>
    %227 = vector.shape_cast %226 : vector<1x1x32xf32> to vector<1x32xf32>
    %228 = vector.broadcast %227 : vector<1x32xf32> to vector<8x32xf32>
    %229 = arith.addf %225, %228 : vector<8x32xf32>
    %c1_128 = arith.constant 1 : index
    %c0_129 = arith.constant 0 : index
    %c0_130 = arith.constant 0 : index
    %230 = vector.load %arg6[%c1_128, %c0_129, %c0_130] : memref<2x32x32xbf16, #tpu.memory_space<vmem>>, vector<1x32x32xbf16>
    %231 = vector.shape_cast %230 : vector<1x32x32xbf16> to vector<32x32xbf16>
    %cst_131 = arith.constant dense<0.000000e+00> : vector<8x32xf32>
    %232 = tpu.matmul %222, %231, %cst_131 {dimension_numbers = #tpu.dot_dimension_numbers<[1], [0], [0], [1], [0, 0, 1, 1], [], []>} : vector<8x32xbf16>, vector<32x32xbf16>, vector<8x32xf32> -> vector<8x32xf32>
    %c1_132 = arith.constant 1 : index
    %c0_133 = arith.constant 0 : index
    %c0_134 = arith.constant 0 : index
    %233 = vector.load %arg9[%c1_132, %c0_133, %c0_134] : memref<2x1x32xf32, #tpu.memory_space<vmem>>, vector<1x1x32xf32>
    %234 = vector.shape_cast %233 : vector<1x1x32xf32> to vector<1x32xf32>
    %235 = vector.broadcast %234 : vector<1x32xf32> to vector<8x32xf32>
    %236 = arith.addf %232, %235 : vector<8x32xf32>
    %237 = arith.truncf %220 : vector<8x32xf32> to vector<8x32xbf16>
    %c1_135 = arith.constant 1 : index
    %c0_136 = arith.constant 0 : index
    %c0_137 = arith.constant 0 : index
    %238 = vector.load %arg7[%c1_135, %c0_136, %c0_137] : memref<2x32x32xbf16, #tpu.memory_space<vmem>>, vector<1x32x32xbf16>
    %239 = vector.shape_cast %238 : vector<1x32x32xbf16> to vector<32x32xbf16>
    %cst_138 = arith.constant dense<0.000000e+00> : vector<8x32xf32>
    %240 = tpu.matmul %237, %239, %cst_138 {dimension_numbers = #tpu.dot_dimension_numbers<[1], [0], [0], [1], [0, 0, 1, 1], [], []>} : vector<8x32xbf16>, vector<32x32xbf16>, vector<8x32xf32> -> vector<8x32xf32>
    %c1_139 = arith.constant 1 : index
    %c0_140 = arith.constant 0 : index
    %c0_141 = arith.constant 0 : index
    %241 = vector.load %arg10[%c1_139, %c0_140, %c0_141] : memref<2x1x32xf32, #tpu.memory_space<vmem>>, vector<1x1x32xf32>
    %242 = vector.shape_cast %241 : vector<1x1x32xf32> to vector<1x32xf32>
    %243 = vector.broadcast %242 : vector<1x32xf32> to vector<8x32xf32>
    %244 = arith.addf %240, %243 : vector<8x32xf32>
    %245 = vector.shape_cast %229 : vector<8x32xf32> to vector<8x4x8xf32>
    %246 = tpu.transpose %245, [1, 0, 2] : vector<8x4x8xf32> -> vector<4x8x8xf32>
    %247 = arith.truncf %246 : vector<4x8x8xf32> to vector<4x8x8xbf16>
    %248 = vector.shape_cast %236 : vector<8x32xf32> to vector<8x4x8xf32>
    %249 = tpu.transpose %248, [1, 0, 2] : vector<8x4x8xf32> -> vector<4x8x8xf32>
    %250 = arith.truncf %249 : vector<4x8x8xf32> to vector<4x8x8xbf16>
    %251 = vector.shape_cast %244 : vector<8x32xf32> to vector<8x4x8xf32>
    %252 = tpu.transpose %251, [1, 0, 2] : vector<8x4x8xf32> -> vector<4x8x8xf32>
    %253 = arith.truncf %252 : vector<4x8x8xf32> to vector<4x8x8xbf16>
    "tpu.trace_start"() <{level = 10 : i32, message = "hqd,hkd->hqk"}> : () -> ()
    %cst_142 = arith.constant dense<0.000000e+00> : vector<4x8x8xf32>
    %254 = tpu.matmul %247, %250, %cst_142 {dimension_numbers = #tpu.dot_dimension_numbers<[2], [2], [1], [1], [0, 0, 0, 1, 1, 1], [0], [0]>} : vector<4x8x8xbf16>, vector<4x8x8xbf16>, vector<4x8x8xf32> -> vector<4x8x8xf32>
    "tpu.trace_stop"() : () -> ()
    %cst_143 = arith.constant dense<0xFF800000> : vector<4x8xf32>
    %255 = vector.multi_reduction <maximumf>, %254, %cst_143 [2] : vector<4x8x8xf32> to vector<4x8xf32>
    %256 = vector.shape_cast %255 : vector<4x8xf32> to vector<4x8x1xf32>
    %257 = vector.broadcast %256 : vector<4x8x1xf32> to vector<4x8x8xf32>
    %258 = arith.subf %254, %257 : vector<4x8x8xf32>
    %259 = math.exp %258 : vector<4x8x8xf32>
    %cst_144 = arith.constant dense<0.000000e+00> : vector<4x8xf32>
    %260 = vector.multi_reduction <add>, %259, %cst_144 [2] : vector<4x8x8xf32> to vector<4x8xf32>
    %261 = vector.shape_cast %260 : vector<4x8xf32> to vector<4x8x1xf32>
    %262 = tpu.reciprocal %261 {approx = true} : vector<4x8x1xf32> -> vector<4x8x1xf32>
    %263 = vector.broadcast %262 : vector<4x8x1xf32> to vector<4x8x8xf32>
    %264 = arith.mulf %259, %263 : vector<4x8x8xf32>
    %265 = arith.truncf %264 : vector<4x8x8xf32> to vector<4x8x8xbf16>
    "tpu.trace_start"() <{level = 10 : i32, message = "hqk,hkd->hqd"}> : () -> ()
    %cst_145 = arith.constant dense<0.000000e+00> : vector<4x8x8xf32>
    %266 = tpu.matmul %265, %253, %cst_145 {dimension_numbers = #tpu.dot_dimension_numbers<[2], [1], [1], [2], [0, 0, 0, 1, 1, 2], [0], [0]>} : vector<4x8x8xbf16>, vector<4x8x8xbf16>, vector<4x8x8xf32> -> vector<4x8x8xf32>
    "tpu.trace_stop"() : () -> ()
    %267 = tpu.transpose %266, [1, 0, 2] : vector<4x8x8xf32> -> vector<8x4x8xf32>
    %268 = vector.shape_cast %267 : vector<8x4x8xf32> to vector<8x32xf32>
    %269 = arith.truncf %268 : vector<8x32xf32> to vector<8x32xbf16>
    %c1_146 = arith.constant 1 : index
    %c0_147 = arith.constant 0 : index
    %c0_148 = arith.constant 0 : index
    %270 = vector.load %arg11[%c1_146, %c0_147, %c0_148] : memref<2x32x32xbf16, #tpu.memory_space<vmem>>, vector<1x32x32xbf16>
    %271 = vector.shape_cast %270 : vector<1x32x32xbf16> to vector<32x32xbf16>
    %cst_149 = arith.constant dense<0.000000e+00> : vector<8x32xf32>
    %272 = tpu.matmul %269, %271, %cst_149 {dimension_numbers = #tpu.dot_dimension_numbers<[1], [0], [0], [1], [0, 0, 1, 1], [], []>} : vector<8x32xbf16>, vector<32x32xbf16>, vector<8x32xf32> -> vector<8x32xf32>
    %c1_150 = arith.constant 1 : index
    %c0_151 = arith.constant 0 : index
    %c0_152 = arith.constant 0 : index
    %273 = vector.load %arg12[%c1_150, %c0_151, %c0_152] : memref<2x1x32xf32, #tpu.memory_space<vmem>>, vector<1x1x32xf32>
    %274 = vector.shape_cast %273 : vector<1x1x32xf32> to vector<1x32xf32>
    %275 = vector.broadcast %274 : vector<1x32xf32> to vector<8x32xf32>
    %276 = arith.addf %272, %275 : vector<8x32xf32>
    %277 = arith.addf %220, %276 : vector<8x32xf32>
    %c1_153 = arith.constant 1 : index
    %c0_154 = arith.constant 0 : index
    %c0_155 = arith.constant 0 : index
    %278 = vector.load %arg25[%c1_153, %c0_154, %c0_155] : memref<2x1x32xf32, #tpu.memory_space<vmem>>, vector<1x1x32xf32>
    %279 = vector.shape_cast %278 : vector<1x1x32xf32> to vector<1x32xf32>
    %c1_156 = arith.constant 1 : index
    %c0_157 = arith.constant 0 : index
    %c0_158 = arith.constant 0 : index
    %280 = vector.load %arg26[%c1_156, %c0_157, %c0_158] : memref<2x1x32xf32, #tpu.memory_space<vmem>>, vector<1x1x32xf32>
    %281 = vector.shape_cast %280 : vector<1x1x32xf32> to vector<1x32xf32>
    %cst_159 = arith.constant dense<0.000000e+00> : vector<8xf32>
    %282 = vector.multi_reduction <add>, %277, %cst_159 [1] : vector<8x32xf32> to vector<8xf32>
    %283 = vector.shape_cast %282 : vector<8xf32> to vector<8x1xf32>
    %cst_160 = arith.constant 3.200000e+01 : f32
    %284 = vector.broadcast %cst_160 : f32 to vector<8x1xf32>
    %285 = arith.divf %283, %284 : vector<8x1xf32>
    %286 = vector.broadcast %285 : vector<8x1xf32> to vector<8x32xf32>
    %287 = arith.subf %277, %286 : vector<8x32xf32>
    %288 = arith.mulf %287, %287 : vector<8x32xf32>
    %cst_161 = arith.constant dense<0.000000e+00> : vector<8xf32>
    %289 = vector.multi_reduction <add>, %288, %cst_161 [1] : vector<8x32xf32> to vector<8xf32>
    %290 = vector.shape_cast %289 : vector<8xf32> to vector<8x1xf32>
    %cst_162 = arith.constant 3.200000e+01 : f32
    %291 = vector.broadcast %cst_162 : f32 to vector<8x1xf32>
    %292 = arith.divf %290, %291 : vector<8x1xf32>
    %293 = vector.broadcast %285 : vector<8x1xf32> to vector<8x32xf32>
    %294 = arith.subf %277, %293 : vector<8x32xf32>
    %cst_163 = arith.constant 9.99999974E-6 : f32
    %295 = vector.broadcast %cst_163 : f32 to vector<8x1xf32>
    %296 = arith.addf %292, %295 : vector<8x1xf32>
    %297 = math.rsqrt %296 : vector<8x1xf32>
    %298 = vector.broadcast %297 : vector<8x1xf32> to vector<8x32xf32>
    %299 = arith.mulf %294, %298 : vector<8x32xf32>
    %300 = vector.broadcast %279 : vector<1x32xf32> to vector<8x32xf32>
    %301 = arith.mulf %299, %300 : vector<8x32xf32>
    %302 = vector.broadcast %281 : vector<1x32xf32> to vector<8x32xf32>
    %303 = arith.addf %301, %302 : vector<8x32xf32>
    %304 = arith.addf %303, %3 : vector<8x32xf32>
    %305 = arith.truncf %304 : vector<8x32xf32> to vector<8x32xbf16>
    %c1_164 = arith.constant 1 : index
    %c0_165 = arith.constant 0 : index
    %c0_166 = arith.constant 0 : index
    %306 = vector.load %arg13[%c1_164, %c0_165, %c0_166] : memref<2x32x32xbf16, #tpu.memory_space<vmem>>, vector<1x32x32xbf16>
    %307 = vector.shape_cast %306 : vector<1x32x32xbf16> to vector<32x32xbf16>
    %cst_167 = arith.constant dense<0.000000e+00> : vector<8x32xf32>
    %308 = tpu.matmul %305, %307, %cst_167 {dimension_numbers = #tpu.dot_dimension_numbers<[1], [0], [0], [1], [0, 0, 1, 1], [], []>} : vector<8x32xbf16>, vector<32x32xbf16>, vector<8x32xf32> -> vector<8x32xf32>
    %c1_168 = arith.constant 1 : index
    %c0_169 = arith.constant 0 : index
    %c0_170 = arith.constant 0 : index
    %309 = vector.load %arg16[%c1_168, %c0_169, %c0_170] : memref<2x1x32xf32, #tpu.memory_space<vmem>>, vector<1x1x32xf32>
    %310 = vector.shape_cast %309 : vector<1x1x32xf32> to vector<1x32xf32>
    %311 = vector.broadcast %310 : vector<1x32xf32> to vector<8x32xf32>
    %312 = arith.addf %308, %311 : vector<8x32xf32>
    %c1_171 = arith.constant 1 : index
    %c0_172 = arith.constant 0 : index
    %c0_173 = arith.constant 0 : index
    %313 = vector.load %arg14[%c1_171, %c0_172, %c0_173] : memref<2x32x32xbf16, #tpu.memory_space<vmem>>, vector<1x32x32xbf16>
    %314 = vector.shape_cast %313 : vector<1x32x32xbf16> to vector<32x32xbf16>
    %cst_174 = arith.constant dense<0.000000e+00> : vector<16x32xf32>
    %315 = tpu.matmul %10, %314, %cst_174 {dimension_numbers = #tpu.dot_dimension_numbers<[1], [0], [0], [1], [0, 0, 1, 1], [], []>} : vector<16x32xbf16>, vector<32x32xbf16>, vector<16x32xf32> -> vector<16x32xf32>
    %c1_175 = arith.constant 1 : index
    %c0_176 = arith.constant 0 : index
    %c0_177 = arith.constant 0 : index
    %316 = vector.load %arg17[%c1_175, %c0_176, %c0_177] : memref<2x1x32xf32, #tpu.memory_space<vmem>>, vector<1x1x32xf32>
    %317 = vector.shape_cast %316 : vector<1x1x32xf32> to vector<1x32xf32>
    %318 = vector.broadcast %317 : vector<1x32xf32> to vector<16x32xf32>
    %319 = arith.addf %315, %318 : vector<16x32xf32>
    %c1_178 = arith.constant 1 : index
    %c0_179 = arith.constant 0 : index
    %c0_180 = arith.constant 0 : index
    %320 = vector.load %arg15[%c1_178, %c0_179, %c0_180] : memref<2x32x32xbf16, #tpu.memory_space<vmem>>, vector<1x32x32xbf16>
    %321 = vector.shape_cast %320 : vector<1x32x32xbf16> to vector<32x32xbf16>
    %cst_181 = arith.constant dense<0.000000e+00> : vector<16x32xf32>
    %322 = tpu.matmul %8, %321, %cst_181 {dimension_numbers = #tpu.dot_dimension_numbers<[1], [0], [0], [1], [0, 0, 1, 1], [], []>} : vector<16x32xbf16>, vector<32x32xbf16>, vector<16x32xf32> -> vector<16x32xf32>
    %c1_182 = arith.constant 1 : index
    %c0_183 = arith.constant 0 : index
    %c0_184 = arith.constant 0 : index
    %323 = vector.load %arg18[%c1_182, %c0_183, %c0_184] : memref<2x1x32xf32, #tpu.memory_space<vmem>>, vector<1x1x32xf32>
    %324 = vector.shape_cast %323 : vector<1x1x32xf32> to vector<1x32xf32>
    %325 = vector.broadcast %324 : vector<1x32xf32> to vector<16x32xf32>
    %326 = arith.addf %322, %325 : vector<16x32xf32>
    %327 = vector.shape_cast %312 : vector<8x32xf32> to vector<8x4x8xf32>
    %328 = tpu.transpose %327, [1, 0, 2] : vector<8x4x8xf32> -> vector<4x8x8xf32>
    %329 = arith.truncf %328 : vector<4x8x8xf32> to vector<4x8x8xbf16>
    %330 = vector.shape_cast %319 : vector<16x32xf32> to vector<16x4x8xf32>
    %331 = tpu.transpose %330, [1, 0, 2] : vector<16x4x8xf32> -> vector<4x16x8xf32>
    %332 = arith.truncf %331 : vector<4x16x8xf32> to vector<4x16x8xbf16>
    %333 = vector.shape_cast %326 : vector<16x32xf32> to vector<16x4x8xf32>
    %334 = tpu.transpose %333, [1, 0, 2] : vector<16x4x8xf32> -> vector<4x16x8xf32>
    %335 = arith.truncf %334 : vector<4x16x8xf32> to vector<4x16x8xbf16>
    "tpu.trace_start"() <{level = 10 : i32, message = "hqd,hkd->hqk"}> : () -> ()
    %cst_185 = arith.constant dense<0.000000e+00> : vector<4x8x16xf32>
    %336 = tpu.matmul %329, %332, %cst_185 {dimension_numbers = #tpu.dot_dimension_numbers<[2], [2], [1], [1], [0, 0, 0, 1, 1, 1], [0], [0]>} : vector<4x8x8xbf16>, vector<4x16x8xbf16>, vector<4x8x16xf32> -> vector<4x8x16xf32>
    "tpu.trace_stop"() : () -> ()
    %cst_186 = arith.constant dense<0xFF800000> : vector<4x8xf32>
    %337 = vector.multi_reduction <maximumf>, %336, %cst_186 [2] : vector<4x8x16xf32> to vector<4x8xf32>
    %338 = vector.shape_cast %337 : vector<4x8xf32> to vector<4x8x1xf32>
    %339 = vector.broadcast %338 : vector<4x8x1xf32> to vector<4x8x16xf32>
    %340 = arith.subf %336, %339 : vector<4x8x16xf32>
    %341 = math.exp %340 : vector<4x8x16xf32>
    %cst_187 = arith.constant dense<0.000000e+00> : vector<4x8xf32>
    %342 = vector.multi_reduction <add>, %341, %cst_187 [2] : vector<4x8x16xf32> to vector<4x8xf32>
    %343 = vector.shape_cast %342 : vector<4x8xf32> to vector<4x8x1xf32>
    %344 = tpu.reciprocal %343 {approx = true} : vector<4x8x1xf32> -> vector<4x8x1xf32>
    %345 = vector.broadcast %344 : vector<4x8x1xf32> to vector<4x8x16xf32>
    %346 = arith.mulf %341, %345 : vector<4x8x16xf32>
    %347 = arith.truncf %346 : vector<4x8x16xf32> to vector<4x8x16xbf16>
    "tpu.trace_start"() <{level = 10 : i32, message = "hqk,hkd->hqd"}> : () -> ()
    %cst_188 = arith.constant dense<0.000000e+00> : vector<4x8x8xf32>
    %348 = tpu.matmul %347, %335, %cst_188 {dimension_numbers = #tpu.dot_dimension_numbers<[2], [1], [1], [2], [0, 0, 0, 1, 1, 2], [0], [0]>} : vector<4x8x16xbf16>, vector<4x16x8xbf16>, vector<4x8x8xf32> -> vector<4x8x8xf32>
    "tpu.trace_stop"() : () -> ()
    %349 = tpu.transpose %348, [1, 0, 2] : vector<4x8x8xf32> -> vector<8x4x8xf32>
    %350 = vector.shape_cast %349 : vector<8x4x8xf32> to vector<8x32xf32>
    %351 = arith.truncf %350 : vector<8x32xf32> to vector<8x32xbf16>
    %c1_189 = arith.constant 1 : index
    %c0_190 = arith.constant 0 : index
    %c0_191 = arith.constant 0 : index
    %352 = vector.load %arg19[%c1_189, %c0_190, %c0_191] : memref<2x32x32xbf16, #tpu.memory_space<vmem>>, vector<1x32x32xbf16>
    %353 = vector.shape_cast %352 : vector<1x32x32xbf16> to vector<32x32xbf16>
    %cst_192 = arith.constant dense<0.000000e+00> : vector<8x32xf32>
    %354 = tpu.matmul %351, %353, %cst_192 {dimension_numbers = #tpu.dot_dimension_numbers<[1], [0], [0], [1], [0, 0, 1, 1], [], []>} : vector<8x32xbf16>, vector<32x32xbf16>, vector<8x32xf32> -> vector<8x32xf32>
    %c1_193 = arith.constant 1 : index
    %c0_194 = arith.constant 0 : index
    %c0_195 = arith.constant 0 : index
    %355 = vector.load %arg20[%c1_193, %c0_194, %c0_195] : memref<2x1x32xf32, #tpu.memory_space<vmem>>, vector<1x1x32xf32>
    %356 = vector.shape_cast %355 : vector<1x1x32xf32> to vector<1x32xf32>
    %357 = vector.broadcast %356 : vector<1x32xf32> to vector<8x32xf32>
    %358 = arith.addf %354, %357 : vector<8x32xf32>
    %359 = arith.addf %303, %358 : vector<8x32xf32>
    %c1_196 = arith.constant 1 : index
    %c0_197 = arith.constant 0 : index
    %c0_198 = arith.constant 0 : index
    %360 = vector.load %arg27[%c1_196, %c0_197, %c0_198] : memref<2x1x32xf32, #tpu.memory_space<vmem>>, vector<1x1x32xf32>
    %361 = vector.shape_cast %360 : vector<1x1x32xf32> to vector<1x32xf32>
    %c1_199 = arith.constant 1 : index
    %c0_200 = arith.constant 0 : index
    %c0_201 = arith.constant 0 : index
    %362 = vector.load %arg28[%c1_199, %c0_200, %c0_201] : memref<2x1x32xf32, #tpu.memory_space<vmem>>, vector<1x1x32xf32>
    %363 = vector.shape_cast %362 : vector<1x1x32xf32> to vector<1x32xf32>
    %cst_202 = arith.constant dense<0.000000e+00> : vector<8xf32>
    %364 = vector.multi_reduction <add>, %359, %cst_202 [1] : vector<8x32xf32> to vector<8xf32>
    %365 = vector.shape_cast %364 : vector<8xf32> to vector<8x1xf32>
    %cst_203 = arith.constant 3.200000e+01 : f32
    %366 = vector.broadcast %cst_203 : f32 to vector<8x1xf32>
    %367 = arith.divf %365, %366 : vector<8x1xf32>
    %368 = vector.broadcast %367 : vector<8x1xf32> to vector<8x32xf32>
    %369 = arith.subf %359, %368 : vector<8x32xf32>
    %370 = arith.mulf %369, %369 : vector<8x32xf32>
    %cst_204 = arith.constant dense<0.000000e+00> : vector<8xf32>
    %371 = vector.multi_reduction <add>, %370, %cst_204 [1] : vector<8x32xf32> to vector<8xf32>
    %372 = vector.shape_cast %371 : vector<8xf32> to vector<8x1xf32>
    %cst_205 = arith.constant 3.200000e+01 : f32
    %373 = vector.broadcast %cst_205 : f32 to vector<8x1xf32>
    %374 = arith.divf %372, %373 : vector<8x1xf32>
    %375 = vector.broadcast %367 : vector<8x1xf32> to vector<8x32xf32>
    %376 = arith.subf %359, %375 : vector<8x32xf32>
    %cst_206 = arith.constant 9.99999974E-6 : f32
    %377 = vector.broadcast %cst_206 : f32 to vector<8x1xf32>
    %378 = arith.addf %374, %377 : vector<8x1xf32>
    %379 = math.rsqrt %378 : vector<8x1xf32>
    %380 = vector.broadcast %379 : vector<8x1xf32> to vector<8x32xf32>
    %381 = arith.mulf %376, %380 : vector<8x32xf32>
    %382 = vector.broadcast %361 : vector<1x32xf32> to vector<8x32xf32>
    %383 = arith.mulf %381, %382 : vector<8x32xf32>
    %384 = vector.broadcast %363 : vector<1x32xf32> to vector<8x32xf32>
    %385 = arith.addf %383, %384 : vector<8x32xf32>
    %386 = arith.truncf %385 : vector<8x32xf32> to vector<8x32xbf16>
    %c1_207 = arith.constant 1 : index
    %c0_208 = arith.constant 0 : index
    %c0_209 = arith.constant 0 : index
    %387 = vector.load %arg21[%c1_207, %c0_208, %c0_209] : memref<2x32x64xbf16, #tpu.memory_space<vmem>>, vector<1x32x64xbf16>
    %388 = vector.shape_cast %387 : vector<1x32x64xbf16> to vector<32x64xbf16>
    %cst_210 = arith.constant dense<0.000000e+00> : vector<8x64xf32>
    %389 = tpu.matmul %386, %388, %cst_210 {dimension_numbers = #tpu.dot_dimension_numbers<[1], [0], [0], [1], [0, 0, 1, 1], [], []>} : vector<8x32xbf16>, vector<32x64xbf16>, vector<8x64xf32> -> vector<8x64xf32>
    %c1_211 = arith.constant 1 : index
    %c0_212 = arith.constant 0 : index
    %c0_213 = arith.constant 0 : index
    %390 = vector.load %arg22[%c1_211, %c0_212, %c0_213] : memref<2x1x64xf32, #tpu.memory_space<vmem>>, vector<1x1x64xf32>
    %391 = vector.shape_cast %390 : vector<1x1x64xf32> to vector<1x64xf32>
    %392 = vector.broadcast %391 : vector<1x64xf32> to vector<8x64xf32>
    %393 = arith.addf %389, %392 : vector<8x64xf32>
    %cst_214 = arith.constant 0.000000e+00 : f32
    %394 = vector.broadcast %cst_214 : f32 to vector<8x64xf32>
    %395 = arith.maximumf %393, %394 : vector<8x64xf32>
    %396 = arith.truncf %395 : vector<8x64xf32> to vector<8x64xbf16>
    %c1_215 = arith.constant 1 : index
    %c0_216 = arith.constant 0 : index
    %c0_217 = arith.constant 0 : index
    %397 = vector.load %arg23[%c1_215, %c0_216, %c0_217] : memref<2x64x32xbf16, #tpu.memory_space<vmem>>, vector<1x64x32xbf16>
    %398 = vector.shape_cast %397 : vector<1x64x32xbf16> to vector<64x32xbf16>
    %cst_218 = arith.constant dense<0.000000e+00> : vector<8x32xf32>
    %399 = tpu.matmul %396, %398, %cst_218 {dimension_numbers = #tpu.dot_dimension_numbers<[1], [0], [0], [1], [0, 0, 1, 1], [], []>} : vector<8x64xbf16>, vector<64x32xbf16>, vector<8x32xf32> -> vector<8x32xf32>
    %c1_219 = arith.constant 1 : index
    %c0_220 = arith.constant 0 : index
    %c0_221 = arith.constant 0 : index
    %400 = vector.load %arg24[%c1_219, %c0_220, %c0_221] : memref<2x1x32xf32, #tpu.memory_space<vmem>>, vector<1x1x32xf32>
    %401 = vector.shape_cast %400 : vector<1x1x32xf32> to vector<1x32xf32>
    %402 = vector.broadcast %401 : vector<1x32xf32> to vector<8x32xf32>
    %403 = arith.addf %399, %402 : vector<8x32xf32>
    %404 = arith.addf %385, %403 : vector<8x32xf32>
    %c1_222 = arith.constant 1 : index
    %c0_223 = arith.constant 0 : index
    %c0_224 = arith.constant 0 : index
    %405 = vector.load %arg29[%c1_222, %c0_223, %c0_224] : memref<2x1x32xf32, #tpu.memory_space<vmem>>, vector<1x1x32xf32>
    %406 = vector.shape_cast %405 : vector<1x1x32xf32> to vector<1x32xf32>
    %c1_225 = arith.constant 1 : index
    %c0_226 = arith.constant 0 : index
    %c0_227 = arith.constant 0 : index
    %407 = vector.load %arg30[%c1_225, %c0_226, %c0_227] : memref<2x1x32xf32, #tpu.memory_space<vmem>>, vector<1x1x32xf32>
    %408 = vector.shape_cast %407 : vector<1x1x32xf32> to vector<1x32xf32>
    %cst_228 = arith.constant dense<0.000000e+00> : vector<8xf32>
    %409 = vector.multi_reduction <add>, %404, %cst_228 [1] : vector<8x32xf32> to vector<8xf32>
    %410 = vector.shape_cast %409 : vector<8xf32> to vector<8x1xf32>
    %cst_229 = arith.constant 3.200000e+01 : f32
    %411 = vector.broadcast %cst_229 : f32 to vector<8x1xf32>
    %412 = arith.divf %410, %411 : vector<8x1xf32>
    %413 = vector.broadcast %412 : vector<8x1xf32> to vector<8x32xf32>
    %414 = arith.subf %404, %413 : vector<8x32xf32>
    %415 = arith.mulf %414, %414 : vector<8x32xf32>
    %cst_230 = arith.constant dense<0.000000e+00> : vector<8xf32>
    %416 = vector.multi_reduction <add>, %415, %cst_230 [1] : vector<8x32xf32> to vector<8xf32>
    %417 = vector.shape_cast %416 : vector<8xf32> to vector<8x1xf32>
    %cst_231 = arith.constant 3.200000e+01 : f32
    %418 = vector.broadcast %cst_231 : f32 to vector<8x1xf32>
    %419 = arith.divf %417, %418 : vector<8x1xf32>
    %420 = vector.broadcast %412 : vector<8x1xf32> to vector<8x32xf32>
    %421 = arith.subf %404, %420 : vector<8x32xf32>
    %cst_232 = arith.constant 9.99999974E-6 : f32
    %422 = vector.broadcast %cst_232 : f32 to vector<8x1xf32>
    %423 = arith.addf %419, %422 : vector<8x1xf32>
    %424 = math.rsqrt %423 : vector<8x1xf32>
    %425 = vector.broadcast %424 : vector<8x1xf32> to vector<8x32xf32>
    %426 = arith.mulf %421, %425 : vector<8x32xf32>
    %427 = vector.broadcast %406 : vector<1x32xf32> to vector<8x32xf32>
    %428 = arith.mulf %426, %427 : vector<8x32xf32>
    %429 = vector.broadcast %408 : vector<1x32xf32> to vector<8x32xf32>
    %430 = arith.addf %428, %429 : vector<8x32xf32>
    %c0_233 = arith.constant 0 : index
    %c0_234 = arith.constant 0 : index
    %431 = vector.load %arg31[%c0_233, %c0_234] : memref<1x32xf32, #tpu.memory_space<vmem>>, vector<1x32xf32>
    %c0_235 = arith.constant 0 : index
    %c0_236 = arith.constant 0 : index
    %432 = vector.load %arg32[%c0_235, %c0_236] : memref<1x32xf32, #tpu.memory_space<vmem>>, vector<1x32xf32>
    %cst_237 = arith.constant dense<0.000000e+00> : vector<8xf32>
    %433 = vector.multi_reduction <add>, %430, %cst_237 [1] : vector<8x32xf32> to vector<8xf32>
    %434 = vector.shape_cast %433 : vector<8xf32> to vector<8x1xf32>
    %cst_238 = arith.constant 3.200000e+01 : f32
    %435 = vector.broadcast %cst_238 : f32 to vector<8x1xf32>
    %436 = arith.divf %434, %435 : vector<8x1xf32>
    %437 = vector.broadcast %436 : vector<8x1xf32> to vector<8x32xf32>
    %438 = arith.subf %430, %437 : vector<8x32xf32>
    %439 = arith.mulf %438, %438 : vector<8x32xf32>
    %cst_239 = arith.constant dense<0.000000e+00> : vector<8xf32>
    %440 = vector.multi_reduction <add>, %439, %cst_239 [1] : vector<8x32xf32> to vector<8xf32>
    %441 = vector.shape_cast %440 : vector<8xf32> to vector<8x1xf32>
    %cst_240 = arith.constant 3.200000e+01 : f32
    %442 = vector.broadcast %cst_240 : f32 to vector<8x1xf32>
    %443 = arith.divf %441, %442 : vector<8x1xf32>
    %444 = vector.broadcast %436 : vector<8x1xf32> to vector<8x32xf32>
    %445 = arith.subf %430, %444 : vector<8x32xf32>
    %cst_241 = arith.constant 9.99999974E-6 : f32
    %446 = vector.broadcast %cst_241 : f32 to vector<8x1xf32>
    %447 = arith.addf %443, %446 : vector<8x1xf32>
    %448 = math.rsqrt %447 : vector<8x1xf32>
    %449 = vector.broadcast %448 : vector<8x1xf32> to vector<8x32xf32>
    %450 = arith.mulf %445, %449 : vector<8x32xf32>
    %451 = vector.broadcast %431 : vector<1x32xf32> to vector<8x32xf32>
    %452 = arith.mulf %450, %451 : vector<8x32xf32>
    %453 = vector.broadcast %432 : vector<1x32xf32> to vector<8x32xf32>
    %454 = arith.addf %452, %453 : vector<8x32xf32>
    %455 = vector.shape_cast %454 : vector<8x32xf32> to vector<1x8x32xf32>
    %c0_242 = arith.constant 0 : index
    %c0_243 = arith.constant 0 : index
    %c0_244 = arith.constant 0 : index
    %456 = vector.load %arg33[%c0_242, %c0_243, %c0_244] : memref<1x8x32xf32, #tpu.memory_space<vmem>>, vector<1x8x32xf32>
    tpu.vector_store %arg33[%c0_242, %c0_243, %c0_244], %455 {strides = array<i32>} : memref<1x8x32xf32, #tpu.memory_space<vmem>>, vector<1x8x32xf32>,
    return
  }
  func.func @transform_0(%arg0: i32) -> (i32, i32, i32) {
    %c0_i32 = arith.constant 0 : i32
    %c0_i32_0 = arith.constant 0 : i32
    %c0_i32_1 = arith.constant 0 : i32
    return %arg0, %c0_i32, %c0_i32_0 : i32, i32, i32
  }
  func.func @transform_1(%arg0: i32) -> (i32, i32, i32) {
    %c0_i32 = arith.constant 0 : i32
    %c0_i32_0 = arith.constant 0 : i32
    %c0_i32_1 = arith.constant 0 : i32
    return %arg0, %c0_i32, %c0_i32_0 : i32, i32, i32
  }
  func.func @transform_2(%arg0: i32) -> (i32, i32, i32) {
    %c0_i32 = arith.constant 0 : i32
    %c0_i32_0 = arith.constant 0 : i32
    %c0_i32_1 = arith.constant 0 : i32
    return %arg0, %c0_i32, %c0_i32_0 : i32, i32, i32
  }
  func.func @transform_3(%arg0: i32) -> (i32, i32, i32) {
    %c0_i32 = arith.constant 0 : i32
    %c0_i32_0 = arith.constant 0 : i32
    %c0_i32_1 = arith.constant 0 : i32
    return %arg0, %c0_i32, %c0_i32_0 : i32, i32, i32
  }
  func.func @transform_4(%arg0: i32) -> (i32, i32, i32) {
    %c0_i32 = arith.constant 0 : i32
    %c0_i32_0 = arith.constant 0 : i32
    %c0_i32_1 = arith.constant 0 : i32
    %c0_i32_2 = arith.constant 0 : i32
    return %c0_i32, %c0_i32_0, %c0_i32_1 : i32, i32, i32
  }
  func.func @transform_5(%arg0: i32) -> (i32, i32, i32) {
    %c0_i32 = arith.constant 0 : i32
    %c0_i32_0 = arith.constant 0 : i32
    %c0_i32_1 = arith.constant 0 : i32
    %c0_i32_2 = arith.constant 0 : i32
    return %c0_i32, %c0_i32_0, %c0_i32_1 : i32, i32, i32
  }
  func.func @transform_6(%arg0: i32) -> (i32, i32, i32) {
    %c0_i32 = arith.constant 0 : i32
    %c0_i32_0 = arith.constant 0 : i32
    %c0_i32_1 = arith.constant 0 : i32
    %c0_i32_2 = arith.constant 0 : i32
    return %c0_i32, %c0_i32_0, %c0_i32_1 : i32, i32, i32
  }
  func.func @transform_7(%arg0: i32) -> (i32, i32, i32) {
    %c0_i32 = arith.constant 0 : i32
    %c0_i32_0 = arith.constant 0 : i32
    %c0_i32_1 = arith.constant 0 : i32
    %c0_i32_2 = arith.constant 0 : i32
    return %c0_i32, %c0_i32_0, %c0_i32_1 : i32, i32, i32
  }
  func.func @transform_8(%arg0: i32) -> (i32, i32, i32) {
    %c0_i32 = arith.constant 0 : i32
    %c0_i32_0 = arith.constant 0 : i32
    %c0_i32_1 = arith.constant 0 : i32
    %c0_i32_2 = arith.constant 0 : i32
    return %c0_i32, %c0_i32_0, %c0_i32_1 : i32, i32, i32
  }
  func.func @transform_9(%arg0: i32) -> (i32, i32, i32) {
    %c0_i32 = arith.constant 0 : i32
    %c0_i32_0 = arith.constant 0 : i32
    %c0_i32_1 = arith.constant 0 : i32
    %c0_i32_2 = arith.constant 0 : i32
    return %c0_i32, %c0_i32_0, %c0_i32_1 : i32, i32, i32
  }
  func.func @transform_10(%arg0: i32) -> (i32, i32, i32) {
    %c0_i32 = arith.constant 0 : i32
    %c0_i32_0 = arith.constant 0 : i32
    %c0_i32_1 = arith.constant 0 : i32
    %c0_i32_2 = arith.constant 0 : i32
    return %c0_i32, %c0_i32_0, %c0_i32_1 : i32, i32, i32
  }
  func.func @transform_11(%arg0: i32) -> (i32, i32, i32) {
    %c0_i32 = arith.constant 0 : i32
    %c0_i32_0 = arith.constant 0 : i32
    %c0_i32_1 = arith.constant 0 : i32
    %c0_i32_2 = arith.constant 0 : i32
    return %c0_i32, %c0_i32_0, %c0_i32_1 : i32, i32, i32
  }
  func.func @transform_12(%arg0: i32) -> (i32, i32, i32) {
    %c0_i32 = arith.constant 0 : i32
    %c0_i32_0 = arith.constant 0 : i32
    %c0_i32_1 = arith.constant 0 : i32
    %c0_i32_2 = arith.constant 0 : i32
    return %c0_i32, %c0_i32_0, %c0_i32_1 : i32, i32, i32
  }
  func.func @transform_13(%arg0: i32) -> (i32, i32, i32) {
    %c0_i32 = arith.constant 0 : i32
    %c0_i32_0 = arith.constant 0 : i32
    %c0_i32_1 = arith.constant 0 : i32
    %c0_i32_2 = arith.constant 0 : i32
    return %c0_i32, %c0_i32_0, %c0_i32_1 : i32, i32, i32
  }
  func.func @transform_14(%arg0: i32) -> (i32, i32, i32) {
    %c0_i32 = arith.constant 0 : i32
    %c0_i32_0 = arith.constant 0 : i32
    %c0_i32_1 = arith.constant 0 : i32
    %c0_i32_2 = arith.constant 0 : i32
    return %c0_i32, %c0_i32_0, %c0_i32_1 : i32, i32, i32
  }
  func.func @transform_15(%arg0: i32) -> (i32, i32, i32) {
    %c0_i32 = arith.constant 0 : i32
    %c0_i32_0 = arith.constant 0 : i32
    %c0_i32_1 = arith.constant 0 : i32
    %c0_i32_2 = arith.constant 0 : i32
    return %c0_i32, %c0_i32_0, %c0_i32_1 : i32, i32, i32
  }
  func.func @transform_16(%arg0: i32) -> (i32, i32, i32) {
    %c0_i32 = arith.constant 0 : i32
    %c0_i32_0 = arith.constant 0 : i32
    %c0_i32_1 = arith.constant 0 : i32
    %c0_i32_2 = arith.constant 0 : i32
    return %c0_i32, %c0_i32_0, %c0_i32_1 : i32, i32, i32
  }
  func.func @transform_17(%arg0: i32) -> (i32, i32, i32) {
    %c0_i32 = arith.constant 0 : i32
    %c0_i32_0 = arith.constant 0 : i32
    %c0_i32_1 = arith.constant 0 : i32
    %c0_i32_2 = arith.constant 0 : i32
    return %c0_i32, %c0_i32_0, %c0_i32_1 : i32, i32, i32
  }
  func.func @transform_18(%arg0: i32) -> (i32, i32, i32) {
    %c0_i32 = arith.constant 0 : i32
    %c0_i32_0 = arith.constant 0 : i32
    %c0_i32_1 = arith.constant 0 : i32
    %c0_i32_2 = arith.constant 0 : i32
    return %c0_i32, %c0_i32_0, %c0_i32_1 : i32, i32, i32
  }
  func.func @transform_19(%arg0: i32) -> (i32, i32, i32) {
    %c0_i32 = arith.constant 0 : i32
    %c0_i32_0 = arith.constant 0 : i32
    %c0_i32_1 = arith.constant 0 : i32
    %c0_i32_2 = arith.constant 0 : i32
    return %c0_i32, %c0_i32_0, %c0_i32_1 : i32, i32, i32
  }
  func.func @transform_20(%arg0: i32) -> (i32, i32, i32) {
    %c0_i32 = arith.constant 0 : i32
    %c0_i32_0 = arith.constant 0 : i32
    %c0_i32_1 = arith.constant 0 : i32
    %c0_i32_2 = arith.constant 0 : i32
    return %c0_i32, %c0_i32_0, %c0_i32_1 : i32, i32, i32
  }
  func.func @transform_21(%arg0: i32) -> (i32, i32, i32) {
    %c0_i32 = arith.constant 0 : i32
    %c0_i32_0 = arith.constant 0 : i32
    %c0_i32_1 = arith.constant 0 : i32
    %c0_i32_2 = arith.constant 0 : i32
    return %c0_i32, %c0_i32_0, %c0_i32_1 : i32, i32, i32
  }
  func.func @transform_22(%arg0: i32) -> (i32, i32, i32) {
    %c0_i32 = arith.constant 0 : i32
    %c0_i32_0 = arith.constant 0 : i32
    %c0_i32_1 = arith.constant 0 : i32
    %c0_i32_2 = arith.constant 0 : i32
    return %c0_i32, %c0_i32_0, %c0_i32_1 : i32, i32, i32
  }
  func.func @transform_23(%arg0: i32) -> (i32, i32, i32) {
    %c0_i32 = arith.constant 0 : i32
    %c0_i32_0 = arith.constant 0 : i32
    %c0_i32_1 = arith.constant 0 : i32
    %c0_i32_2 = arith.constant 0 : i32
    return %c0_i32, %c0_i32_0, %c0_i32_1 : i32, i32, i32
  }
  func.func @transform_24(%arg0: i32) -> (i32, i32, i32) {
    %c0_i32 = arith.constant 0 : i32
    %c0_i32_0 = arith.constant 0 : i32
    %c0_i32_1 = arith.constant 0 : i32
    %c0_i32_2 = arith.constant 0 : i32
    return %c0_i32, %c0_i32_0, %c0_i32_1 : i32, i32, i32
  }
  func.func @transform_25(%arg0: i32) -> (i32, i32, i32) {
    %c0_i32 = arith.constant 0 : i32
    %c0_i32_0 = arith.constant 0 : i32
    %c0_i32_1 = arith.constant 0 : i32
    %c0_i32_2 = arith.constant 0 : i32
    return %c0_i32, %c0_i32_0, %c0_i32_1 : i32, i32, i32
  }
  func.func @transform_26(%arg0: i32) -> (i32, i32, i32) {
    %c0_i32 = arith.constant 0 : i32
    %c0_i32_0 = arith.constant 0 : i32
    %c0_i32_1 = arith.constant 0 : i32
    %c0_i32_2 = arith.constant 0 : i32
    return %c0_i32, %c0_i32_0, %c0_i32_1 : i32, i32, i32
  }
  func.func @transform_27(%arg0: i32) -> (i32, i32, i32) {
    %c0_i32 = arith.constant 0 : i32
    %c0_i32_0 = arith.constant 0 : i32
    %c0_i32_1 = arith.constant 0 : i32
    %c0_i32_2 = arith.constant 0 : i32
    return %c0_i32, %c0_i32_0, %c0_i32_1 : i32, i32, i32
  }
  func.func @transform_28(%arg0: i32) -> (i32, i32, i32) {
    %c0_i32 = arith.constant 0 : i32
    %c0_i32_0 = arith.constant 0 : i32
    %c0_i32_1 = arith.constant 0 : i32
    %c0_i32_2 = arith.constant 0 : i32
    return %c0_i32, %c0_i32_0, %c0_i32_1 : i32, i32, i32
  }
  func.func @transform_29(%arg0: i32) -> (i32, i32, i32) {
    %c0_i32 = arith.constant 0 : i32
    %c0_i32_0 = arith.constant 0 : i32
    %c0_i32_1 = arith.constant 0 : i32
    %c0_i32_2 = arith.constant 0 : i32
    return %c0_i32, %c0_i32_0, %c0_i32_1 : i32, i32, i32
  }
  func.func @transform_30(%arg0: i32) -> (i32, i32) {
    %c0_i32 = arith.constant 0 : i32
    %c0_i32_0 = arith.constant 0 : i32
    %c0_i32_1 = arith.constant 0 : i32
    return %c0_i32, %c0_i32_0 : i32, i32
  }
  func.func @transform_31(%arg0: i32) -> (i32, i32) {
    %c0_i32 = arith.constant 0 : i32
    %c0_i32_0 = arith.constant 0 : i32
    %c0_i32_1 = arith.constant 0 : i32
    return %c0_i32, %c0_i32_0 : i32, i32
  }
  func.func @transform_32(%arg0: i32) -> (i32, i32, i32) {
    %c0_i32 = arith.constant 0 : i32
    %c0_i32_0 = arith.constant 0 : i32
    %c0_i32_1 = arith.constant 0 : i32
    return %arg0, %c0_i32, %c0_i32_0 : i32, i32, i32
  }
}

</mosaic_0001>

<bundles_post_ra>
// kernel: tpu_custom_call.1
= control target key start
LH: loop header
LB: loop body
LE: loop exit
PB: predicated region body
PF: predicated region fallthrough
CT: control target
= control target key end

     0   :  { %s9474_s6 = smov 1   ;;  %s9475_s10 = smov 2   ;;  %s11033_s0 = inlined_call_operand.smem [shape: u32[33], index: -1, kind: input, shape index: {}] }
   0x1   :  { %s9545_s5 = sld [smem:[%s11033_s0]]   ;;  %s9476_s14 = smov 3  }
   0x2   :  { %s9550_s9 = sld [smem:[%s11033_s0 + %s9474_s6]]   ;;  %s9477_s18 = smov 4  }
   0x3   :  { %s9555_s13 = sld [smem:[%s11033_s0 + %s9475_s10]]   ;;  %s9478_s22 = smov 5  }
   0x4   :  { %s9560_s17 = sld [smem:[%s11033_s0 + %s9476_s14]]   ;;  %s9479_s26 = smov 6  }
   0x5   :  { %s9565_s21 = sld [smem:[%s11033_s0 + %s9477_s18]]   ;;  %s9480_s30 = smov 7  }
   0x6   :  { %s9570_s25 = sld [smem:[%s11033_s0 + %s9478_s22]]   ;;  %s9481_s4 = smov 8  }
   0x7   :  { %11089 = sst [smem:[#allocation40_spill]] %s9545_s5  ;;  %s9482_s10 = smov 9  }
   0x8   :  { %11090 = sst [smem:[#allocation41_spill]] %s9550_s9  ;;  %s9483_s15 = smov 10  }
   0x9   :  { %11091 = sst [smem:[#allocation42_spill]] %s9555_s13  ;;  %s9484_s20 = smov 11  }
   0xa   :  { %11092 = sst [smem:[#allocation43_spill]] %s9560_s17  ;;  %s9486_s1 = smov 13  }
   0xb   :  { %11093 = sst [smem:[#allocation44_spill]] %s9565_s21  ;;  %s9487_s7 = smov 14  }
   0xc   :  { %11094 = sst [smem:[#allocation45_spill]] %s9570_s25  ;;  %s9489_s22 = smov 16  }
   0xd   :  { %s9575_s29 = sld [smem:[%s11033_s0 + %s9479_s26]]   ;;  %s9485_s26 = smov 12  }
   0xe   :  { %s9580_s3 = sld [smem:[%s11033_s0 + %s9480_s30]]   ;;  %s9490_s28 = smov 17  }
   0xf   :  { %s9585_s8 = sld [smem:[%s11033_s0 + %s9481_s4]]  }
  0x10   :  { %s9590_s14 = sld [smem:[%s11033_s0 + %s9482_s10]]  }
  0x11   :  { %s9595_s19 = sld [smem:[%s11033_s0 + %s9483_s15]]   ;;  %s9488_s15 = smov 15  }
  0x12   :  { %s9600_s24 = sld [smem:[%s11033_s0 + %s9484_s20]]  }
  0x13   :  { %11095 = sst [smem:[#allocation46_spill]] %s9575_s29 }
  0x14   :  { %11096 = sst [smem:[#allocation47_spill]] %s9580_s3 }
  0x15   :  { %11097 = sst [smem:[#allocation48_spill]] %s9585_s8 }
  0x16   :  { %11098 = sst [smem:[#allocation49_spill]] %s9590_s14 }
  0x17   :  { %11099 = sst [smem:[#allocation50_spill]] %s9595_s19 }
  0x18   :  { %11100 = sst [smem:[#allocation51_spill]] %s9600_s24 }
  0x19   :  { %s9605_s30 = sld [smem:[%s11033_s0 + %s9485_s26]]  }
  0x1a   :  { %s9610_s6 = sld [smem:[%s11033_s0 + %s9486_s1]]  }
  0x1b   :  { %s9615_s12 = sld [smem:[%s11033_s0 + %s9487_s7]]   ;;  %s9491_s7 = smov 18  }
  0x1c   :  { %s9620_s20 = sld [smem:[%s11033_s0 + %s9488_s15]]   ;;  %s9492_s15 = smov 19  }
  0x1d   :  { %s9625_s27 = sld [smem:[%s11033_s0 + %s9489_s22]]   ;;  %s9493_s22 = smov 20  }
  0x1e   :  { %s9630_s4 = sld [smem:[%s11033_s0 + %s9490_s28]]   ;;  %s9494_s28 = smov 21  }
  0x1f   :  { %s9635_s17 = sld [smem:[%s11033_s0 + %s9491_s7]]   ;;  %s9495_s7 = smov 22  }
  0x20   :  { %11101 = sst [smem:[#allocation52_spill]] %s9610_s6 }
  0x21   :  { %11102 = sst [smem:[#allocation53_spill]] %s9615_s12 }
  0x22   :  { %11103 = sst [smem:[#allocation54_spill]] %s9620_s20 }
  0x23   :  { %11104 = sst [smem:[#allocation55_spill]] %s9625_s27 }
  0x24   :  { %11105 = sst [smem:[#allocation56_spill]] %s9630_s4 }
  0x25   :  { %11106 = sst [smem:[#allocation57_spill]] %s9635_s17 }
  0x26   :  { %s9640_s9 = sld [smem:[%s11033_s0 + %s9492_s15]]   ;;  %s9496_s15 = smov 23  }
  0x27   :  { %s9645_s19 = sld [smem:[%s11033_s0 + %s9493_s22]]   ;;  %s9497_s22 = smov 24  }
  0x28   :  { %s9650_s21 = sld [smem:[%s11033_s0 + %s9494_s28]]   ;;  %s9498_s28 = smov 25  }
  0x29   :  { %s9655_s13 = sld [smem:[%s11033_s0 + %s9495_s7]]   ;;  %s9499_s7 = smov 26  }
  0x2a   :  { %s9665_s5 = sld [smem:[%s11033_s0 + %s9497_s22]]   ;;  %s9501_s22 = smov 28  }
  0x2c   :  { %11107 = sst [smem:[#allocation58_spill]] %s9640_s9 }
  0x2d   :  { %11108 = sst [smem:[#allocation59_spill]] %s9645_s19 }
  0x2e   :  { %11109 = sst [smem:[#allocation60_spill]] %s9650_s21 }
  0x2f   :  { %11110 = sst [smem:[#allocation61_spill]] %s9655_s13 }
  0x30   :  { %s9660_s9 = sld [smem:[%s11033_s0 + %s9496_s15]]   ;;  %s9500_s15 = smov 27  }
  0x31   :  { %11112 = sst [smem:[#allocation63_spill]] %s9665_s5 }
  0x32   :  { %s9670_s21 = sld [smem:[%s11033_s0 + %s9498_s28]]   ;;  %s9502_s28 = smov 29  }
  0x33   :  { %s9675_s13 = sld [smem:[%s11033_s0 + %s9499_s7]]   ;;  %s9503_s7 = smov 30  }
  0x34   :  { %s9685_s5 = sld [smem:[%s11033_s0 + %s9501_s22]]   ;;  %s9505_s22 = smov 32  }
  0x36   :  { %11111 = sst [smem:[#allocation62_spill]] %s9660_s9 }
  0x37   :  { %s9680_s9 = sld [smem:[%s11033_s0 + %s9500_s15]]   ;;  %s9504_s15 = smov 31  }
  0x38   :  { %11113 = sst [smem:[#allocation64_spill]] %s9670_s21 }
  0x39   :  { %11114 = sst [smem:[#allocation65_spill]] %s9675_s13 }
  0x3a   :  { %11116 = sst [smem:[#allocation67_spill]] %s9685_s5 }
  0x3b   :  { %s9690_s21 = sld [smem:[%s11033_s0 + %s9502_s28]]  }
  0x3c   :  { %s9695_s13 = sld [smem:[%s11033_s0 + %s9503_s7]]  }
  0x3d   :  { %11115 = sst [smem:[#allocation66_spill]] %s9680_s9 }
  0x3e   :  { %s9700_s9 = sld [smem:[%s11033_s0 + %s9504_s15]]  }
  0x3f   :  { %s9705_s5 = sld [smem:[%s11033_s0 + %s9505_s22]]  }
  0x44   :  { %11117 = sst [smem:[#allocation68_spill]] %s9700_s9 }
  0x45   :  { %11118 = sst [smem:[#allocation69_spill]] %s9705_s5 }
  0x46   :  { %70 = vsyncpa [#allocation3], 0 }
  0x47   :  { %72 = vsyncpa [#allocation3 + $0x1], 0 }
  0x48   :  { %73 = vsyncpa [#allocation6], 0 }
  0x49   :  { %75 = vsyncpa [#allocation6 + $0x1], 0 }
  0x4a   :  { %76 = vsyncpa [#allocation9], 0 }
  0x4b   :  { %77 = vsyncpa [#allocation12], 0 }
  0x4c   :  { %78 = vsyncpa [#allocation15], 0 }
  0x4d   :  { %79 = vsyncpa [#allocation18], 0 }
  0x4e   :  { %80 = vsyncpa [#allocation21], 0 }
  0x4f   :  { %81 = vsyncpa [#allocation24], 0 }
  0x50   :  { %82 = vsyncpa [#allocation27], 0 }
  0x51   :  { %83 = vsyncpa [#allocation4], 0 }
  0x52   :  { %85 = vsyncpa [#allocation4 + $0x1], 0  ;;  %s9707_s28 = smov 0   ;;  %s9709_s1 = smov 0  }
  0x53   :  { %s9711_s2 = smov 0   ;;  %s9713_s0 = smov 0  }
  0x54 LB: > { %s11119_s27 = sld [smem:[#allocation55_spill]]  ;;  %s11120_s24 = sld [smem:[#allocation51_spill]]  ;;  %s9460_s28 = sphi %s9707_s28, %s11190_s28   ;;  %s9472_s0 = sphi %s9713_s0, %s11193_s0   ;;  %s9468_s2 = sphi %s9711_s2, %s11192_s2   ;;  %s9464_s1 = sphi %s9709_s1, %s11191_s1  }
  0x55   : > { %s11121_s20 = sld [smem:[#allocation54_spill]]  ;;  %s11122_s19 = sld [smem:[#allocation59_spill]] }
  0x56   : > { %s11123_s17 = sld [smem:[#allocation57_spill]]  ;;  %s11125_s12 = sld [smem:[#allocation53_spill]] }
  0x57   : > { %s11124_s14 = sld [smem:[#allocation49_spill]]  ;;  %s11126_s4 = sld [smem:[#allocation56_spill]] }
  0x58   : > { %s11127_s3 = sld [smem:[#allocation47_spill]]  ;;  %s11128_s8 = sld [smem:[#allocation48_spill]] }
  0x59   : > { %s11129_s6 = sld [smem:[#allocation52_spill]]  ;;  %s11130_s29 = sld [smem:[#allocation46_spill]] }
  0x5a   : > { %s11131_s25 = sld [smem:[#allocation45_spill]]  ;;  %s9506_s7 = smov [#allocation7]  }
  0x5b   : > { %s829_s10 = sshll.u32 %s9506_s7, 4  ;;  %s9728_s11 = sadd.s32 4294967295, %s9472_s0   ;;  %s9733_s10 = int_to_ptr.vmem [resolvable:$true] %s829_s10 }
  0x5c   : > { %p7825_p0 = scmp.ge.s32.totalorder %s9472_s0, 1  ;;  %p11048_p1 = scmp.eq.s32.totalorder %s9728_s11, 0 }
  0x5d   : > { %p814_p2 = scmp.lt.s32.totalorder %s9472_s0, 3  ;;  %s9507_s16 = smov [#allocation8]  }
  0x5e   : > { %s842_s18 = sshll.u32 %s9507_s16, 4  ;;  %s9508_s23 = smov [#allocation11]   ;;  %s9748_s18 = int_to_ptr.vmem [resolvable:$true] %s842_s18 }
  0x5f   : > { %p9735_p3 = pnand %p7825_p0, %p814_p2  ;;  %s9750_s26 = sshll.u32 %s9508_s23, 4  ;;  %s869_s26 = int_to_ptr.vmem [resolvable:$true] %s9750_s26 }
  0x60   : > { %s8918_s7 = scalar_lea.hbm %s11131_s25, 512 }
  0x61   : > { %s11132_s15 = scalar_select %p9735_p3, 1, 0 }
  0x62   : > { %p8618_p5 = pneg %p9735_p3  ;;  %p8919_p7 = scmp.ne.s32.totalorder %s11131_s25, %s8918_s7 }
  0x63   : > { %p8925_p11 = scmp.lt.u32.totalorder %s8918_s7, %s11131_s25 }
  0x64   : > { %p9744_p6 = pnand %p8618_p5, %p11048_p1 }
  0x66   : > { %p9756_p8 = pneg %p9744_p6 }
  0x68   : > { %p8921_p9 = pnand %p9756_p8, %p8919_p7 }
  0x6a   : > { %p8922_p10 = pneg %p8921_p9 }
  0x6c   : > { %p8927_p12 = pnand %p8925_p11, %p8922_p10 }
  0x6e   : > { %8930 = shalt.err (!%p8927_p12)
}
  0x6f   : > { %s8931_s16 = scalar_lea.vmem %s9733_s10, 512  ;;  %p8939_p5 = scmp.lt.s32.totalorder %s9733_s10, %s9733_s10 }
  0x70   : > { %p8932_p13 = scmp.ne.s32.totalorder %s9733_s10, %s8931_s16  ;;  %p8940_p4 = scmp.lt.s32.totalorder %s8931_s16, %s8931_s16 }
  0x72   : > { %p8934_p0 = pnand %p8932_p13, %p9756_p8  ;;  %p8941_p1 = por %p8940_p4, %p8939_p5 }
  0x74   : > { %p8935_p2 = pneg %p8934_p0 }
  0x76   : > { %p8942_p3 = pnand %p8941_p1, %p8935_p2 }
  0x78   : > { %8945 = shalt.err (!%p8942_p3)
}
  0x79   : > { %s11050_s23 = smov 64   ;;  %s11052_s7 = smov 4  }
  0x7a   : > { %8621 = dma.hbm_to_vmem [thread:$0]  (!%p9744_p6), %s11131_s25, 512, %s9733_s10, [#allocation6], %s11050_s23, %s11050_s23, %s11052_s7  }
  0x7b   : > { %s8946_s9 = scalar_lea.hbm %s11130_s29, 512 }
  0x7c   : > { %p8947_p7 = scmp.ne.s32.totalorder %s11130_s29, %s8946_s9  ;;  %p8953_p3 = scmp.lt.u32.totalorder %s8946_s9, %s11130_s29 }
  0x7e   : > { %p8949_p4 = pnand %p8947_p7, %p9756_p8 }
  0x80   : > { %p8950_p1 = pneg %p8949_p4 }
  0x82   : > { %p8955_p9 = pnand %p8953_p3, %p8950_p1 }
  0x84   : > { %8958 = shalt.err (!%p8955_p9)
}
  0x85   : > { %s8959_s16 = scalar_lea.vmem %s9748_s18, 512  ;;  %p8967_p13 = scmp.lt.s32.totalorder %s9748_s18, %s9748_s18 }
  0x86   : > { %p8960_p10 = scmp.ne.s32.totalorder %s9748_s18, %s8959_s16  ;;  %p8968_p0 = scmp.lt.s32.totalorder %s8959_s16, %s8959_s16 }
  0x88   : > { %p8962_p11 = pnand %p8960_p10, %p9756_p8  ;;  %p8969_p2 = por %p8968_p0, %p8967_p13 }
  0x8a   : > { %p8963_p12 = pneg %p8962_p11 }
  0x8c   : > { %p8970_p5 = pnand %p8969_p2, %p8963_p12 }
  0x8e   : > { %8973 = shalt.err (!%p8970_p5)
}
  0x8f   : > { %8624 = dma.hbm_to_vmem [thread:$0]  (!%p9744_p6), %s11130_s29, 512, %s9748_s18, [#allocation9], %s11050_s23, %s11050_s23, %s11052_s7  }
  0x90   : > { %s8974_s9 = scalar_lea.hbm %s11128_s8, 32 }
  0x91   : > { %p8975_p7 = scmp.ne.s32.totalorder %s11128_s8, %s8974_s9  ;;  %p8981_p3 = scmp.lt.u32.totalorder %s8974_s9, %s11128_s8 }
  0x93   : > { %p8977_p4 = pnand %p8975_p7, %p9756_p8 }
  0x95   : > { %p8978_p1 = pneg %p8977_p4 }
  0x97   : > { %p8983_p9 = pnand %p8981_p3, %p8978_p1 }
  0x99   : > { %8986 = shalt.err (!%p8983_p9)
}
  0x9a   : > { %s8987_s10 = scalar_lea.vmem %s869_s26, 32  ;;  %p8995_p13 = scmp.lt.s32.totalorder %s869_s26, %s869_s26 }
  0x9b   : > { %p8988_p10 = scmp.ne.s32.totalorder %s869_s26, %s8987_s10  ;;  %p8996_p0 = scmp.lt.s32.totalorder %s8987_s10, %s8987_s10 }
  0x9d   : > { %p8990_p11 = pnand %p8988_p10, %p9756_p8  ;;  %p8997_p2 = por %p8996_p0, %p8995_p13 }
  0x9f   : > { %p8991_p12 = pneg %p8990_p11 }
  0xa1   : > { %p8998_p5 = pnand %p8997_p2, %p8991_p12 }
  0xa3   : > { %9001 = shalt.err (!%p8998_p5)
}
  0xa4   : > { %s11056_s18 = smov 16   ;;  %s11058_s16 = smov 1  }
  0xa5   : > { %8630 = dma.hbm_to_vmem [thread:$0]  (!%p9744_p6), %s11128_s8, 32, %s869_s26, [#allocation12], %s11056_s18, %s11056_s18, %s11058_s16  }
  0xa6   : > { %s9513_s9 = smov [#allocation14]   ;;  %s9514_s10 = smov [#allocation17]  }
  0xa7   : > { %s897_s23 = sshll.u32 %s9513_s9, 4  ;;  %s923_s7 = sshll.u32 %s9514_s10, 4  ;;  %s898_s23 = int_to_ptr.vmem [resolvable:$true] %s897_s23  ;;  %s924_s7 = int_to_ptr.vmem [resolvable:$true] %s923_s7 }
  0xa8   : > { %s9002_s25 = scalar_lea.hbm %s11120_s24, 32 }
  0xa9   : > { %p9003_p7 = scmp.ne.s32.totalorder %s11120_s24, %s9002_s25  ;;  %p9009_p3 = scmp.lt.u32.totalorder %s9002_s25, %s11120_s24 }
  0xab   : > { %p9005_p4 = pnand %p9003_p7, %p9756_p8 }
  0xad   : > { %p9006_p1 = pneg %p9005_p4 }
  0xaf   : > { %p9011_p9 = pnand %p9009_p3, %p9006_p1 }
  0xb1   : > { %9014 = shalt.err (!%p9011_p9)
}
  0xb2   : > { %s9015_s29 = scalar_lea.vmem %s898_s23, 32  ;;  %p9023_p13 = scmp.lt.s32.totalorder %s898_s23, %s898_s23 }
  0xb3   : > { %p9016_p10 = scmp.ne.s32.totalorder %s898_s23, %s9015_s29  ;;  %p9024_p0 = scmp.lt.s32.totalorder %s9015_s29, %s9015_s29 }
  0xb5   : > { %p9018_p11 = pnand %p9016_p10, %p9756_p8  ;;  %p9025_p2 = por %p9024_p0, %p9023_p13 }
  0xb7   : > { %p9019_p12 = pneg %p9018_p11 }
  0xb9   : > { %p9026_p5 = pnand %p9025_p2, %p9019_p12 }
  0xbb   : > { %9029 = shalt.err (!%p9026_p5)
}
  0xbc   : > { %8636 = dma.hbm_to_vmem [thread:$0]  (!%p9744_p6), %s11120_s24, 32, %s898_s23, [#allocation15], %s11056_s18, %s11056_s18, %s11058_s16  }
  0xbd   : > { %s9030_s25 = scalar_lea.hbm %s11129_s6, 512 }
  0xbe   : > { %p9031_p7 = scmp.ne.s32.totalorder %s11129_s6, %s9030_s25  ;;  %p9037_p3 = scmp.lt.u32.totalorder %s9030_s25, %s11129_s6 }
  0xc0   : > { %p9033_p4 = pnand %p9031_p7, %p9756_p8 }
  0xc2   : > { %p9034_p1 = pneg %p9033_p4 }
  0xc4   : > { %p9039_p9 = pnand %p9037_p3, %p9034_p1 }
  0xc6   : > { %9042 = shalt.err (!%p9039_p9)
}
  0xc7   : > { %s9043_s29 = scalar_lea.vmem %s924_s7, 512  ;;  %p9051_p13 = scmp.lt.s32.totalorder %s924_s7, %s924_s7 }
  0xc8   : > { %p9044_p10 = scmp.ne.s32.totalorder %s924_s7, %s9043_s29  ;;  %p9052_p0 = scmp.lt.s32.totalorder %s9043_s29, %s9043_s29 }
  0xca   : > { %p9046_p11 = pnand %p9044_p10, %p9756_p8  ;;  %p9053_p2 = por %p9052_p0, %p9051_p13 }
  0xcc   : > { %p9047_p12 = pneg %p9046_p11 }
  0xce   : > { %p9054_p5 = pnand %p9053_p2, %p9047_p12 }
  0xd0   : > { %9057 = shalt.err (!%p9054_p5)
}
  0xd1   : > { %s11135_s26 = smov 4   ;;  %s11136_s23 = smov 64  }
  0xd2   : > { %8642 = dma.hbm_to_vmem [thread:$0]  (!%p9744_p6), %s11129_s6, 512, %s924_s7, [#allocation18], %s11136_s23, %s11136_s23, %s11135_s26  }
  0xd3   : > { %s9515_s9 = smov [#allocation20]   ;;  %s9516_s25 = smov [#allocation23]  }
  0xd4   : > { %s949_s10 = sshll.u32 %s9515_s9, 4  ;;  %s975_s18 = sshll.u32 %s9516_s25, 4  ;;  %s950_s10 = int_to_ptr.vmem [resolvable:$true] %s949_s10  ;;  %s976_s18 = int_to_ptr.vmem [resolvable:$true] %s975_s18 }
  0xd5   : > { %s9058_s29 = scalar_lea.hbm %s11121_s20, 32 }
  0xd6   : > { %p9059_p7 = scmp.ne.s32.totalorder %s11121_s20, %s9058_s29  ;;  %p9065_p3 = scmp.lt.u32.totalorder %s9058_s29, %s11121_s20 }
  0xd8   : > { %p9061_p4 = pnand %p9059_p7, %p9756_p8 }
  0xda   : > { %p9062_p1 = pneg %p9061_p4 }
  0xdc   : > { %p9067_p9 = pnand %p9065_p3, %p9062_p1 }
  0xde   : > { %9070 = shalt.err (!%p9067_p9)
}
  0xdf   : > { %s9071_s16 = scalar_lea.vmem %s950_s10, 32  ;;  %p9079_p13 = scmp.lt.s32.totalorder %s950_s10, %s950_s10 }
  0xe0   : > { %p9072_p10 = scmp.ne.s32.totalorder %s950_s10, %s9071_s16  ;;  %p9080_p0 = scmp.lt.s32.totalorder %s9071_s16, %s9071_s16 }
  0xe2   : > { %p9074_p11 = pnand %p9072_p10, %p9756_p8  ;;  %p9081_p2 = por %p9080_p0, %p9079_p13 }
  0xe4   : > { %p9075_p12 = pneg %p9074_p11 }
  0xe6   : > { %p9082_p5 = pnand %p9081_p2, %p9075_p12 }
  0xe8   : > { %9085 = shalt.err (!%p9082_p5)
}
  0xe9   : > { %s11137_s7 = smov 1   ;;  %s11138_s9 = smov 16  }
  0xea   : > { %8648 = dma.hbm_to_vmem [thread:$0]  (!%p9744_p6), %s11121_s20, 32, %s950_s10, [#allocation21], %s11138_s9, %s11138_s9, %s11137_s7  }
  0xeb   : > { %s9086_s25 = scalar_lea.hbm %s11126_s4, 32 }
  0xec   : > { %p9087_p7 = scmp.ne.s32.totalorder %s11126_s4, %s9086_s25  ;;  %p9093_p3 = scmp.lt.u32.totalorder %s9086_s25, %s11126_s4 }
  0xee   : > { %p9089_p4 = pnand %p9087_p7, %p9756_p8 }
  0xf0   : > { %p9090_p1 = pneg %p9089_p4 }
  0xf2   : > { %p9095_p9 = pnand %p9093_p3, %p9090_p1 }
  0xf4   : > { %9098 = shalt.err (!%p9095_p9)
}
  0xf5   : > { %s9099_s16 = scalar_lea.vmem %s976_s18, 32  ;;  %p9107_p13 = scmp.lt.s32.totalorder %s976_s18, %s976_s18 }
  0xf6   : > { %p9100_p10 = scmp.ne.s32.totalorder %s976_s18, %s9099_s16  ;;  %p9108_p0 = scmp.lt.s32.totalorder %s9099_s16, %s9099_s16 }
  0xf8   : > { %p9102_p11 = pnand %p9100_p10, %p9756_p8  ;;  %p9109_p2 = por %p9108_p0, %p9107_p13 }
  0xfa   : > { %p9103_p12 = pneg %p9102_p11 }
  0xfc   : > { %p9110_p5 = pnand %p9109_p2, %p9103_p12 }
  0xfe   : > { %9113 = shalt.err (!%p9110_p5)
}
  0xff   : > { %8654 = dma.hbm_to_vmem [thread:$0]  (!%p9744_p6), %s11126_s4, 32, %s976_s18, [#allocation24], %s11138_s9, %s11138_s9, %s11137_s7  }
 0x100   : > { %s9517_s10 = smov [#allocation10]   ;;  %s9518_s25 = smov [#allocation13]  }
 0x101   : > { %s855_s29 = sshll.u32 %s9517_s10, 4  ;;  %s881_s6 = sshll.u32 %s9518_s25, 4  ;;  %s856_s29 = int_to_ptr.vmem [resolvable:$true] %s855_s29  ;;  %s882_s6 = int_to_ptr.vmem [resolvable:$true] %s881_s6 }
 0x102   : > { %s9114_s16 = scalar_lea.hbm %s11127_s3, 32 }
 0x103   : > { %p9115_p7 = scmp.ne.s32.totalorder %s11127_s3, %s9114_s16  ;;  %p9121_p3 = scmp.lt.u32.totalorder %s9114_s16, %s11127_s3 }
 0x105   : > { %p9117_p4 = pnand %p9115_p7, %p9756_p8 }
 0x107   : > { %p9118_p1 = pneg %p9117_p4 }
 0x109   : > { %p9123_p9 = pnand %p9121_p3, %p9118_p1 }
 0x10b   : > { %9126 = shalt.err (!%p9123_p9)
}
 0x10c   : > { %s9127_s8 = scalar_lea.vmem %s856_s29, 32  ;;  %p9135_p13 = scmp.lt.s32.totalorder %s856_s29, %s856_s29 }
 0x10d   : > { %p9128_p10 = scmp.ne.s32.totalorder %s856_s29, %s9127_s8  ;;  %p9136_p0 = scmp.lt.s32.totalorder %s9127_s8, %s9127_s8 }
 0x10f   : > { %p9130_p11 = pnand %p9128_p10, %p9756_p8  ;;  %p9137_p2 = por %p9136_p0, %p9135_p13 }
 0x111   : > { %p9131_p12 = pneg %p9130_p11 }
 0x113   : > { %p9138_p5 = pnand %p9137_p2, %p9131_p12 }
 0x115   : > { %9141 = shalt.err (!%p9138_p5)
}
 0x116   : > { %8627 = dma.hbm_to_vmem [thread:$0]  (!%p9744_p6), %s11127_s3, 32, %s856_s29, [#allocation9], %s11138_s9, %s11138_s9, %s11137_s7  }
 0x117   : > { %s9142_s18 = scalar_lea.hbm %s11124_s14, 32 }
 0x118   : > { %p9143_p7 = scmp.ne.s32.totalorder %s11124_s14, %s9142_s18  ;;  %p9149_p3 = scmp.lt.u32.totalorder %s9142_s18, %s11124_s14 }
 0x11a   : > { %p9145_p4 = pnand %p9143_p7, %p9756_p8 }
 0x11c   : > { %p9146_p1 = pneg %p9145_p4 }
 0x11e   : > { %p9151_p9 = pnand %p9149_p3, %p9146_p1 }
 0x120   : > { %9154 = shalt.err (!%p9151_p9)
}
 0x121   : > { %s9155_s8 = scalar_lea.vmem %s882_s6, 32  ;;  %p9163_p13 = scmp.lt.s32.totalorder %s882_s6, %s882_s6 }
 0x122   : > { %p9156_p10 = scmp.ne.s32.totalorder %s882_s6, %s9155_s8  ;;  %p9164_p0 = scmp.lt.s32.totalorder %s9155_s8, %s9155_s8 }
 0x124   : > { %p9158_p11 = pnand %p9156_p10, %p9756_p8  ;;  %p9165_p2 = por %p9164_p0, %p9163_p13 }
 0x126   : > { %p9159_p12 = pneg %p9158_p11 }
 0x128   : > { %p9166_p5 = pnand %p9165_p2, %p9159_p12 }
 0x12a   : > { %9169 = shalt.err (!%p9166_p5)
}
 0x12b   : > { %8633 = dma.hbm_to_vmem [thread:$0]  (!%p9744_p6), %s11124_s14, 32, %s882_s6, [#allocation12], %s11138_s9, %s11138_s9, %s11137_s7  }
 0x12c   : > { %s9519_s10 = smov [#allocation16]   ;;  %s9520_s25 = smov [#allocation19]  }
 0x12d   : > { %s910_s29 = sshll.u32 %s9519_s10, 4  ;;  %s936_s16 = sshll.u32 %s9520_s25, 4  ;;  %s911_s29 = int_to_ptr.vmem [resolvable:$true] %s910_s29  ;;  %s937_s16 = int_to_ptr.vmem [resolvable:$true] %s936_s16 }
 0x12e   : > { %s9170_s18 = scalar_lea.hbm %s9605_s30, 512 }
 0x12f   : > { %p9171_p7 = scmp.ne.s32.totalorder %s9605_s30, %s9170_s18  ;;  %p9177_p3 = scmp.lt.u32.totalorder %s9170_s18, %s9605_s30 }
 0x131   : > { %p9173_p4 = pnand %p9171_p7, %p9756_p8 }
 0x133   : > { %p9174_p1 = pneg %p9173_p4 }
 0x135   : > { %p9179_p9 = pnand %p9177_p3, %p9174_p1 }
 0x137   : > { %9182 = shalt.err (!%p9179_p9)
}
 0x138   : > { %s9183_s8 = scalar_lea.vmem %s911_s29, 512  ;;  %p9191_p13 = scmp.lt.s32.totalorder %s911_s29, %s911_s29 }
 0x139   : > { %p9184_p10 = scmp.ne.s32.totalorder %s911_s29, %s9183_s8  ;;  %p9192_p0 = scmp.lt.s32.totalorder %s9183_s8, %s9183_s8 }
 0x13b   : > { %p9186_p11 = pnand %p9184_p10, %p9756_p8  ;;  %p9193_p2 = por %p9192_p0, %p9191_p13 }
 0x13d   : > { %p9187_p12 = pneg %p9186_p11 }
 0x13f   : > { %p9194_p5 = pnand %p9193_p2, %p9187_p12 }
 0x141   : > { %9197 = shalt.err (!%p9194_p5)
}
 0x142   : > { %8639 = dma.hbm_to_vmem [thread:$0]  (!%p9744_p6), %s9605_s30, 512, %s911_s29, [#allocation15], %s11136_s23, %s11136_s23, %s11135_s26  }
 0x143   : > { %s9198_s6 = scalar_lea.hbm %s11125_s12, 512 }
 0x144   : > { %p9199_p7 = scmp.ne.s32.totalorder %s11125_s12, %s9198_s6  ;;  %p9205_p3 = scmp.lt.u32.totalorder %s9198_s6, %s11125_s12 }
 0x146   : > { %p9201_p4 = pnand %p9199_p7, %p9756_p8 }
 0x148   : > { %p9202_p1 = pneg %p9201_p4 }
 0x14a   : > { %p9207_p9 = pnand %p9205_p3, %p9202_p1 }
 0x14c   : > { %9210 = shalt.err (!%p9207_p9)
}
 0x14d   : > { %s9211_s10 = scalar_lea.vmem %s937_s16, 512  ;;  %p9219_p13 = scmp.lt.s32.totalorder %s937_s16, %s937_s16 }
 0x14e   : > { %p9212_p10 = scmp.ne.s32.totalorder %s937_s16, %s9211_s10  ;;  %p9220_p0 = scmp.lt.s32.totalorder %s9211_s10, %s9211_s10 }
 0x150   : > { %p9214_p11 = pnand %p9212_p10, %p9756_p8  ;;  %p9221_p2 = por %p9220_p0, %p9219_p13 }
 0x152   : > { %p9215_p12 = pneg %p9214_p11 }
 0x154   : > { %p9222_p5 = pnand %p9221_p2, %p9215_p12 }
 0x156   : > { %9225 = shalt.err (!%p9222_p5)
}
 0x157   : > { %8645 = dma.hbm_to_vmem [thread:$0]  (!%p9744_p6), %s11125_s12, 512, %s937_s16, [#allocation18], %s11136_s23, %s11136_s23, %s11135_s26  }
 0x158   : > { %s9521_s29 = smov [#allocation22]   ;;  %s9522_s18 = smov [#allocation25]  }
 0x159   : > { %s962_s25 = sshll.u32 %s9521_s29, 4  ;;  %s988_s8 = sshll.u32 %s9522_s18, 4  ;;  %s963_s25 = int_to_ptr.vmem [resolvable:$true] %s962_s25  ;;  %s989_s8 = int_to_ptr.vmem [resolvable:$true] %s988_s8 }
 0x15a   : > { %s9226_s6 = scalar_lea.hbm %s11119_s27, 32 }
 0x15b   : > { %p9227_p7 = scmp.ne.s32.totalorder %s11119_s27, %s9226_s6  ;;  %p9233_p3 = scmp.lt.u32.totalorder %s9226_s6, %s11119_s27 }
 0x15d   : > { %p9229_p4 = pnand %p9227_p7, %p9756_p8 }
 0x15f   : > { %p9230_p1 = pneg %p9229_p4 }
 0x161   : > { %p9235_p9 = pnand %p9233_p3, %p9230_p1 }
 0x163   : > { %9238 = shalt.err (!%p9235_p9)
}
 0x164   : > { %s9239_s10 = scalar_lea.vmem %s963_s25, 32  ;;  %p9247_p13 = scmp.lt.s32.totalorder %s963_s25, %s963_s25 }
 0x165   : > { %p9240_p10 = scmp.ne.s32.totalorder %s963_s25, %s9239_s10  ;;  %p9248_p0 = scmp.lt.s32.totalorder %s9239_s10, %s9239_s10 }
 0x167   : > { %p9242_p11 = pnand %p9240_p10, %p9756_p8  ;;  %p9249_p2 = por %p9248_p0, %p9247_p13 }
 0x169   : > { %p9243_p12 = pneg %p9242_p11 }
 0x16b   : > { %p9250_p5 = pnand %p9249_p2, %p9243_p12 }
 0x16d   : > { %9253 = shalt.err (!%p9250_p5)
}
 0x16e   : > { %8651 = dma.hbm_to_vmem [thread:$0]  (!%p9744_p6), %s11119_s27, 32, %s963_s25, [#allocation21], %s11138_s9, %s11138_s9, %s11137_s7  }
 0x16f   : > { %s9254_s16 = scalar_lea.hbm %s11123_s17, 512 }
 0x170   : > { %p9255_p7 = scmp.ne.s32.totalorder %s11123_s17, %s9254_s16  ;;  %p9261_p3 = scmp.lt.u32.totalorder %s9254_s16, %s11123_s17 }
 0x172   : > { %p9257_p4 = pnand %p9255_p7, %p9756_p8 }
 0x174   : > { %p9258_p1 = pneg %p9257_p4 }
 0x176   : > { %p9263_p9 = pnand %p9261_p3, %p9258_p1 }
 0x178   : > { %9266 = shalt.err (!%p9263_p9)
}
 0x179   : > { %s9267_s29 = scalar_lea.vmem %s989_s8, 512  ;;  %p9275_p13 = scmp.lt.s32.totalorder %s989_s8, %s989_s8 }
 0x17a   : > { %p9268_p10 = scmp.ne.s32.totalorder %s989_s8, %s9267_s29  ;;  %p9276_p0 = scmp.lt.s32.totalorder %s9267_s29, %s9267_s29 }
 0x17c   : > { %p9270_p11 = pnand %p9268_p10, %p9756_p8  ;;  %p9277_p2 = por %p9276_p0, %p9275_p13 }
 0x17e   : > { %p9271_p12 = pneg %p9270_p11 }
 0x180   : > { %p9278_p5 = pnand %p9277_p2, %p9271_p12 }
 0x182   : > { %9281 = shalt.err (!%p9278_p5)
}
 0x183   : > { %8657 = dma.hbm_to_vmem [thread:$0]  (!%p9744_p6), %s11123_s17, 512, %s989_s8, [#allocation24], %s11136_s23, %s11136_s23, %s11135_s26  }
 0x184   : > { %s9523_s7 = smov [#allocation26]   ;;  %s9282_s25 = scalar_lea.hbm %s11122_s19, 512 }
 0x185   : > { %s1004_s9 = sshll.u32 %s9523_s7, 4  ;;  %p9283_p7 = scmp.ne.s32.totalorder %s11122_s19, %s9282_s25  ;;  %s1005_s9 = int_to_ptr.vmem [resolvable:$true] %s1004_s9 }
 0x186   : > { %p9289_p3 = scmp.lt.u32.totalorder %s9282_s25, %s11122_s19 }
 0x187   : > { %p9285_p4 = pnand %p9283_p7, %p9756_p8 }
 0x189   : > { %p9286_p1 = pneg %p9285_p4 }
 0x18b   : > { %p9291_p9 = pnand %p9289_p3, %p9286_p1 }
 0x18d   : > { %9294 = shalt.err (!%p9291_p9)
}
 0x18e   : > { %s9295_s18 = scalar_lea.vmem %s1005_s9, 512  ;;  %p9303_p13 = scmp.lt.s32.totalorder %s1005_s9, %s1005_s9 }
 0x18f   : > { %p9296_p10 = scmp.ne.s32.totalorder %s1005_s9, %s9295_s18  ;;  %p9304_p0 = scmp.lt.s32.totalorder %s9295_s18, %s9295_s18 }
 0x191   : > { %p9298_p11 = pnand %p9296_p10, %p9756_p8  ;;  %p9305_p2 = por %p9304_p0, %p9303_p13 }
 0x193   : > { %p9299_p12 = pneg %p9298_p11 }
 0x195   : > { %p9306_p5 = pnand %p9305_p2, %p9299_p12 }
 0x197   : > { %9309 = shalt.err (!%p9306_p5)
}
 0x198   : > { %8660 = dma.hbm_to_vmem [thread:$0]  (!%p9744_p6), %s11122_s19, 512, %s1005_s9, [#allocation27], %s11136_s23, %s11136_s23, %s11135_s26  }
 0x199   : > { %s7824_s5 = sadd.s32 4294967294, %s9472_s0   ;;  %s9953_s22 = sadd.s32 1, %s9472_s0  }
 0x19a   : > { %s95_s8 = ssub.s32 %s9472_s0, %s9953_s22  ;;  %s98_s6 = sadd.s32 1, %s9468_s2 }
 0x19b   : > { %s11139_s10 = sld [smem:[#allocation40_spill]]  ;;  %p96_p8 = scmp.eq.s32.totalorder %s95_s8, 0 }
 0x19c   : > { %p105_p7 = scmp.ne.s32.totalorder %s9468_s2, %s9464_s1  ;;  %p106_p4 = scmp.eq.s32.totalorder %s9472_s0, 0 }
 0x19d   : > { %p111_p1 = scmp.ne.s32.totalorder %s9464_s1, %s9460_s28  ;;  %s11140_s29 = sld [smem:[#allocation42_spill]] }
 0x19e   : > { %s9964_s16 = scalar_select %p96_p8, %s9468_s2, %s98_s6  }
 0x19f   : > { %p9966_p3 = por %p106_p4, %p105_p7  ;;  %p11142_p6 = scmp.eq.s32.totalorder %s9728_s11, 0 }
 0x1a0   : > { %p801_p10 = scmp.eq.s32.totalorder %s9728_s11, 1  ;;  %p807_p11 = scmp.eq.s32.totalorder %s7824_s5, 1 }
 0x1a1   : > { %p9972_p9 = por %p11142_p6, %p111_p1  ;;  %p8686_p12 = scmp.lt.s32.totalorder %s9472_s0, 2 }
 0x1a2   : > { %s1051_s23 = sand.u32 1, %s9468_s2   ;;  %p9979_p13 = por %p801_p10, %p105_p7 }
 0x1a3   : > { %s11143_s26 = scalar_select %p9972_p9, 1, 0 }
 0x1a4   : > { %s11144_s9 = scalar_select %p9979_p13, 1, 0 }
 0x1a5   : > { %p9983_p0 = por %p807_p11, %p111_p1  ;;  %s9987_s18 = sshll.u32 %s1051_s23, 3 }
 0x1a6   : > { %s7842_s8 = sshll.u32 %s9472_s0, 7  ;;  %s1055_s5 = scalar_lea.vmem [#allocation2], %s9987_s18 }
 0x1a7   : > { %s11145_s25 = scalar_select %p9983_p0, 1, 0 }
 0x1a8   : > { %s9991_s6 = scalar_lea.hbm %s11139_s10, %s7842_s8  ;;  %s1062_s3 = sshll.u32 %s1055_s5, 4  ;;  %s9994_s3 = int_to_ptr.vmem [resolvable:$true] %s1062_s3 }
 0x1a9   : > { %p9998_p2 = pnand %p8686_p12, %p9966_p3  ;;  %s10003_s12 = scalar_lea.hbm %s11140_s29, %s7842_s8 }
 0x1aa   : > { %s1052_s17 = scalar_lea.sflag [#allocation3], %s1051_s23  ;;  %s9310_s19 = scalar_lea.hbm %s9991_s6, 128 }
 0x1ab   : > { %p9311_p5 = scmp.ne.s32.totalorder %s9991_s6, %s9310_s19  ;;  %p9312_p8 = pneg %p9998_p2 }
 0x1ac   : > { %s9315_s5 = scalar_lea.hbm %s11139_s10, 256  ;;  %p9316_p1 = scmp.lt.u32.totalorder %s9991_s6, %s11139_s10 }
 0x1ad   : > { %p9313_p7 = pnand %p9312_p8, %p9311_p5  ;;  %p9317_p3 = scmp.lt.u32.totalorder %s9315_s5, %s9310_s19 }
 0x1ae   : > { %p9319_p10 = scmp.lt.u32.totalorder %s9310_s19, %s9991_s6 }
 0x1af   : > { %p9314_p4 = pneg %p9313_p7  ;;  %p9318_p6 = por %p9317_p3, %p9316_p1 }
 0x1b1   : > { %p9320_p11 = por %p9319_p10, %p9318_p6 }
 0x1b3   : > { %p9321_p12 = pnand %p9320_p11, %p9314_p4 }
 0x1b5   : > { %9324 = shalt.err (!%p9321_p12)
}
 0x1b6   : > { %s9325_s7 = scalar_lea.vmem %s9994_s3, 128  ;;  %s9524_s23 = smov [#allocation2]  }
 0x1b7   : > { %p9326_p0 = scmp.ne.s32.totalorder %s9994_s3, %s9325_s7  ;;  %s9330_s8 = sshll.u32 %s9524_s23, 4  ;;  %s9331_s8 = int_to_ptr.vmem [resolvable:$false] %s9330_s8 }
 0x1b8   : > { %s9332_s14 = scalar_lea.vmem %s9331_s8, 256  ;;  %p9333_p5 = scmp.lt.s32.totalorder %s9994_s3, %s9331_s8 }
 0x1b9   : > { %p9328_p13 = pnand %p9326_p0, %p9312_p8  ;;  %p9334_p7 = scmp.lt.s32.totalorder %s9332_s14, %s9325_s7 }
 0x1bb   : > { %p9329_p9 = pneg %p9328_p13  ;;  %p9335_p1 = por %p9334_p7, %p9333_p5 }
 0x1bd   : > { %p9336_p3 = pnand %p9335_p1, %p9329_p9 }
 0x1bf   : > { %9339 = shalt.err (!%p9336_p3)
}
 0x1c0   : > { %8664 = dma.hbm_to_vmem [thread:$0]  (!%p9998_p2), %s9991_s6, 128, %s9994_s3, %s1052_s17  }
 0x1c1   : > { %s1081_s19 = scalar_lea.vmem [#allocation5], %s9987_s18  ;;  %s11147_s14 = sand.u32 1, %s9472_s0  }
 0x1c2   : > { %s1088_s5 = sshll.u32 %s1081_s19, 4  ;;  %s1078_s7 = scalar_lea.sflag [#allocation6], %s11147_s14  ;;  %s1089_s5 = int_to_ptr.vmem [resolvable:$true] %s1088_s5 }
 0x1c3   : > { %s9340_s23 = scalar_lea.hbm %s10003_s12, 128  ;;  %s9345_s8 = scalar_lea.hbm %s11140_s29, 256 }
 0x1c4   : > { %p9341_p9 = scmp.ne.s32.totalorder %s10003_s12, %s9340_s23  ;;  %p9346_p4 = scmp.lt.u32.totalorder %s10003_s12, %s11140_s29 }
 0x1c5   : > { %p9347_p6 = scmp.lt.u32.totalorder %s9345_s8, %s9340_s23  ;;  %p9349_p11 = scmp.lt.u32.totalorder %s9340_s23, %s10003_s12 }
 0x1c6   : > { %p9343_p13 = pnand %p9341_p9, %p9312_p8 }
 0x1c7   : > { %p9348_p10 = por %p9347_p6, %p9346_p4 }
 0x1c8   : > { %p9344_p0 = pneg %p9343_p13 }
 0x1c9   : > { %p9350_p12 = por %p9349_p11, %p9348_p10 }
 0x1cb   : > { %p9351_p5 = pnand %p9350_p12, %p9344_p0 }
 0x1cd   : > { %9354 = shalt.err (!%p9351_p5)
}
 0x1ce   : > { %s9355_s17 = scalar_lea.vmem %s1089_s5, 128  ;;  %s9525_s3 = smov [#allocation5]  }
 0x1cf   : > { %p9356_p7 = scmp.ne.s32.totalorder %s1089_s5, %s9355_s17  ;;  %s9360_s18 = sshll.u32 %s9525_s3, 4  ;;  %s9361_s18 = int_to_ptr.vmem [resolvable:$false] %s9360_s18 }
 0x1d0   : > { %s9362_s6 = scalar_lea.vmem %s9361_s18, 256  ;;  %p9363_p9 = scmp.lt.s32.totalorder %s1089_s5, %s9361_s18 }
 0x1d1   : > { %p9358_p1 = pnand %p9356_p7, %p9312_p8  ;;  %p9364_p13 = scmp.lt.s32.totalorder %s9362_s6, %s9355_s17 }
 0x1d3   : > { %p9359_p3 = pneg %p9358_p1  ;;  %p9365_p4 = por %p9364_p13, %p9363_p9 }
 0x1d5   : > { %p9366_p6 = pnand %p9365_p4, %p9359_p3 }
 0x1d7   : > { %9369 = shalt.err (!%p9366_p6)
}
 0x1d8   : > { %8667 = dma.hbm_to_vmem [thread:$0]  (!%p9998_p2), %s10003_s12, 128, %s1089_s5, %s1078_s7  }
 0x1d9   : > { %p11148_p0 = scmp.ne.s32.totalorder %s11132_s15, 0 }
 0x1da   : > { %s10048_s19 = sand.u32 (!%p11148_p0), 1, %s9464_s1   ;;  %p11149_p8 = scmp.ne.s32.totalorder (!%p11148_p0), %s11143_s26, 0 }
 0x1db   : > { %1105 = sbr.rel (%p11148_p0) target bundleno = 9658 (0x25ba), region = 148  ;;  %s10051_s14 = sshll.u32 (!%p11148_p0), %s10048_s19, 3 }
 0x1dc   : > { %s1108_s23 = scalar_lea.sflag (!%p11148_p0), [#allocation3], %s10048_s19  ;;  %s1111_s8 = scalar_lea.vmem (!%p11148_p0), [#allocation2], %s10051_s14 }
 0x1e2   : > { %9415 = dma.done.wait (%p11149_p8), %s1108_s23, 128  }
 0x1e3   : > { %9417 = vsyncadd (%p11149_p8), %s1108_s23, 4294967168  ;;  %s1116_s12 = sand.u32 1, %s9728_s11   ;;  %s10061_s15 = scalar_lea.vmem [#allocation5], %s10051_s14 }
 0x1e4   : > { %s1117_s4 = scalar_lea.sflag [#allocation6], %s1116_s12 }
 0x1e5   : > { %9419 = dma.done.wait (%p11149_p8), %s1117_s4, 128  }
 0x1e6   : > { %9421 = vsyncadd (%p11149_p8), %s1117_s4, 4294967168  ;;  %p11150_p2 = scmp.eq.s32.totalorder %s9728_s11, 0 }
 0x1e8   : > { %9423 = dma.done.wait (%p11150_p2), [#allocation6], 512   ;;  %p11151_p10 = pmov %p11150_p2 }
 0x1e9   : > { %p11152_p11 = pmov %p11150_p2 }
 0x1ea   : > { %9425 = vsyncadd (%p11151_p10), [#allocation6], 4294966784 }
 0x1eb   : > { %9427 = dma.done.wait (%p11152_p11), [#allocation9], 544   ;;  %p11153_p12 = pmov %p11150_p2 }
 0x1ec   : > { %p11154_p5 = pmov %p11150_p2 }
 0x1ed   : > { %9429 = vsyncadd (%p11153_p12), [#allocation9], 4294966752 }
 0x1ee   : > { %9431 = dma.done.wait (%p11154_p5), [#allocation12], 64   ;;  %p11155_p7 = pmov %p11150_p2 }
 0x1ef   : > { %p11156_p1 = pmov %p11150_p2 }
 0x1f0   : > { %9433 = vsyncadd (%p11155_p7), [#allocation12], 4294967232 }
 0x1f1   : > { %9435 = dma.done.wait (%p11156_p1), [#allocation15], 544   ;;  %p11157_p3 = pmov %p11156_p1 }
 0x1f2   : > { %p11158_p9 = pmov %p11156_p1 }
 0x1f3   : > { %9437 = vsyncadd (%p11157_p3), [#allocation15], 4294966752 }
 0x1f4   : > { %9439 = dma.done.wait (%p11158_p9), [#allocation18], 1024   ;;  %p11159_p13 = pmov %p11156_p1 }
 0x1f5   : > { %p11160_p4 = pmov %p11156_p1 }
 0x1f6   : > { %9441 = vsyncadd (%p11159_p13), [#allocation18], 4294966272 }
 0x1f7   : > { %9443 = dma.done.wait (%p11160_p4), [#allocation21], 64   ;;  %p11161_p6 = pmov %p11156_p1 }
 0x1f8   : > { %p11162_p0 = pmov %p11156_p1 }
 0x1f9   : > { %9445 = vsyncadd (%p11161_p6), [#allocation21], 4294967232 }
 0x1fa   : > { %9447 = dma.done.wait (%p11162_p0), [#allocation24], 544   ;;  %p11163_p8 = pmov %p11162_p0 }
 0x1fb   : > { %p11164_p2 = pmov %p11162_p0 }
 0x1fc   : > { %9449 = vsyncadd (%p11163_p8), [#allocation24], 4294966752 }
 0x1fd   : > { %9451 = dma.done.wait (%p11164_p2), [#allocation27], 512   ;;  %p11165_p10 = pmov %p11162_p0 }
 0x1fe   : > { %s11166_s26 = sld [smem:[#allocation44_spill]]  ;;  %v9526_v0 = vmov 0.0   ;;  %vm9527_vm0 = vmmov 0   ;;  %v10109_v3 = vld [vmem:[%s1111_s8] sm:$0xff]  ;;  %v1284_v4 = vld [vmem:[%s10061_s15] sm:$0xff]  ;;  %vm1318_vm1 = vcmask 261120   ;;  %v1507_v26 = vlaneseq }
 0x1ff   : > { %9453 = vsyncadd (%p11165_p10), [#allocation27], 4294966784  ;;  %8196 = vmatprep.subr.bf16.mxu1 %v9526_v0  ;;  %8200 = vmatprep.mubr.msk.bf16.mxu1 %vm9527_vm0, %v9526_v0  ;;  %v1293_v5 = vadd.f32 %v1284_v4, %v10109_v3  ;;  %v8796_v6 = vld [vmem:[#allocation7] sm:$0xff]   ;;  %v8797_v8 = vld [vmem:[#allocation7 + $0x8] sm:$0xff]   ;;  %s11076_s5 = smov 104   ;;  %s11078_s7 = smov 120   ;;  %v1425_v23 = vpack.c.bf16 %v10109_v3, %v10109_v3 }
 0x200   : > { %8212 = vmatprep.subr.bf16.mxu0 %v9526_v0  ;;  %8216 = vmatprep.mubr.msk.bf16.mxu0 %vm9527_vm0, %v9526_v0  ;;  %v7871_v13 = vld [vmem:[#allocation11] ss:$0 sm:$0xff]  ;;  %v7867_v18 = vld [vmem:[#allocation10] ss:$0 sm:$0xff]  ;;  %v8799_v22 = vld [vmem:[#allocation8 + $0x8] sm:$0xff]   ;;  %s11080_s17 = smov 112  }
 0x201   : > { %v1294_v7 = vpack.c.bf16 %v1293_v5, %v1293_v5  ;;  %v8798_v17 = vld [vmem:[#allocation8] sm:$0xff]   ;;  %v9531_v24 = vmov 1983009808   ;;  %v9532_v27 = vmov 1934713408   ;;  %v1508_v30 = vshrl.u32 %v1507_v26, 7 }
 0x202   : > { %8213 = vmatpush3.bf16.msra.mxu0 %v8798_v17  ;;  %v1505_v25 = vunpack.c.l.s4 %v9531_v24  ;;  %v1537_v28 = vunpack.c.l.s4 %v9532_v27  ;;  %vm1942_vm2 = vcmask 64512   ;;  %vm2178_vm3 = vcmask 1043456   ;;  %s11167_s3 = sld [smem:[#allocation50_spill]]  ;;  %s11074_s18 = smov 16  }
 0x203   : > { %8214 = vmatprep.subr.bf16.mxu0 %v9526_v0  ;;  %s11072_s6 = smov 8   ;;  %s11070_s23 = smov 24   ;;  %vm2509_vm4 = vcmask 130048   ;;  %vm2511_vm5 = vcmask 195584   ;;  %vm4315_vm6 = vcmask 523264  }
 0x204   : > { %v8794_v1 = vld [vmem:[%s11166_s26] sm:$0xff]   ;;  %v8795_v2 = vld [vmem:[%s11166_s26 + $0x8] sm:$0xff]   ;;  %v1506_v29 = vunpack.c.0.s8 %v1505_v25  ;;  %v1538_v33 = vunpack.c.0.s8 %v1537_v28  ;;  %s11168_s8 = sld [smem:[#allocation41_spill]]  ;;  %s11169_s12 = sld [smem:[#allocation43_spill]] }
 0x205   : > { %8197 = vmatpush3.bf16.msra.mxu1 %v8794_v1  ;;  %p1272_p11 = scmp.lt.s32.totalorder %s9728_s11, 1  ;;  %s11179_s10 = sld [smem:[#allocation60_spill]] }
 0x206   : > { %8198 = vmatprep.subr.bf16.mxu1 %v9526_v0  ;;  %8215 = vmatpush3.bf16.msra.mxu0 %v8799_v22  ;;  %v10136_v34 = vsub.s32 %v1506_v29, %v1508_v30  ;;  %v10138_v41 = vsub.s32 %v1538_v33, %v1508_v30  ;;  %s11180_s20 = sld [smem:[#allocation62_spill]]  ;;  %s11181_s24 = sld [smem:[#allocation67_spill]] }
 0x207   : > { %8226 = vmatprep.subr.bf16.mxu0 %v9526_v0  ;;  %s1273_s4 = scalar_select %p1272_p11, %s9728_s11, 1 }
 0x208   : > { %s11184_s27 = smov 104   ;;  %p11187_p5 = scmp.ne.s32.totalorder %s11144_s9, 0 }
 0x209   : > { %8199 = vmatpush3.bf16.msra.mxu1 %v8795_v2  ;;  %8217 = vmatmul.mubr.msk.bf16.vlgmr.msra.gmra.mrb[0].mxu0 %vm1318_vm1, %v1425_v23 }
 0x20a   : > { %8204 = vmatprep.subr.bf16.mxu1 %v9526_v0  ;;  %8228 = vmatprep.mubr.msk.bf16.mxu0 %vm9527_vm0, %v9526_v0 }
 0x20c   : > { %8201 = vmatmul.mubr.msk.bf16.vlgmr.msra.gmra.mrb[0].mxu1 %vm1318_vm1, %v1294_v7 }
 0x20d   : > { %8205 = vmatpush3.bf16.msra.mxu1 %v8796_v6  ;;  %8208 = vmatprep.mubr.msk.bf16.mxu1 %vm9527_vm0, %v9526_v0 }
 0x20e   : > { %8206 = vmatprep.subr.bf16.mxu1 %v9526_v0 }
 0x211   : > { %8207 = vmatpush3.bf16.msra.mxu1 %v8797_v8 }
 0x212   : > { %8220 = vmatprep.subr.bf16.mxu1 %v9526_v0 }
 0x214   : > { %8209 = vmatmul.mubr.msk.bf16.vlgmr.msra.gmra.mrb[4].mxu1 %vm1318_vm1, %v1294_v7 }
 0x215   : > { %8222 = vmatprep.mubr.msk.bf16.mxu1 %vm9527_vm0, %v9526_v0 }
 0x2df   : > { %v1356_v9 = vpop.f32.mrb[0].mxu1 }
 0x2e0   : > { %v8202_v10 = vpop.f32.mrb[1].mxu1  ;;  %v1357_v21 = vadd.f32 %v7867_v18, %v1356_v9 }
 0x2e1   : > { %v1359_v11 = vpop.f32.mrb[2].mxu1 }
 0x2e2   : > { %v8203_v12 = vpop.f32.mrb[3].mxu1 }
 0x2e7   : > { %v1419_v14 = vpop.f32.mrb[4].mxu1 }
 0x2e8   : > { %v1420_v15 = vadd.f32 %v7871_v13, %v1419_v14  ;;  %v8210_v16 = vpop.f32.mrb[5].mxu1 }
 0x2e9   : > { %v1422_v19 = vpop.f32.mrb[6].mxu1 }
 0x2ea   : > { %1649 = vrot.lane.b32.xlu1 %v1420_v15, %s11076_s5  ;;  %1643 = vrot.lane.b32.xlu0 %v1420_v15, %s11078_s7  ;;  %v8211_v20 = vpop.f32.mrb[7].mxu1 }
 0x2ee   : > { %1493 = vrot.lane.b32.xlu1 %v1357_v21, %s11078_s7  ;;  %1646 = vrot.lane.b32.xlu0 %v1420_v15, %s11080_s17 }
 0x2f2   : > { %1499 = vrot.lane.b32.xlu1 %v1357_v21, %s11076_s5  ;;  %1496 = vrot.lane.b32.xlu0 %v1357_v21, %s11080_s17 }
 0x35c   : > { %v1650_v31 = vpop.permute.xlu1 %1649  ;;  %v1644_v32 = vpop.permute.xlu0 %1643 }
 0x35d   : > { %v1668_v35 = vcombine.low %v1644_v32, %v1650_v31  ;;  %v1669_v36 = vcombine.high %v1644_v32, %v1650_v31 }
 0x35f   : > { %v1676_v42 = vrot.slane %v1668_v35, %v10136_v34  ;;  %v1683_v43 = vrot.slane %v1669_v36, %v10136_v34 }
 0x360   : > { %v1494_v37 = vpop.permute.xlu1 %1493  ;;  %v1647_v38 = vpop.permute.xlu0 %1646 }
 0x361   : > { %v1652_v39 = vcombine.low %v1420_v15, %v1647_v38  ;;  %v1653_v40 = vcombine.high %v1420_v15, %v1647_v38 }
 0x363   : > { %v1660_v44 = vrot.slane %v1652_v39, %v10136_v34  ;;  %v1667_v45 = vrot.slane %v1653_v40, %v10136_v34 }
 0x364   : > { %v1500_v46 = vpop.permute.xlu1 %1499  ;;  %v1497_v47 = vpop.permute.xlu0 %1496 }
 0x365   : > { %v1684_v48 = vcombine.low %v1660_v44, %v1676_v42  ;;  %v1685_v49 = vcombine.high %v1660_v44, %v1676_v42  ;;  %v1700_v50 = vcombine.low %v1667_v45, %v1683_v43  ;;  %v1701_v51 = vcombine.high %v1667_v45, %v1683_v43 }
 0x366   : > { %v1518_v52 = vcombine.low %v1494_v37, %v1500_v46  ;;  %v1519_v53 = vcombine.high %v1494_v37, %v1500_v46  ;;  %v1502_v54 = vcombine.low %v1357_v21, %v1497_v47  ;;  %v1503_v55 = vcombine.high %v1357_v21, %v1497_v47 }
 0x367   : > { %v1692_v56 = vrot.slane %v1684_v48, %v10138_v41  ;;  %v1699_v57 = vrot.slane %v1685_v49, %v10138_v41  ;;  %v1708_v58 = vrot.slane %v1700_v50, %v10138_v41  ;;  %v1715_v59 = vrot.slane %v1701_v51, %v10138_v41 }
 0x368   : > { %v1526_v60 = vrot.slane %v1518_v52, %v10136_v34  ;;  %v1533_v61 = vrot.slane %v1519_v53, %v10136_v34  ;;  %v1510_v62 = vrot.slane %v1502_v54, %v10136_v34  ;;  %v1517_v63 = vrot.slane %v1503_v55, %v10136_v34 }
 0x369   : > { %v1720_v1 = vcombine.low %v1692_v56, %v1699_v57  ;;  %v7881_v2 = vcombine.high %v1692_v56, %v1699_v57  ;;  %v1736_v4 = vcombine.low %v1708_v58, %v1715_v59  ;;  %v7882_v5 = vcombine.high %v1708_v58, %v1715_v59 }
 0x36a   : > { %v1534_v6 = vcombine.low %v1510_v62, %v1526_v60  ;;  %v1535_v7 = vcombine.high %v1510_v62, %v1526_v60  ;;  %v1550_v8 = vcombine.low %v1517_v63, %v1533_v61  ;;  %v1551_v9 = vcombine.high %v1517_v63, %v1533_v61 }
 0x36b   : > { %v1727_v10 = vrot.slane %v1720_v1, %v10136_v34  ;;  %v1735_v11 = vrot.slane %v7881_v2, %v10136_v34  ;;  %v1743_v12 = vrot.slane %v1736_v4, %v10136_v34  ;;  %v1751_v13 = vrot.slane %v7882_v5, %v10136_v34  ;;  %v1486_v1 = vpop.f32.mrb[0].mxu0 }
 0x36c   : > { %v1542_v14 = vrot.slane %v1534_v6, %v10138_v41  ;;  %v1549_v15 = vrot.slane %v1535_v7, %v10138_v41  ;;  %v1558_v16 = vrot.slane %v1550_v8, %v10138_v41  ;;  %v1565_v17 = vrot.slane %v1551_v9, %v10138_v41  ;;  %v8218_v2 = vpop.f32.mrb[1].mxu0 }
 0x36d   : > { %v1752_v18 = vcombine.low %v1727_v10, %v1735_v11  ;;  %v1768_v19 = vcombine.low %v1743_v12, %v1751_v13  ;;  %v1753_v20 = vcombine.high %v1727_v10, %v1735_v11  ;;  %v1769_v21 = vcombine.high %v1743_v12, %v1751_v13  ;;  %v1489_v4 = vpop.f32.mrb[2].mxu0 }
 0x36e   : > { %v1570_v22 = vcombine.low %v1542_v14, %v1549_v15  ;;  %v7879_v23 = vcombine.high %v1542_v14, %v1549_v15  ;;  %v1586_v24 = vcombine.low %v1558_v16, %v1565_v17  ;;  %v7880_v25 = vcombine.high %v1558_v16, %v1565_v17  ;;  %v8219_v5 = vpop.f32.mrb[3].mxu0 }
 0x36f   : > { %v1760_v26 = vrot.slane %v1752_v18, %v10138_v41  ;;  %v1776_v27 = vrot.slane %v1768_v19, %v10138_v41  ;;  %v1767_v35 = vrot.slane %v1753_v20, %v10138_v41  ;;  %v1783_v36 = vrot.slane %v1769_v21, %v10138_v41 }
 0x370   : > { %v1577_v28 = vrot.slane %v1570_v22, %v10136_v34  ;;  %v1585_v29 = vrot.slane %v7879_v23, %v10136_v34  ;;  %v1593_v30 = vrot.slane %v1586_v24, %v10136_v34  ;;  %v1601_v31 = vrot.slane %v7880_v25, %v10136_v34 }
 0x371   : > { %v1784_v32 = vcombine.low %v1760_v26, %v1776_v27  ;;  %v1785_v33 = vcombine.high %v1760_v26, %v1776_v27  ;;  %v1786_v46 = vcombine.low %v1767_v35, %v1783_v36  ;;  %v1787_v47 = vcombine.high %v1767_v35, %v1783_v36  ;;  %v7875_v26 = vld [vmem:[#allocation13] ss:$0 sm:$0xff] }
 0x372   : > { %v1602_v37 = vcombine.low %v1577_v28, %v1585_v29  ;;  %v1618_v38 = vcombine.low %v1593_v30, %v1601_v31  ;;  %v1603_v48 = vcombine.high %v1577_v28, %v1585_v29  ;;  %v1619_v49 = vcombine.high %v1593_v30, %v1601_v31 }
 0x373   : > { %v1788_v39 = vpack.c.bf16 %v1784_v32, %v1784_v32  ;;  %v1789_v40 = vpack.c.bf16 %v1785_v33, %v1785_v33  ;;  %v1790_v52 = vpack.c.bf16 %v1786_v46, %v1786_v46  ;;  %v1791_v53 = vpack.c.bf16 %v1787_v47, %v1787_v47 }
 0x374   : > { %v1610_v42 = vrot.slane %v1602_v37, %v10138_v41  ;;  %v1626_v43 = vrot.slane %v1618_v38, %v10138_v41  ;;  %v1617_v56 = vrot.slane %v1603_v48, %v10138_v41  ;;  %v1633_v57 = vrot.slane %v1619_v49, %v10138_v41 }
 0x375   : > { %v1947_v44 = vsel %vm1942_vm2, %v1788_v39, 0  ;;  %v1993_v45 = vsel %vm1942_vm2, %v1789_v40, 0  ;;  %v2039_v58 = vsel %vm1942_vm2, %v1790_v52, 0  ;;  %v2085_v59 = vsel %vm1942_vm2, %v1791_v53, 0 }
 0x376   : > { %8221 = vmatpush3.bf16.xpose.msra.mxu1 %v1947_v44  ;;  %8227 = vmatpush3.bf16.xpose.msra.mxu0 %v1993_v45  ;;  %v1634_v50 = vcombine.low %v1610_v42, %v1626_v43  ;;  %v1635_v51 = vcombine.high %v1610_v42, %v1626_v43  ;;  %v1636_v60 = vcombine.low %v1617_v56, %v1633_v57 }
 0x377   : > { %8232 = vmatprep.subr.bf16.mxu1 %v9526_v0  ;;  %8238 = vmatprep.subr.bf16.mxu0 %v9526_v0  ;;  %v1637_v61 = vcombine.high %v1617_v56, %v1633_v57  ;;  %v1487_v27 = vadd.f32 %v7875_v26, %v1486_v1 }
 0x378   : > { %v1638_v54 = vpack.c.bf16 %v1634_v50, %v1634_v50  ;;  %v1639_v55 = vpack.c.bf16 %v1635_v51, %v1635_v51  ;;  %v1640_v62 = vpack.c.bf16 %v1636_v60, %v1636_v60 }
 0x379   : > { %v1641_v63 = vpack.c.bf16 %v1637_v61, %v1637_v61 }
 0x37d   : > { %8223 = vmatmul.mubr.msk.bf16.vlgmr.msra.gmra.mrb[8].mxu1 %vm1942_vm2, %v1638_v54  ;;  %8229 = vmatmul.mubr.msk.bf16.vlgmr.msra.gmra.mrb[4].mxu0 %vm1942_vm2, %v1639_v55 }
 0x37e   : > { %8233 = vmatpush3.bf16.xpose.msra.mxu1 %v2039_v58  ;;  %8239 = vmatpush3.bf16.xpose.msra.mxu0 %v2085_v59 }
 0x37f   : > { %8234 = vmatprep.mubr.msk.bf16.mxu1 %vm9527_vm0, %v9526_v0  ;;  %8240 = vmatprep.mubr.msk.bf16.mxu0 %vm9527_vm0, %v9526_v0 }
 0x380   : > { %8244 = vmatprep.subr.bf16.mxu1 %v9526_v0  ;;  %8250 = vmatprep.subr.bf16.mxu0 %v9526_v0 }
 0x385   : > { %8235 = vmatmul.mubr.msk.bf16.vlgmr.msra.gmra.mrb[12].mxu1 %vm1942_vm2, %v1640_v62  ;;  %8241 = vmatmul.mubr.msk.bf16.vlgmr.msra.gmra.mrb[8].mxu0 %vm1942_vm2, %v1641_v63 }
 0x386   : > { %8246 = vmatprep.mubr.msk.bf16.mxu1 %vm9527_vm0, %v9526_v0  ;;  %8252 = vmatprep.mubr.msk.bf16.mxu0 %vm9527_vm0, %v9526_v0 }
 0x450   : > { %v1983_v6 = vpop.f32.mrb[8].mxu1  ;;  %v2029_v7 = vpop.f32.mrb[4].mxu0 }
 0x451   : > { %v8224_v8 = vpop.f32.mrb[9].mxu1  ;;  %v8230_v9 = vpop.f32.mrb[5].mxu0  ;;  %v2130_v10 = vsel %vm1942_vm2, %v2029_v7, -inf  ;;  %v2127_v11 = vsel %vm1942_vm2, %v1983_v6, -inf }
 0x452   : > { %2131 = vmax.xlane.f32.xlu1 %v2130_v10  ;;  %v2032_v12 = vpop.f32.mrb[6].mxu0  ;;  %2128 = vmax.xlane.f32.xlu0 %v2127_v11  ;;  %v1986_v13 = vpop.f32.mrb[10].mxu1 }
 0x453   : > { %v8225_v14 = vpop.f32.mrb[11].mxu1  ;;  %v8231_v15 = vpop.f32.mrb[7].mxu0 }
 0x458   : > { %v2075_v16 = vpop.f32.mrb[12].mxu1  ;;  %v2121_v17 = vpop.f32.mrb[8].mxu0 }
 0x459   : > { %v8236_v18 = vpop.f32.mrb[13].mxu1  ;;  %v8242_v19 = vpop.f32.mrb[9].mxu0  ;;  %v2133_v20 = vsel %vm1942_vm2, %v2075_v16, -inf  ;;  %v2136_v25 = vsel %vm1942_vm2, %v2121_v17, -inf }
 0x45a   : > { %v2124_v21 = vpop.f32.mrb[10].mxu0  ;;  %2134 = vmax.xlane.f32.xlu0 %v2133_v20  ;;  %v2078_v22 = vpop.f32.mrb[14].mxu1 }
 0x45b   : > { %v8237_v23 = vpop.f32.mrb[15].mxu1  ;;  %v8243_v24 = vpop.f32.mrb[11].mxu0 }
 0x45e   : > { %2137 = vmax.xlane.f32.xlu0 %v2136_v25 }
 0x463   : > { %1793 = vrot.lane.b32.xlu1 %v1487_v27, %s11078_s7 }
 0x4df   : > { %v2132_v28 = vpop.xlane.xlu1 %2131  ;;  %v2129_v29 = vpop.xlane.xlu0 %2128 }
 0x4e0   : > { %v2140_v30 = vsub.f32 %v2029_v7, %v2132_v28  ;;  %v2139_v31 = vsub.f32 %v1983_v6, %v2129_v29 }
 0x4e2   : > { %v2145_v32 = vmul.f32 1.442695, %v2140_v30  ;;  %v2143_v33 = vmul.f32 1.442695, %v2139_v31 }
 0x4e3   : > { %v1794_v50 = vpop.permute.xlu1 %1793 }
 0x4e4   : > { %8838 = vpow2.f32 %v2145_v32 }
 0x4e5   : > { %8840 = vpow2.f32 %v2143_v33 }
 0x4e7   : > { %v2135_v39 = vpop.xlane.xlu0 %2134 }
 0x4e8   : > { %v2141_v43 = vsub.f32 %v2075_v16, %v2135_v39 }
 0x4ea   : > { %v2147_v45 = vmul.f32 1.442695, %v2141_v43 }
 0x4eb   : > { %v2138_v40 = vpop.xlane.xlu0 %2137 }
 0x4ec   : > { %v2142_v42 = vsub.f32 %v2121_v17, %v2138_v40 }
 0x4ee   : > { %v10197_v35 = vpop.eup %8838  ;;  %v2149_v44 = vmul.f32 1.442695, %v2142_v42 }
 0x4ef   : > { %v10199_v36 = vpop.eup %8840  ;;  %v2154_v37 = vsel %vm1942_vm2, %v10197_v35, 0.0 }
 0x4f0   : > { %v2151_v38 = vsel %vm1942_vm2, %v10199_v36, 0.0  ;;  %2155 = vadd.xlane.f32.xlu0 %v2154_v37  ;;  %8842 = vpow2.f32 %v2149_v44 }
 0x4f1   : > { %2152 = vadd.xlane.f32.xlu1 %v2151_v38  ;;  %8844 = vpow2.f32 %v2147_v45 }
 0x4fa   : > { %v10207_v46 = vpop.eup %8842 }
 0x4fb   : > { %v10209_v47 = vpop.eup %8844  ;;  %v2160_v48 = vsel %vm1942_vm2, %v10207_v46, 0.0 }
 0x4fc   : > { %v2157_v49 = vsel %vm1942_vm2, %v10209_v47, 0.0 }
 0x502   : > { %1799 = vrot.lane.b32.xlu1 %v1487_v27, %s11076_s5 }
 0x506   : > { %1796 = vrot.lane.b32.xlu0 %v1487_v27, %s11080_s17 }
 0x525   : > { %2161 = vadd.xlane.f32.xlu0 %v2160_v48 }
 0x526   : > { %2158 = vadd.xlane.f32.xlu1 %v2157_v49 }
 0x57d   : > { %v2156_v51 = vpop.xlane.xlu0 %2155 }
 0x57e   : > { %v2153_v52 = vpop.xlane.xlu1 %2152  ;;  %8846 = vrcp.f32 %v2156_v51 }
 0x57f   : > { %8848 = vrcp.f32 %v2153_v52 }
 0x581   : > { %v1797_v53 = vpop.permute.xlu0 %1796 }
 0x582   : > { %v1800_v54 = vpop.permute.xlu1 %1799  ;;  %v1802_v55 = vcombine.low %v1487_v27, %v1797_v53  ;;  %v1803_v56 = vcombine.high %v1487_v27, %v1797_v53 }
 0x583   : > { %v1818_v57 = vcombine.low %v1794_v50, %v1800_v54  ;;  %v1819_v58 = vcombine.high %v1794_v50, %v1800_v54 }
 0x584   : > { %v1810_v59 = vrot.slane %v1802_v55, %v10136_v34  ;;  %v1817_v60 = vrot.slane %v1803_v56, %v10136_v34 }
 0x585   : > { %v1826_v61 = vrot.slane %v1818_v57, %v10136_v34  ;;  %v1833_v62 = vrot.slane %v1819_v58, %v10136_v34 }
 0x587   : > { %v1834_v63 = vcombine.low %v1810_v59, %v1826_v61  ;;  %v1835_v1 = vcombine.high %v1810_v59, %v1826_v61  ;;  %v1850_v2 = vcombine.low %v1817_v60, %v1833_v62  ;;  %v1851_v4 = vcombine.high %v1817_v60, %v1833_v62 }
 0x588   : > { %v8847_v23 = vpop.eup %8846 }
 0x589   : > { %v1842_v5 = vrot.slane %v1834_v63, %v10138_v41  ;;  %v1849_v6 = vrot.slane %v1835_v1, %v10138_v41  ;;  %v1858_v7 = vrot.slane %v1850_v2, %v10138_v41  ;;  %v1865_v8 = vrot.slane %v1851_v4, %v10138_v41  ;;  %v8849_v26 = vpop.eup %8848 }
 0x58a   : > { %v2167_v31 = vmul.f32 %v8849_v26, %v10199_v36  ;;  %v2168_v32 = vmul.f32 %v8847_v23, %v10197_v35 }
 0x58b   : > { %v1870_v9 = vcombine.low %v1842_v5, %v1849_v6  ;;  %v7883_v10 = vcombine.high %v1842_v5, %v1849_v6  ;;  %v1886_v11 = vcombine.low %v1858_v7, %v1865_v8  ;;  %v7884_v12 = vcombine.high %v1858_v7, %v1865_v8 }
 0x58c   : > { %v2171_v43 = vpack.c.bf16 %v2167_v31, %v2167_v31  ;;  %v2172_v44 = vpack.c.bf16 %v2168_v32, %v2168_v32 }
 0x58d   : > { %v1877_v13 = vrot.slane %v1870_v9, %v10136_v34  ;;  %v1885_v14 = vrot.slane %v7883_v10, %v10136_v34  ;;  %v1893_v15 = vrot.slane %v1886_v11, %v10136_v34  ;;  %v1901_v16 = vrot.slane %v7884_v12, %v10136_v34 }
 0x58f   : > { %v1902_v17 = vcombine.low %v1877_v13, %v1885_v14  ;;  %v1903_v18 = vcombine.high %v1877_v13, %v1885_v14  ;;  %v1918_v19 = vcombine.low %v1893_v15, %v1901_v16  ;;  %v1919_v20 = vcombine.high %v1893_v15, %v1901_v16 }
 0x591   : > { %v1910_v21 = vrot.slane %v1902_v17, %v10138_v41  ;;  %v1917_v22 = vrot.slane %v1903_v18, %v10138_v41  ;;  %v1926_v24 = vrot.slane %v1918_v19, %v10138_v41  ;;  %v1933_v25 = vrot.slane %v1919_v20, %v10138_v41  ;;  %v8800_v19 = vld [vmem:[%s11167_s3] sm:$0xff]  }
 0x593   : > { %v1934_v27 = vcombine.low %v1910_v21, %v1926_v24  ;;  %v1935_v28 = vcombine.high %v1910_v21, %v1926_v24  ;;  %v1936_v29 = vcombine.low %v1917_v22, %v1933_v25  ;;  %v1937_v30 = vcombine.high %v1917_v22, %v1933_v25 }
 0x595   : > { %v1938_v33 = vpack.c.bf16 %v1934_v27, %v1934_v27  ;;  %v1939_v37 = vpack.c.bf16 %v1935_v28, %v1935_v28  ;;  %v1940_v40 = vpack.c.bf16 %v1936_v29, %v1936_v29  ;;  %v1941_v42 = vpack.c.bf16 %v1937_v30, %v1937_v30  ;;  %v8801_v28 = vld [vmem:[%s11167_s3 + $0x8] sm:$0xff]  }
 0x597   : > { %v2180_v38 = vsel %vm2178_vm3, %v1938_v33, 0  ;;  %v2226_v39 = vsel %vm2178_vm3, %v1939_v37, 0  ;;  %v2272_v35 = vsel %vm2178_vm3, %v1940_v40, 0  ;;  %v2318_v36 = vsel %vm2178_vm3, %v1941_v42, 0 }
 0x598   : > { %8245 = vmatpush3.bf16.msra.mxu1 %v2180_v38  ;;  %8251 = vmatpush3.bf16.msra.mxu0 %v2226_v39 }
 0x599   : > { %8256 = vmatprep.subr.bf16.mxu1 %v9526_v0  ;;  %8262 = vmatprep.subr.bf16.mxu0 %v9526_v0 }
 0x59b   : > { %8247 = vmatmul.mubr.msk.bf16.vlgmr.msra.gmra.mrb[16].mxu1 %vm1942_vm2, %v2171_v43  ;;  %8253 = vmatmul.mubr.msk.bf16.vlgmr.msra.gmra.mrb[12].mxu0 %vm1942_vm2, %v2172_v44 }
 0x59c   : > { %8257 = vmatpush3.bf16.msra.mxu1 %v2272_v35  ;;  %8263 = vmatpush3.bf16.msra.mxu0 %v2318_v36 }
 0x59d   : > { %8258 = vmatprep.mubr.msk.bf16.mxu1 %vm9527_vm0, %v9526_v0  ;;  %8264 = vmatprep.mubr.msk.bf16.mxu0 %vm9527_vm0, %v9526_v0 }
 0x59e   : > { %8268 = vmatprep.subr.bf16.mxu1 %v9526_v0  ;;  %8276 = vmatprep.subr.bf16.mxu0 %v9526_v0 }
 0x5b2   : > { %v2162_v45 = vpop.xlane.xlu0 %2161 }
 0x5b3   : > { %v2159_v48 = vpop.xlane.xlu1 %2158  ;;  %8850 = vrcp.f32 %v2162_v45 }
 0x5b4   : > { %8852 = vrcp.f32 %v2159_v48 }
 0x5bd   : > { %v8851_v49 = vpop.eup %8850 }
 0x5be   : > { %v8853_v50 = vpop.eup %8852  ;;  %v2170_v51 = vmul.f32 %v8851_v49, %v10207_v46 }
 0x5bf   : > { %v2169_v52 = vmul.f32 %v8853_v50, %v10209_v47 }
 0x5c0   : > { %v2174_v53 = vpack.c.bf16 %v2170_v51, %v2170_v51 }
 0x5c1   : > { %v2173_v54 = vpack.c.bf16 %v2169_v52, %v2169_v52 }
 0x5c2   : > { %8265 = vmatmul.mubr.msk.bf16.vlgmr.msra.gmra.mrb[16].mxu0 %vm1942_vm2, %v2174_v53 }
 0x5c3   : > { %8259 = vmatmul.mubr.msk.bf16.vlgmr.msra.gmra.mrb[20].mxu1 %vm1942_vm2, %v2173_v54  ;;  %8280 = vmatprep.mubr.msk.bf16.mxu0 %vm9527_vm0, %v9526_v0 }
 0x5c4   : > { %8272 = vmatprep.mubr.msk.bf16.mxu1 %vm9527_vm0, %v9526_v0  ;;  %8269 = vmatpush3.bf16.msra.mxu1 %v8800_v19 }
 0x5c5   : > { %8270 = vmatprep.subr.bf16.mxu1 %v9526_v0 }
 0x5c8   : > { %8271 = vmatpush3.bf16.msra.mxu1 %v8801_v28 }
 0x5c9   : > { %8284 = vmatprep.subr.bf16.mxu1 %v9526_v0 }
 0x66e   : > { %v2216_v55 = vpop.f32.mrb[16].mxu1  ;;  %v2262_v56 = vpop.f32.mrb[12].mxu0 }
 0x66f   : > { %v8248_v57 = vpop.f32.mrb[17].mxu1  ;;  %v8254_v58 = vpop.f32.mrb[13].mxu0 }
 0x670   : > { %v2219_v59 = vpop.f32.mrb[18].mxu1  ;;  %v2265_v46 = vpop.f32.mrb[14].mxu0 }
 0x671   : > { %v8249_v60 = vpop.f32.mrb[19].mxu1  ;;  %v8255_v47 = vpop.f32.mrb[15].mxu0 }
 0x695   : > { %v2354_v61 = vpop.f32.mrb[16].mxu0 }
 0x696   : > { %v2308_v62 = vpop.f32.mrb[20].mxu1  ;;  %v2376_v63 = vcombine.low %v2262_v56, %v2354_v61  ;;  %v2377_v1 = vcombine.high %v2262_v56, %v2354_v61  ;;  %v8266_v2 = vpop.f32.mrb[17].mxu0  ;;  %v7895_v56 = vld [vmem:[#allocation14] ss:$0 sm:$0xff] }
 0x697   : > { %v2360_v4 = vcombine.low %v2216_v55, %v2308_v62  ;;  %v2361_v5 = vcombine.high %v2216_v55, %v2308_v62  ;;  %v8260_v6 = vpop.f32.mrb[21].mxu1  ;;  %v2357_v7 = vpop.f32.mrb[18].mxu0  ;;  %v8802_v62 = vld [vmem:[#allocation17] sm:$0xff]  }
 0x698   : > { %v2384_v8 = vrot.slane %v2376_v63, %v10136_v34  ;;  %v2391_v9 = vrot.slane %v2377_v1, %v10136_v34  ;;  %v2311_v10 = vpop.f32.mrb[22].mxu1  ;;  %v8267_v11 = vpop.f32.mrb[19].mxu0  ;;  %v8803_v63 = vld [vmem:[#allocation17 + $0x8] sm:$0xff]  }
 0x699   : > { %v2368_v12 = vrot.slane %v2360_v4, %v10136_v34  ;;  %v2375_v13 = vrot.slane %v2361_v5, %v10136_v34  ;;  %v8261_v14 = vpop.f32.mrb[23].mxu1 }
 0x69a   : > { %v8805_v14 = vld [vmem:[#allocation16 + $0x8] sm:$0xff]  }
 0x69b   : > { %v2392_v15 = vcombine.low %v2368_v12, %v2384_v8  ;;  %v2393_v16 = vcombine.high %v2368_v12, %v2384_v8  ;;  %v2408_v17 = vcombine.low %v2375_v13, %v2391_v9  ;;  %v2409_v18 = vcombine.high %v2375_v13, %v2391_v9  ;;  %v8804_v13 = vld [vmem:[#allocation16] sm:$0xff]  }
 0x69c   : > { %8277 = vmatpush3.bf16.msra.mxu0 %v8804_v13 }
 0x69d   : > { %v2400_v20 = vrot.slane %v2392_v15, %v10138_v41  ;;  %v2407_v21 = vrot.slane %v2393_v16, %v10138_v41  ;;  %v2416_v22 = vrot.slane %v2408_v17, %v10138_v41  ;;  %v2423_v23 = vrot.slane %v2409_v18, %v10138_v41  ;;  %8278 = vmatprep.subr.bf16.mxu0 %v9526_v0  ;;  %v7905_v15 = vld [vmem:[#allocation22] ss:$0 sm:$0xff] }
 0x69f   : > { %v2428_v24 = vcombine.low %v2400_v20, %v2407_v21  ;;  %v7893_v25 = vcombine.high %v2400_v20, %v2407_v21  ;;  %v2444_v26 = vcombine.low %v2416_v22, %v2423_v23  ;;  %v7894_v27 = vcombine.high %v2416_v22, %v2423_v23 }
 0x6a0   : > { %8279 = vmatpush3.bf16.msra.mxu0 %v8805_v14 }
 0x6a1   : > { %v2435_v29 = vrot.slane %v2428_v24, %v10136_v34  ;;  %v2443_v30 = vrot.slane %v7893_v25, %v10136_v34  ;;  %v2451_v31 = vrot.slane %v2444_v26, %v10136_v34  ;;  %v2459_v32 = vrot.slane %v7894_v27, %v10136_v34  ;;  %8292 = vmatprep.subr.bf16.mxu0 %v9526_v0 }
 0x6a3   : > { %v2461_v33 = vcombine.high %v2435_v29, %v2443_v30  ;;  %v2477_v37 = vcombine.high %v2451_v31, %v2459_v32  ;;  %v2460_v38 = vcombine.low %v2435_v29, %v2443_v30  ;;  %v2476_v39 = vcombine.low %v2451_v31, %v2459_v32  ;;  %v8916_v31 = vld [vmem:[%s10061_s15] sm:$0xff] }
 0x6a5   : > { %v2475_v40 = vrot.slane %v2461_v33, %v10138_v41  ;;  %v2491_v42 = vrot.slane %v2477_v37, %v10138_v41  ;;  %v2468_v43 = vrot.slane %v2460_v38, %v10138_v41  ;;  %v2484_v44 = vrot.slane %v2476_v39, %v10138_v41  ;;  %v8806_v33 = vld [vmem:[#allocation19] sm:$0xff]  }
 0x6a7   : > { %v2494_v35 = vcombine.low %v2475_v40, %v2491_v42  ;;  %v2493_v36 = vcombine.high %v2468_v43, %v2484_v44  ;;  %v2495_v45 = vcombine.high %v2475_v40, %v2491_v42  ;;  %v2492_v48 = vcombine.low %v2468_v43, %v2484_v44 }
 0x6a9   : > { %2501 = vrot.lane.b32.xlu1 %v2494_v35, %s11074_s18  ;;  %2497 = vrot.lane.b32.xlu0 %v2493_v36, %s11072_s6 }
 0x6ad   : > { %2505 = vrot.lane.b32.xlu1 %v2495_v45, %s11070_s23  ;;  %s8066_s23 = sshll.u32 %s1273_s4, 4  ;;  %s11175_s4 = smov 24  }
 0x6ae   : > { %s1276_s6 = scalar_lea.vmem %s11168_s8, %s8066_s23  ;;  %s1281_s18 = scalar_lea.vmem %s11169_s12, %s8066_s23 }
 0x6af   : > { %v10291_v1 = vld [vmem:[%s1276_s6] sm:$0xff]  ;;  %v10293_v2 = vld [vmem:[%s1276_s6 + $0x8] sm:$0xff]  ;;  %s11171_s6 = sld [smem:[#allocation64_spill]]  ;;  %s11172_s23 = sld [smem:[#allocation58_spill]] }
 0x6b0   : > { %v1287_v4 = vld [vmem:[%s1281_s18] sm:$0xff]  ;;  %s11173_s8 = smov 16   ;;  %s11174_s12 = smov 8  }
 0x6b1   : > { %v1290_v5 = vadd.f32 %v1287_v4, %v10291_v1 }
 0x6b5   : > { %v7900_v28 = vld [vmem:[%s11171_s6] ss:$0 sm:$0xff] }
 0x71b   : > { %v2502_v49 = vpop.permute.xlu1 %2501  ;;  %v2498_v50 = vpop.permute.xlu0 %2497 }
 0x71c   : > { %v2508_v51 = vsel %vm1942_vm2, %v2492_v48, %v2498_v50 }
 0x71d   : > { %v2510_v53 = vsel %vm2509_vm4, %v2508_v51, %v2502_v49 }
 0x71f   : > { %v2506_v52 = vpop.permute.xlu1 %2505 }
 0x720   : > { %v2512_v54 = vsel %vm2511_vm5, %v2510_v53, %v2506_v52 }
 0x721   : > { %v2513_v55 = vpack.c.bf16 %v2512_v54, %v2512_v54 }
 0x723   : > { %8273 = vmatmul.mubr.msk.bf16.vlgmr.msra.gmra.mrb[24].mxu1 %vm1318_vm1, %v2513_v55 }
 0x724   : > { %8288 = vmatprep.mubr.msk.bf16.mxu1 %vm9527_vm0, %v9526_v0  ;;  %8285 = vmatpush3.bf16.msra.mxu1 %v8802_v62 }
 0x725   : > { %8286 = vmatprep.subr.bf16.mxu1 %v9526_v0 }
 0x728   : > { %8287 = vmatpush3.bf16.msra.mxu1 %v8803_v63 }
 0x729   : > { %8300 = vmatprep.subr.bf16.mxu1 %v9526_v0 }
 0x7f6   : > { %v2574_v57 = vpop.f32.mrb[24].mxu1 }
 0x7f7   : > { %v2575_v58 = vadd.f32 %v7895_v56, %v2574_v57  ;;  %v8274_v59 = vpop.f32.mrb[25].mxu1 }
 0x7f8   : > { %v2577_v46 = vpop.f32.mrb[26].mxu1 }
 0x7f9   : > { %v8275_v60 = vpop.f32.mrb[27].mxu1  ;;  %v2580_v47 = vadd.f32 %v2575_v58, %v10109_v3  ;;  %v1288_v3 = vld [vmem:[%s1281_s18 + $0x8] sm:$0xff]  ;;  %s11170_s18 = sld [smem:[#allocation63_spill]] }
 0x7fa   : > { %v1291_v6 = vadd.f32 %v1288_v3, %v10293_v2 }
 0x7fb   : > { %v2583_v61 = vsel %vm1318_vm1, %v2580_v47, 0.0 }
 0x7fc   : > { %2584 = vadd.xlane.f32.xlu0 %v2583_v61  ;;  %v10298_v7 = vpack.c.bf16 %v1291_v6, %v1290_v5 }
 0x7fe   : > { %8289 = vmatmul.mubr.msk.bf16.vlgmr.msra.gmra.mrb[28].mxu1 %vm1318_vm1, %v10298_v7 }
 0x7ff   : > { %8302 = vmatprep.mubr.msk.bf16.mxu1 %vm9527_vm0, %v9526_v0  ;;  %v7899_v26 = vld [vmem:[%s11170_s18] ss:$0 sm:$0xff] }
 0x889   : > { %v2585_v8 = vpop.xlane.xlu0 %2584 }
 0x88a   : > { %v2587_v9 = vmul.f32 0.03125, %v2585_v8 }
 0x88c   : > { %v2588_v10 = vsub.f32 %v2580_v47, %v2587_v9 }
 0x88e   : > { %v2589_v11 = vmul.f32 %v2588_v10, %v2588_v10 }
 0x890   : > { %v2590_v12 = vsel %vm1318_vm1, %v2589_v11, 0.0 }
 0x891   : > { %2591 = vadd.xlane.f32.xlu1 %v2590_v12 }
 0x8d1   : > { %v2739_v16 = vpop.f32.mrb[28].mxu1 }
 0x8d2   : > { %v2740_v17 = vadd.f32 %v7905_v15, %v2739_v16  ;;  %v8290_v18 = vpop.f32.mrb[29].mxu1 }
 0x8d3   : > { %v2742_v19 = vpop.f32.mrb[30].mxu1 }
 0x8d4   : > { %v2743_v20 = vadd.f32 %v7905_v15, %v2742_v19  ;;  %2965 = vrot.lane.b32.xlu0 %v2740_v17, %s11078_s7  ;;  %v8291_v21 = vpop.f32.mrb[31].mxu1 }
 0x8d6   : > { %2967 = vrot.lane.b32.xlu1 %v2743_v20, %s11078_s7 }
 0x8d8   : > { %2971 = vrot.lane.b32.xlu0 %v2740_v17, %s11080_s17 }
 0x8da   : > { %2973 = vrot.lane.b32.xlu1 %v2743_v20, %s11080_s17 }
 0x8dc   : > { %2977 = vrot.lane.b32.xlu0 %v2740_v17, %s11076_s5 }
 0x8de   : > { %2979 = vrot.lane.b32.xlu1 %v2743_v20, %s11076_s5 }
 0x91e   : > { %v2592_v22 = vpop.xlane.xlu1 %2591 }
 0x91f   : > { %v2593_v23 = vmul.f32 0.03125, %v2592_v22 }
 0x921   : > { %v2594_v24 = vadd.f32 1e-05, %v2593_v23 }
 0x923   : > { %8854 = vrsqrt.f32 %v2594_v24 }
 0x92d   : > { %v8855_v25 = vpop.eup %8854 }
 0x92e   : > { %v2596_v27 = vmul.f32 %v8855_v25, %v2588_v10 }
 0x930   : > { %v2603_v29 = vmul.f32 %v7899_v26, %v2596_v27 }
 0x932   : > { %v10315_v30 = vadd.f32 %v7900_v28, %v2603_v29 }
 0x934   : > { %v2611_v32 = vadd.f32 %v8916_v31, %v10315_v30 }
 0x936   : > { %v2612_v37 = vpack.c.bf16 %v2611_v32, %v2611_v32  ;;  %v8807_v32 = vld [vmem:[#allocation19 + $0x8] sm:$0xff]  }
 0x938   : > { %8281 = vmatmul.mubr.msk.bf16.vlgmr.msra.gmra.mrb[20].mxu0 %vm1318_vm1, %v2612_v37 }
 0x939   : > { %8293 = vmatpush3.bf16.msra.mxu0 %v8806_v33  ;;  %8296 = vmatprep.mubr.msk.bf16.mxu0 %vm9527_vm0, %v9526_v0 }
 0x93a   : > { %8294 = vmatprep.subr.bf16.mxu0 %v9526_v0 }
 0x93d   : > { %8295 = vmatpush3.bf16.msra.mxu0 %v8807_v32 }
 0x93e   : > { %8306 = vmatprep.subr.bf16.mxu0 %v9526_v0 }
 0x946   : > { %v2966_v38 = vpop.permute.xlu0 %2965 }
 0x948   : > { %v2968_v39 = vpop.permute.xlu1 %2967 }
 0x94a   : > { %v2972_v40 = vpop.permute.xlu0 %2971 }
 0x94b   : > { %v2983_v35 = vcombine.low %v2740_v17, %v2972_v40  ;;  %v2984_v36 = vcombine.high %v2740_v17, %v2972_v40 }
 0x94c   : > { %v2974_v42 = vpop.permute.xlu1 %2973 }
 0x94d   : > { %v3051_v49 = vcombine.low %v2743_v20, %v2974_v42  ;;  %v3052_v50 = vcombine.high %v2743_v20, %v2974_v42  ;;  %v2991_v53 = vrot.slane %v2983_v35, %v10136_v34  ;;  %v2998_v54 = vrot.slane %v2984_v36, %v10136_v34 }
 0x94e   : > { %v2978_v43 = vpop.permute.xlu0 %2977 }
 0x94f   : > { %v2999_v45 = vcombine.low %v2966_v38, %v2978_v43  ;;  %v3000_v48 = vcombine.high %v2966_v38, %v2978_v43  ;;  %v3059_v57 = vrot.slane %v3051_v49, %v10136_v34  ;;  %v3066_v58 = vrot.slane %v3052_v50, %v10136_v34 }
 0x950   : > { %v2980_v44 = vpop.permute.xlu1 %2979 }
 0x951   : > { %v3067_v51 = vcombine.low %v2968_v39, %v2980_v44  ;;  %v3068_v52 = vcombine.high %v2968_v39, %v2980_v44  ;;  %v3007_v55 = vrot.slane %v2999_v45, %v10136_v34  ;;  %v3014_v56 = vrot.slane %v3000_v48, %v10136_v34 }
 0x953   : > { %v3075_v59 = vrot.slane %v3067_v51, %v10136_v34  ;;  %v3082_v46 = vrot.slane %v3068_v52, %v10136_v34  ;;  %v3015_v60 = vcombine.low %v2991_v53, %v3007_v55  ;;  %v3016_v47 = vcombine.high %v2991_v53, %v3007_v55 }
 0x954   : > { %v3031_v61 = vcombine.low %v2998_v54, %v3014_v56  ;;  %v3032_v62 = vcombine.high %v2998_v54, %v3014_v56 }
 0x955   : > { %v3083_v63 = vcombine.low %v3059_v57, %v3075_v59  ;;  %v3084_v4 = vcombine.high %v3059_v57, %v3075_v59  ;;  %v3099_v3 = vcombine.low %v3066_v58, %v3082_v46  ;;  %v3100_v5 = vcombine.high %v3066_v58, %v3082_v46 }
 0x956   : > { %v3023_v6 = vrot.slane %v3015_v60, %v10138_v41  ;;  %v3030_v8 = vrot.slane %v3016_v47, %v10138_v41  ;;  %v3039_v9 = vrot.slane %v3031_v61, %v10138_v41  ;;  %v3046_v10 = vrot.slane %v3032_v62, %v10138_v41 }
 0x957   : > { %v3091_v11 = vrot.slane %v3083_v63, %v10138_v41  ;;  %v3098_v12 = vrot.slane %v3084_v4, %v10138_v41  ;;  %v3107_v13 = vrot.slane %v3099_v3, %v10138_v41  ;;  %v3114_v14 = vrot.slane %v3100_v5, %v10138_v41 }
 0x958   : > { %v3119_v15 = vcombine.low %v3023_v6, %v3030_v8  ;;  %v7915_v16 = vcombine.high %v3023_v6, %v3030_v8  ;;  %v3135_v17 = vcombine.low %v3039_v9, %v3046_v10  ;;  %v7916_v18 = vcombine.high %v3039_v9, %v3046_v10  ;;  %v7909_v10 = vld [vmem:[#allocation23] ss:$0 sm:$0xff] }
 0x959   : > { %v3187_v19 = vcombine.low %v3091_v11, %v3098_v12  ;;  %v7917_v20 = vcombine.high %v3091_v11, %v3098_v12  ;;  %v3203_v21 = vcombine.low %v3107_v13, %v3114_v14  ;;  %v7918_v22 = vcombine.high %v3107_v13, %v3114_v14 }
 0x95a   : > { %v3126_v23 = vrot.slane %v3119_v15, %v10136_v34  ;;  %v3134_v24 = vrot.slane %v7915_v16, %v10136_v34  ;;  %v3142_v25 = vrot.slane %v3135_v17, %v10136_v34  ;;  %v3150_v26 = vrot.slane %v7916_v18, %v10136_v34 }
 0x95b   : > { %v3194_v27 = vrot.slane %v3187_v19, %v10136_v34  ;;  %v3202_v28 = vrot.slane %v7917_v20, %v10136_v34  ;;  %v3210_v29 = vrot.slane %v3203_v21, %v10136_v34  ;;  %v3218_v31 = vrot.slane %v7918_v22, %v10136_v34 }
 0x95c   : > { %v3151_v33 = vcombine.low %v3126_v23, %v3134_v24  ;;  %v3167_v37 = vcombine.low %v3142_v25, %v3150_v26  ;;  %v3152_v40 = vcombine.high %v3126_v23, %v3134_v24  ;;  %v3168_v42 = vcombine.high %v3142_v25, %v3150_v26 }
 0x95d   : > { %v3219_v38 = vcombine.low %v3194_v27, %v3202_v28  ;;  %v3235_v39 = vcombine.low %v3210_v29, %v3218_v31  ;;  %v3220_v43 = vcombine.high %v3194_v27, %v3202_v28  ;;  %v3236_v44 = vcombine.high %v3210_v29, %v3218_v31 }
 0x95e   : > { %v3159_v35 = vrot.slane %v3151_v33, %v10138_v41  ;;  %v3175_v36 = vrot.slane %v3167_v37, %v10138_v41  ;;  %v3166_v49 = vrot.slane %v3152_v40, %v10138_v41  ;;  %v3182_v50 = vrot.slane %v3168_v42, %v10138_v41 }
 0x95f   : > { %v3227_v45 = vrot.slane %v3219_v38, %v10138_v41  ;;  %v3243_v48 = vrot.slane %v3235_v39, %v10138_v41  ;;  %v3234_v51 = vrot.slane %v3220_v43, %v10138_v41  ;;  %v3250_v52 = vrot.slane %v3236_v44, %v10138_v41 }
 0x960   : > { %v3183_v53 = vcombine.low %v3159_v35, %v3175_v36  ;;  %v3184_v55 = vcombine.high %v3159_v35, %v3175_v36  ;;  %v10358_v57 = vpack.c.bf16 %v10293_v2, %v10291_v1  ;;  %v3185_v58 = vcombine.low %v3166_v49, %v3182_v50  ;;  %v7901_v2 = vld [vmem:[#allocation20] ss:$0 sm:$0xff] }
 0x961   : > { %v3251_v54 = vcombine.low %v3227_v45, %v3243_v48  ;;  %v3252_v56 = vcombine.high %v3227_v45, %v3243_v48  ;;  %v3253_v59 = vcombine.low %v3234_v51, %v3250_v52  ;;  %v3186_v46 = vcombine.high %v3166_v49, %v3182_v50 }
 0x962   : > { %v3254_v61 = vcombine.high %v3234_v51, %v3250_v52  ;;  %8297 = vmatmul.mubr.msk.bf16.vlgmr.msra.gmra.mrb[24].mxu0 %vm1318_vm1, %v10358_v57 }
 0x963   : > { %v3255_v60 = vpack.c.bf16 %v3251_v54, %v3183_v53  ;;  %v3256_v47 = vpack.c.bf16 %v3252_v56, %v3184_v55  ;;  %v10362_v62 = vpack.c.bf16 %v3253_v59, %v3185_v58  ;;  %8308 = vmatprep.mubr.msk.bf16.mxu0 %vm9527_vm0, %v9526_v0 }
 0x964   : > { %v10368_v1 = vpack.c.bf16 %v3254_v61, %v3186_v46 }
 0x965   : > { %v3559_v63 = vsel %vm1942_vm2, %v3255_v60, 0  ;;  %v3605_v4 = vsel %vm1942_vm2, %v3256_v47, 0  ;;  %v3651_v47 = vsel %vm1942_vm2, %v10362_v62, 0 }
 0x966   : > { %8301 = vmatpush3.bf16.xpose.msra.mxu1 %v3559_v63  ;;  %8307 = vmatpush3.bf16.xpose.msra.mxu0 %v3605_v4  ;;  %v3697_v61 = vsel %vm1942_vm2, %v10368_v1, 0 }
 0x967   : > { %8312 = vmatprep.subr.bf16.mxu1 %v9526_v0  ;;  %8318 = vmatprep.subr.bf16.mxu0 %v9526_v0 }
 0xa0b   : > { %v2673_v3 = vpop.f32.mrb[20].mxu0 }
 0xa0c   : > { %v2674_v5 = vadd.f32 %v7901_v2, %v2673_v3  ;;  %v8282_v6 = vpop.f32.mrb[21].mxu0 }
 0xa0d   : > { %v2676_v8 = vpop.f32.mrb[22].mxu0 }
 0xa0e   : > { %v8283_v9 = vpop.f32.mrb[23].mxu0  ;;  %2814 = vrot.lane.b32.xlu0 %v2674_v5, %s11078_s7  ;;  %2817 = vrot.lane.b32.xlu1 %v2674_v5, %s11080_s17 }
 0xa12   : > { %2820 = vrot.lane.b32.xlu0 %v2674_v5, %s11076_s5 }
 0xa35   : > { %v2806_v11 = vpop.f32.mrb[24].mxu0 }
 0xa36   : > { %v10375_v12 = vadd.f32 %v7909_v10, %v2806_v11  ;;  %v8298_v13 = vpop.f32.mrb[25].mxu0 }
 0xa37   : > { %v2809_v14 = vpop.f32.mrb[26].mxu0 }
 0xa38   : > { %v10377_v15 = vadd.f32 %v7909_v10, %v2809_v14  ;;  %v8299_v16 = vpop.f32.mrb[27].mxu0  ;;  %3261 = vrot.lane.b32.xlu0 %v10375_v12, %s11078_s7 }
 0xa3a   : > { %3263 = vrot.lane.b32.xlu1 %v10377_v15, %s11078_s7  ;;  %s11177_s7 = sld [smem:[#allocation65_spill]] }
 0xa80   : > { %v2815_v17 = vpop.permute.xlu0 %2814  ;;  %v2818_v18 = vpop.permute.xlu1 %2817 }
 0xa81   : > { %v2823_v19 = vcombine.low %v2674_v5, %v2818_v18  ;;  %v2824_v20 = vcombine.high %v2674_v5, %v2818_v18 }
 0xa83   : > { %v2831_v24 = vrot.slane %v2823_v19, %v10136_v34  ;;  %v2838_v25 = vrot.slane %v2824_v20, %v10136_v34 }
 0xa84   : > { %v2821_v21 = vpop.permute.xlu0 %2820 }
 0xa85   : > { %v2839_v22 = vcombine.low %v2815_v17, %v2821_v21  ;;  %v2840_v23 = vcombine.high %v2815_v17, %v2821_v21 }
 0xa87   : > { %v2847_v26 = vrot.slane %v2839_v22, %v10136_v34  ;;  %v2854_v27 = vrot.slane %v2840_v23, %v10136_v34 }
 0xa89   : > { %v2855_v28 = vcombine.low %v2831_v24, %v2847_v26  ;;  %v2856_v29 = vcombine.high %v2831_v24, %v2847_v26  ;;  %v2871_v31 = vcombine.low %v2838_v25, %v2854_v27  ;;  %v2872_v32 = vcombine.high %v2838_v25, %v2854_v27 }
 0xa8b   : > { %v2863_v33 = vrot.slane %v2855_v28, %v10138_v41  ;;  %v2870_v37 = vrot.slane %v2856_v29, %v10138_v41  ;;  %v2879_v38 = vrot.slane %v2871_v31, %v10138_v41  ;;  %v2886_v39 = vrot.slane %v2872_v32, %v10138_v41 }
 0xa8d   : > { %v2891_v40 = vcombine.low %v2863_v33, %v2870_v37  ;;  %v7913_v42 = vcombine.high %v2863_v33, %v2870_v37  ;;  %v2907_v43 = vcombine.low %v2879_v38, %v2886_v39  ;;  %v7914_v44 = vcombine.high %v2879_v38, %v2886_v39 }
 0xa8f   : > { %v2898_v35 = vrot.slane %v2891_v40, %v10136_v34  ;;  %v2906_v36 = vrot.slane %v7913_v42, %v10136_v34  ;;  %v2914_v45 = vrot.slane %v2907_v43, %v10136_v34  ;;  %v2922_v48 = vrot.slane %v7914_v44, %v10136_v34 }
 0xa91   : > { %v2923_v49 = vcombine.low %v2898_v35, %v2906_v36  ;;  %v2939_v50 = vcombine.low %v2914_v45, %v2922_v48  ;;  %v2924_v51 = vcombine.high %v2898_v35, %v2906_v36  ;;  %v2940_v52 = vcombine.high %v2914_v45, %v2922_v48 }
 0xa93   : > { %v2931_v53 = vrot.slane %v2923_v49, %v10138_v41  ;;  %v2947_v54 = vrot.slane %v2939_v50, %v10138_v41  ;;  %v2938_v46 = vrot.slane %v2924_v51, %v10138_v41  ;;  %v2954_v60 = vrot.slane %v2940_v52, %v10138_v41 }
 0xa95   : > { %v2955_v55 = vcombine.low %v2931_v53, %v2947_v54  ;;  %v2956_v56 = vcombine.high %v2931_v53, %v2947_v54  ;;  %v2957_v63 = vcombine.low %v2938_v46, %v2954_v60  ;;  %v2958_v4 = vcombine.high %v2938_v46, %v2954_v60 }
 0xa97   : > { %v2959_v58 = vpack.c.bf16 %v2955_v55, %v2955_v55  ;;  %v2960_v59 = vpack.c.bf16 %v2956_v56, %v2956_v56  ;;  %v2961_v2 = vpack.c.bf16 %v2957_v63, %v2957_v63  ;;  %v2962_v3 = vpack.c.bf16 %v2958_v4, %v2958_v4 }
 0xa99   : > { %8303 = vmatmul.mubr.msk.bf16.vlgmr.msra.gmra.mrb[32].mxu1 %vm1942_vm2, %v2959_v58  ;;  %8309 = vmatmul.mubr.msk.bf16.vlgmr.msra.gmra.mrb[28].mxu0 %vm1942_vm2, %v2960_v59 }
 0xa9a   : > { %8313 = vmatpush3.bf16.xpose.msra.mxu1 %v3651_v47  ;;  %8319 = vmatpush3.bf16.xpose.msra.mxu0 %v3697_v61 }
 0xa9b   : > { %8314 = vmatprep.mubr.msk.bf16.mxu1 %vm9527_vm0, %v9526_v0  ;;  %8320 = vmatprep.mubr.msk.bf16.mxu0 %vm9527_vm0, %v9526_v0 }
 0xa9c   : > { %8324 = vmatprep.subr.bf16.mxu1 %v9526_v0  ;;  %8330 = vmatprep.subr.bf16.mxu0 %v9526_v0 }
 0xaa1   : > { %8315 = vmatmul.mubr.msk.bf16.vlgmr.msra.gmra.mrb[36].mxu1 %vm1942_vm2, %v2961_v2  ;;  %8321 = vmatmul.mubr.msk.bf16.vlgmr.msra.gmra.mrb[32].mxu0 %vm1942_vm2, %v2962_v3 }
 0xaa2   : > { %8326 = vmatprep.mubr.msk.bf16.mxu1 %vm9527_vm0, %v9526_v0  ;;  %8332 = vmatprep.mubr.msk.bf16.mxu0 %vm9527_vm0, %v9526_v0 }
 0xaaa   : > { %v3262_v26 = vpop.permute.xlu0 %3261 }
 0xaac   : > { %v3264_v27 = vpop.permute.xlu1 %3263 }
 0xb6c   : > { %v3595_v62 = vpop.f32.mrb[32].mxu1  ;;  %v3641_v1 = vpop.f32.mrb[28].mxu0 }
 0xb6d   : > { %v8304_v5 = vpop.f32.mrb[33].mxu1  ;;  %v8310_v6 = vpop.f32.mrb[29].mxu0  ;;  %v3742_v8 = vsel %vm2509_vm4, %v3641_v1, -inf  ;;  %v3739_v9 = vsel %vm2509_vm4, %v3595_v62, -inf }
 0xb6e   : > { %3743 = vmax.xlane.f32.xlu0 %v3742_v8  ;;  %v3644_v10 = vpop.f32.mrb[30].mxu0  ;;  %3740 = vmax.xlane.f32.xlu1 %v3739_v9  ;;  %v3598_v11 = vpop.f32.mrb[34].mxu1 }
 0xb6f   : > { %v8305_v13 = vpop.f32.mrb[35].mxu1  ;;  %v8311_v14 = vpop.f32.mrb[31].mxu0 }
 0xb74   : > { %v3687_v16 = vpop.f32.mrb[36].mxu1  ;;  %v3733_v17 = vpop.f32.mrb[32].mxu0 }
 0xb75   : > { %v8316_v18 = vpop.f32.mrb[37].mxu1  ;;  %v8322_v19 = vpop.f32.mrb[33].mxu0  ;;  %v3748_v20 = vsel %vm2509_vm4, %v3733_v17, -inf  ;;  %v3745_v21 = vsel %vm2509_vm4, %v3687_v16, -inf }
 0xb76   : > { %v3736_v22 = vpop.f32.mrb[34].mxu0  ;;  %3749 = vmax.xlane.f32.xlu1 %v3748_v20  ;;  %3746 = vmax.xlane.f32.xlu0 %v3745_v21  ;;  %v3690_v23 = vpop.f32.mrb[38].mxu1 }
 0xb77   : > { %v8317_v24 = vpop.f32.mrb[39].mxu1  ;;  %v8323_v25 = vpop.f32.mrb[35].mxu0 }
 0xb87   : > { %3267 = vrot.lane.b32.xlu1 %v10375_v12, %s11080_s17 }
 0xb8c   : > { %3269 = vrot.lane.b32.xlu0 %v10377_v15, %s11080_s17  ;;  %s11178_s17 = sld [smem:[#allocation66_spill]] }
 0xbfb   : > { %v3744_v28 = vpop.xlane.xlu0 %3743  ;;  %v3741_v29 = vpop.xlane.xlu1 %3740 }
 0xbfc   : > { %v3752_v31 = vsub.f32 %v3641_v1, %v3744_v28  ;;  %v3751_v32 = vsub.f32 %v3595_v62, %v3741_v29 }
 0xbfe   : > { %v3757_v33 = vmul.f32 1.442695, %v3752_v31  ;;  %v3755_v37 = vmul.f32 1.442695, %v3751_v32 }
 0xc00   : > { %8856 = vpow2.f32 %v3757_v33 }
 0xc01   : > { %8858 = vpow2.f32 %v3755_v37 }
 0xc03   : > { %v3747_v43 = vpop.xlane.xlu0 %3746  ;;  %v3750_v44 = vpop.xlane.xlu1 %3749 }
 0xc04   : > { %v3753_v35 = vsub.f32 %v3687_v16, %v3747_v43  ;;  %v3754_v36 = vsub.f32 %v3733_v17, %v3750_v44 }
 0xc06   : > { %v3759_v45 = vmul.f32 1.442695, %v3753_v35  ;;  %v3761_v48 = vmul.f32 1.442695, %v3754_v36 }
 0xc07   : > { %v3268_v53 = vpop.permute.xlu1 %3267  ;;  %v3270_v54 = vpop.permute.xlu0 %3269 }
 0xc08   : > { %8860 = vpow2.f32 %v3759_v45  ;;  %v3279_v58 = vcombine.low %v10375_v12, %v3268_v53  ;;  %v3280_v59 = vcombine.high %v10375_v12, %v3268_v53  ;;  %v3347_v46 = vcombine.low %v10377_v15, %v3270_v54 }
 0xc09   : > { %8862 = vpow2.f32 %v3761_v48  ;;  %v3348_v60 = vcombine.high %v10377_v15, %v3270_v54 }
 0xc0a   : > { %v10425_v38 = vpop.eup %8856  ;;  %v3287_v62 = vrot.slane %v3279_v58, %v10136_v34  ;;  %v3294_v1 = vrot.slane %v3280_v59, %v10136_v34 }
 0xc0b   : > { %v10427_v39 = vpop.eup %8858  ;;  %v3766_v40 = vsel %vm2509_vm4, %v10425_v38, 0.0  ;;  %v3362_v8 = vrot.slane %v3348_v60, %v10136_v34 }
 0xc0c   : > { %3767 = vadd.xlane.f32.xlu1 %v3766_v40  ;;  %v3763_v42 = vsel %vm2509_vm4, %v10427_v39, 0.0 }
 0xc0d   : > { %3764 = vadd.xlane.f32.xlu0 %v3763_v42 }
 0xc12   : > { %v10437_v49 = vpop.eup %8860 }
 0xc13   : > { %v10439_v50 = vpop.eup %8862  ;;  %v3769_v51 = vsel %vm2509_vm4, %v10437_v49, 0.0 }
 0xc14   : > { %v3772_v52 = vsel %vm2509_vm4, %v10439_v50, 0.0 }
 0xc1d   : > { %3273 = vrot.lane.b32.xlu1 %v10375_v12, %s11076_s5  ;;  %v3355_v12 = vrot.slane %v3347_v46, %v10136_v34 }
 0xc23   : > { %3275 = vrot.lane.b32.xlu0 %v10377_v15, %s11076_s5  ;;  %s11176_s5 = sld [smem:[#allocation61_spill]] }
 0xc41   : > { %3770 = vadd.xlane.f32.xlu1 %v3769_v51 }
 0xc42   : > { %3773 = vadd.xlane.f32.xlu0 %v3772_v52 }
 0xc99   : > { %v3768_v55 = vpop.xlane.xlu1 %3767 }
 0xc9a   : > { %v3765_v56 = vpop.xlane.xlu0 %3764  ;;  %8864 = vrcp.f32 %v3768_v55 }
 0xc9b   : > { %8866 = vrcp.f32 %v3765_v56 }
 0xc9d   : > { %v3274_v47 = vpop.permute.xlu1 %3273 }
 0xc9e   : > { %v3295_v61 = vcombine.low %v3262_v26, %v3274_v47  ;;  %v3296_v63 = vcombine.high %v3262_v26, %v3274_v47  ;;  %v3276_v4 = vpop.permute.xlu0 %3275 }
 0xc9f   : > { %v3363_v2 = vcombine.low %v3264_v27, %v3276_v4  ;;  %v3364_v3 = vcombine.high %v3264_v27, %v3276_v4 }
 0xca0   : > { %v3303_v5 = vrot.slane %v3295_v61, %v10136_v34  ;;  %v3310_v6 = vrot.slane %v3296_v63, %v10136_v34 }
 0xca1   : > { %v3371_v15 = vrot.slane %v3363_v2, %v10136_v34  ;;  %v3378_v9 = vrot.slane %v3364_v3, %v10136_v34 }
 0xca2   : > { %v3311_v10 = vcombine.low %v3287_v62, %v3303_v5  ;;  %v3312_v11 = vcombine.high %v3287_v62, %v3303_v5  ;;  %v3327_v13 = vcombine.low %v3294_v1, %v3310_v6  ;;  %v3328_v14 = vcombine.high %v3294_v1, %v3310_v6 }
 0xca3   : > { %v3379_v16 = vcombine.low %v3355_v12, %v3371_v15  ;;  %v3380_v17 = vcombine.high %v3355_v12, %v3371_v15  ;;  %v3395_v18 = vcombine.low %v3362_v8, %v3378_v9  ;;  %v3396_v19 = vcombine.high %v3362_v8, %v3378_v9 }
 0xca4   : > { %v3319_v20 = vrot.slane %v3311_v10, %v10138_v41  ;;  %v3326_v21 = vrot.slane %v3312_v11, %v10138_v41  ;;  %v3335_v22 = vrot.slane %v3327_v13, %v10138_v41  ;;  %v3342_v23 = vrot.slane %v3328_v14, %v10138_v41  ;;  %v8865_v4 = vpop.eup %8864 }
 0xca5   : > { %v3387_v24 = vrot.slane %v3379_v16, %v10138_v41  ;;  %v3394_v25 = vrot.slane %v3380_v17, %v10138_v41  ;;  %v3403_v26 = vrot.slane %v3395_v18, %v10138_v41  ;;  %v3410_v32 = vrot.slane %v3396_v19, %v10138_v41  ;;  %v8867_v1 = vpop.eup %8866 }
 0xca6   : > { %v3415_v27 = vcombine.low %v3319_v20, %v3326_v21  ;;  %v7919_v28 = vcombine.high %v3319_v20, %v3326_v21  ;;  %v3431_v29 = vcombine.low %v3335_v22, %v3342_v23  ;;  %v7920_v31 = vcombine.high %v3335_v22, %v3342_v23 }
 0xca7   : > { %v3483_v33 = vcombine.low %v3387_v24, %v3394_v25  ;;  %v7921_v37 = vcombine.high %v3387_v24, %v3394_v25  ;;  %v3499_v45 = vcombine.low %v3403_v26, %v3410_v32  ;;  %v7922_v48 = vcombine.high %v3403_v26, %v3410_v32 }
 0xca8   : > { %v3422_v40 = vrot.slane %v3415_v27, %v10136_v34  ;;  %v3430_v42 = vrot.slane %v7919_v28, %v10136_v34  ;;  %v3438_v43 = vrot.slane %v3431_v29, %v10136_v34  ;;  %v3446_v44 = vrot.slane %v7920_v31, %v10136_v34 }
 0xca9   : > { %v3490_v35 = vrot.slane %v3483_v33, %v10136_v34  ;;  %v3498_v36 = vrot.slane %v7921_v37, %v10136_v34  ;;  %v3506_v53 = vrot.slane %v3499_v45, %v10136_v34  ;;  %v3514_v58 = vrot.slane %v7922_v48, %v10136_v34 }
 0xcaa   : > { %v3447_v51 = vcombine.low %v3422_v40, %v3430_v42  ;;  %v3448_v52 = vcombine.high %v3422_v40, %v3430_v42  ;;  %v3463_v54 = vcombine.low %v3438_v43, %v3446_v44  ;;  %v3464_v56 = vcombine.high %v3438_v43, %v3446_v44 }
 0xcab   : > { %v3515_v55 = vcombine.low %v3490_v35, %v3498_v36  ;;  %v3516_v46 = vcombine.high %v3490_v35, %v3498_v36  ;;  %v3531_v61 = vcombine.low %v3506_v53, %v3514_v58  ;;  %v3532_v63 = vcombine.high %v3506_v53, %v3514_v58 }
 0xcac   : > { %v3455_v59 = vrot.slane %v3447_v51, %v10138_v41  ;;  %v3471_v60 = vrot.slane %v3463_v54, %v10138_v41  ;;  %v3462_v2 = vrot.slane %v3448_v52, %v10138_v41  ;;  %v3478_v3 = vrot.slane %v3464_v56, %v10138_v41 }
 0xcad   : > { %v3523_v47 = vrot.slane %v3515_v55, %v10138_v41  ;;  %v3530_v62 = vrot.slane %v3516_v46, %v10138_v41  ;;  %v3539_v6 = vrot.slane %v3531_v61, %v10138_v41  ;;  %v3546_v8 = vrot.slane %v3532_v63, %v10138_v41 }
 0xcae   : > { %v3479_v5 = vcombine.low %v3455_v59, %v3471_v60  ;;  %v3480_v12 = vcombine.high %v3455_v59, %v3471_v60  ;;  %v3780_v10 = vmul.f32 %v8865_v4, %v10425_v38  ;;  %v3779_v11 = vmul.f32 %v8867_v1, %v10427_v39 }
 0xcaf   : > { %v3547_v15 = vcombine.low %v3523_v47, %v3539_v6  ;;  %v3548_v9 = vcombine.high %v3523_v47, %v3539_v6  ;;  %v3481_v13 = vcombine.low %v3462_v2, %v3478_v3  ;;  %v3482_v14 = vcombine.high %v3462_v2, %v3478_v3  ;;  %v8808_v2 = vld [vmem:[#allocation25] sm:$0xff]  }
 0xcb0   : > { %v3549_v18 = vcombine.low %v3530_v62, %v3546_v8  ;;  %v3550_v19 = vcombine.high %v3530_v62, %v3546_v8  ;;  %v3783_v20 = vpack.c.bf16 %v3779_v11, %v3779_v11  ;;  %v3784_v21 = vpack.c.bf16 %v3780_v10, %v3780_v10 }
 0xcb1   : > { %v3551_v16 = vpack.c.bf16 %v3547_v15, %v3479_v5  ;;  %v3552_v17 = vpack.c.bf16 %v3548_v9, %v3480_v12 }
 0xcb2   : > { %v3553_v22 = vpack.c.bf16 %v3549_v18, %v3481_v13  ;;  %v3554_v23 = vpack.c.bf16 %v3550_v19, %v3482_v14  ;;  %v8809_v14 = vld [vmem:[#allocation25 + $0x8] sm:$0xff]  }
 0xcb3   : > { %8325 = vmatpush3.bf16.msra.mxu1 %v3551_v16  ;;  %8331 = vmatpush3.bf16.msra.mxu0 %v3552_v17 }
 0xcb4   : > { %8336 = vmatprep.subr.bf16.mxu1 %v9526_v0  ;;  %8342 = vmatprep.subr.bf16.mxu0 %v9526_v0 }
 0xcb6   : > { %8327 = vmatmul.mubr.msk.bf16.vlgmr.msra.gmra.mrb[40].mxu1 %vm2509_vm4, %v3783_v20  ;;  %8333 = vmatmul.mubr.msk.bf16.vlgmr.msra.gmra.mrb[36].mxu0 %vm2509_vm4, %v3784_v21 }
 0xcb7   : > { %8337 = vmatpush3.bf16.msra.mxu1 %v3553_v22  ;;  %8343 = vmatpush3.bf16.msra.mxu0 %v3554_v23 }
 0xcb8   : > { %8338 = vmatprep.mubr.msk.bf16.mxu1 %vm9527_vm0, %v9526_v0  ;;  %8344 = vmatprep.mubr.msk.bf16.mxu0 %vm9527_vm0, %v9526_v0 }
 0xcb9   : > { %8348 = vmatprep.subr.bf16.mxu1 %v9526_v0  ;;  %8356 = vmatprep.subr.bf16.mxu0 %v9526_v0 }
 0xcce   : > { %v3771_v38 = vpop.xlane.xlu1 %3770 }
 0xccf   : > { %8868 = vrcp.f32 %v3771_v38  ;;  %v3774_v39 = vpop.xlane.xlu0 %3773 }
 0xcd0   : > { %8870 = vrcp.f32 %v3774_v39 }
 0xcd9   : > { %v8869_v24 = vpop.eup %8868 }
 0xcda   : > { %v8871_v25 = vpop.eup %8870  ;;  %v3781_v26 = vmul.f32 %v8869_v24, %v10437_v49 }
 0xcdb   : > { %v3782_v27 = vmul.f32 %v8871_v25, %v10439_v50 }
 0xcdc   : > { %v3785_v28 = vpack.c.bf16 %v3781_v26, %v3781_v26 }
 0xcdd   : > { %v3786_v29 = vpack.c.bf16 %v3782_v27, %v3782_v27 }
 0xcde   : > { %8339 = vmatmul.mubr.msk.bf16.vlgmr.msra.gmra.mrb[44].mxu1 %vm2509_vm4, %v3785_v28 }
 0xcdf   : > { %8345 = vmatmul.mubr.msk.bf16.vlgmr.msra.gmra.mrb[40].mxu0 %vm2509_vm4, %v3786_v29  ;;  %8352 = vmatprep.mubr.msk.bf16.mxu1 %vm9527_vm0, %v9526_v0 }
 0xce0   : > { %8360 = vmatprep.mubr.msk.bf16.mxu0 %vm9527_vm0, %v9526_v0  ;;  %8349 = vmatpush3.bf16.msra.mxu1 %v8808_v2 }
 0xce1   : > { %8350 = vmatprep.subr.bf16.mxu1 %v9526_v0 }
 0xce4   : > { %8351 = vmatpush3.bf16.msra.mxu1 %v8809_v14 }
 0xce5   : > { %8364 = vmatprep.subr.bf16.mxu1 %v9526_v0 }
 0xd89   : > { %v3824_v31 = vpop.f32.mrb[40].mxu1  ;;  %v3867_v32 = vpop.f32.mrb[36].mxu0 }
 0xd8a   : > { %v8328_v33 = vpop.f32.mrb[41].mxu1  ;;  %v8334_v37 = vpop.f32.mrb[37].mxu0 }
 0xd8b   : > { %v3827_v40 = vpop.f32.mrb[42].mxu1  ;;  %v3870_v49 = vpop.f32.mrb[38].mxu0  ;;  %v7933_v37 = vld [vmem:[%s11172_s23] ss:$0 sm:$0xff] }
 0xd8c   : > { %v8329_v42 = vpop.f32.mrb[43].mxu1  ;;  %v8335_v50 = vpop.f32.mrb[39].mxu0 }
 0xdb1   : > { %v3910_v43 = vpop.f32.mrb[44].mxu1 }
 0xdb2   : > { %v3959_v44 = vcombine.low %v3824_v31, %v3910_v43  ;;  %v3960_v35 = vcombine.high %v3824_v31, %v3910_v43  ;;  %v3953_v36 = vpop.f32.mrb[40].mxu0  ;;  %v8340_v45 = vpop.f32.mrb[45].mxu1 }
 0xdb3   : > { %v3975_v48 = vcombine.low %v3867_v32, %v3953_v36  ;;  %v3976_v51 = vcombine.high %v3867_v32, %v3953_v36  ;;  %v8346_v52 = vpop.f32.mrb[41].mxu0  ;;  %v3913_v53 = vpop.f32.mrb[46].mxu1 }
 0xdb4   : > { %v3967_v54 = vrot.slane %v3959_v44, %v10136_v34  ;;  %v3974_v55 = vrot.slane %v3960_v35, %v10136_v34  ;;  %v3956_v56 = vpop.f32.mrb[42].mxu0  ;;  %v8341_v58 = vpop.f32.mrb[47].mxu1  ;;  %v8810_v53 = vld [vmem:[#allocation26] sm:$0xff]  }
 0xdb5   : > { %v3983_v59 = vrot.slane %v3975_v48, %v10136_v34  ;;  %v3990_v46 = vrot.slane %v3976_v51, %v10136_v34  ;;  %v8347_v60 = vpop.f32.mrb[43].mxu0  ;;  %8357 = vmatpush3.bf16.msra.mxu0 %v8810_v53 }
 0xdb6   : > { %8358 = vmatprep.subr.bf16.mxu0 %v9526_v0  ;;  %v7937_v60 = vld [vmem:[%s11177_s7] ss:$0 sm:$0xff] }
 0xdb7   : > { %v3991_v47 = vcombine.low %v3967_v54, %v3983_v59  ;;  %v3992_v61 = vcombine.high %v3967_v54, %v3983_v59  ;;  %v4007_v63 = vcombine.low %v3974_v55, %v3990_v46  ;;  %v4008_v4 = vcombine.high %v3974_v55, %v3990_v46  ;;  %v8811_v54 = vld [vmem:[#allocation26 + $0x8] sm:$0xff]   ;;  %v8813_v55 = vld [vmem:[%s11176_s5 + $0x8] sm:$0xff]  }
 0xdb9   : > { %v3999_v3 = vrot.slane %v3991_v47, %v10138_v41  ;;  %v4006_v62 = vrot.slane %v3992_v61, %v10138_v41  ;;  %v4015_v1 = vrot.slane %v4007_v63, %v10138_v41  ;;  %v4022_v5 = vrot.slane %v4008_v4, %v10138_v41  ;;  %8359 = vmatpush3.bf16.msra.mxu0 %v8811_v54  ;;  %v7938_v61 = vld [vmem:[%s11178_s17] ss:$0 sm:$0xff] }
 0xdba   : > { %8376 = vmatprep.subr.bf16.mxu0 %v9526_v0 }
 0xdbb   : > { %v4027_v6 = vcombine.low %v3999_v3, %v4006_v62  ;;  %v7931_v12 = vcombine.high %v3999_v3, %v4006_v62  ;;  %v4043_v8 = vcombine.low %v4015_v1, %v4022_v5  ;;  %v7932_v15 = vcombine.high %v4015_v1, %v4022_v5  ;;  %v8814_v3 = vld [vmem:[%s11176_s5 + $0x10] sm:$0xff]   ;;  %v8815_v62 = vld [vmem:[%s11176_s5 + $0x18] sm:$0xff]   ;;  %v7939_v1 = vld [vmem:[%s11179_s10] ss:$0 sm:$0xff] }
 0xdbd   : > { %v4034_v9 = vrot.slane %v4027_v6, %v10136_v34  ;;  %v4042_v10 = vrot.slane %v7931_v12, %v10136_v34  ;;  %v4050_v11 = vrot.slane %v4043_v8, %v10136_v34  ;;  %v4058_v13 = vrot.slane %v7932_v15, %v10136_v34 }
 0xdbf   : > { %v4060_v16 = vcombine.high %v4034_v9, %v4042_v10  ;;  %v4076_v17 = vcombine.high %v4050_v11, %v4058_v13  ;;  %v4059_v18 = vcombine.low %v4034_v9, %v4042_v10  ;;  %v4075_v19 = vcombine.low %v4050_v11, %v4058_v13  ;;  %v7943_v11 = vld [vmem:[%s11180_s20] ss:$0 sm:$0xff] }
 0xdc1   : > { %v4074_v20 = vrot.slane %v4060_v16, %v10138_v41  ;;  %v4090_v21 = vrot.slane %v4076_v17, %v10138_v41  ;;  %v4067_v22 = vrot.slane %v4059_v18, %v10138_v41  ;;  %v4083_v23 = vrot.slane %v4075_v19, %v10138_v41 }
 0xdc3   : > { %v4093_v38 = vcombine.low %v4074_v20, %v4090_v21  ;;  %v4092_v39 = vcombine.high %v4067_v22, %v4083_v23  ;;  %v4094_v24 = vcombine.high %v4074_v20, %v4090_v21  ;;  %v4091_v25 = vcombine.low %v4067_v22, %v4083_v23 }
 0xdc5   : > { %4100 = vrot.lane.b32.xlu1 %v4093_v38, %s11173_s8  ;;  %4096 = vrot.lane.b32.xlu0 %v4092_v39, %s11174_s12 }
 0xdc9   : > { %4104 = vrot.lane.b32.xlu1 %v4094_v24, %s11175_s4  ;;  %v8816_v24 = vld [vmem:[#allocation8 + $0x10] sm:$0xff]  }
 0xe37   : > { %v4101_v26 = vpop.permute.xlu1 %4100  ;;  %v4097_v27 = vpop.permute.xlu0 %4096 }
 0xe38   : > { %v4107_v28 = vsel %vm1942_vm2, %v4091_v25, %v4097_v27  ;;  %v8817_v25 = vld [vmem:[%s11166_s26 + $0x10] sm:$0xff]   ;;  %v8819_v27 = vld [vmem:[%s11166_s26 + $0x18] sm:$0xff]   ;;  %s11183_s26 = smov 120  }
 0xe39   : > { %v4108_v31 = vsel %vm2509_vm4, %v4107_v28, %v4101_v26  ;;  %v8818_v26 = vld [vmem:[#allocation8 + $0x18] sm:$0xff]  }
 0xe3b   : > { %v4105_v29 = vpop.permute.xlu1 %4104 }
 0xe3c   : > { %v4109_v32 = vsel %vm2511_vm5, %v4108_v31, %v4105_v29 }
 0xe3d   : > { %v4110_v33 = vpack.c.bf16 %v4109_v32, %v4109_v32 }
 0xe3f   : > { %8353 = vmatmul.mubr.msk.bf16.vlgmr.msra.gmra.mrb[48].mxu1 %vm1318_vm1, %v4110_v33  ;;  %v7949_v33 = vld [vmem:[%s11181_s24] ss:$0 sm:$0xff] }
 0xe40   : > { %8372 = vmatprep.mubr.msk.bf16.mxu1 %vm9527_vm0, %v9526_v0 }
 0xf12   : > { %v4171_v40 = vpop.f32.mrb[48].mxu1 }
 0xf13   : > { %v4172_v49 = vadd.f32 %v7933_v37, %v4171_v40  ;;  %v8354_v42 = vpop.f32.mrb[49].mxu1  ;;  %v7950_v40 = vld [vmem:[%s9690_s21] ss:$0 sm:$0xff] }
 0xf14   : > { %v4174_v50 = vpop.f32.mrb[50].mxu1 }
 0xf15   : > { %v8355_v43 = vpop.f32.mrb[51].mxu1  ;;  %v4177_v44 = vadd.f32 %v4172_v49, %v10315_v30  ;;  %v8812_v30 = vld [vmem:[%s11176_s5] sm:$0xff]  }
 0xf16   : > { %8365 = vmatpush3.bf16.msra.mxu1 %v8812_v30  ;;  %v10567_v43 = vld [vmem:[%s10061_s15] sm:$0xff]  ;;  %s11182_s15 = smov 112  }
 0xf17   : > { %v4180_v35 = vsel %vm1318_vm1, %v4177_v44, 0.0  ;;  %8366 = vmatprep.subr.bf16.mxu1 %v9526_v0 }
 0xf18   : > { %4181 = vadd.xlane.f32.xlu0 %v4180_v35  ;;  %v8820_v35 = vld [vmem:[#allocation7 + $0x10] sm:$0xff]  }
 0xf1a   : > { %8367 = vmatpush3.bf16.msra.mxu1 %v8813_v55 }
 0xf1b   : > { %8368 = vmatprep.subr.bf16.mxu1 %v9526_v0 }
 0xf1e   : > { %8369 = vmatpush3.bf16.msra.mxu1 %v8814_v3 }
 0xf1f   : > { %8370 = vmatprep.subr.bf16.mxu1 %v9526_v0 }
 0xf22   : > { %8371 = vmatpush3.bf16.msra.mxu1 %v8815_v62 }
 0xf23   : > { %8392 = vmatprep.subr.bf16.mxu1 %v9526_v0 }
 0xfa5   : > { %v4182_v36 = vpop.xlane.xlu0 %4181 }
 0xfa6   : > { %v4183_v45 = vmul.f32 0.03125, %v4182_v36 }
 0xfa8   : > { %v4184_v48 = vsub.f32 %v4177_v44, %v4183_v45  ;;  %v8821_v45 = vld [vmem:[#allocation7 + $0x18] sm:$0xff]  }
 0xfaa   : > { %v4185_v51 = vmul.f32 %v4184_v48, %v4184_v48 }
 0xfac   : > { %v4186_v52 = vsel %vm1318_vm1, %v4185_v51, 0.0 }
 0xfad   : > { %4187 = vadd.xlane.f32.xlu1 %v4186_v52 }
0x103a   : > { %v4188_v56 = vpop.xlane.xlu1 %4187 }
0x103b   : > { %v4189_v58 = vmul.f32 0.03125, %v4188_v56 }
0x103d   : > { %v4190_v59 = vadd.f32 1e-05, %v4189_v58  ;;  %v7959_v58 = vld [vmem:[#allocation11 + $0x1] ss:$0 sm:$0xff] }
0x103f   : > { %8872 = vrsqrt.f32 %v4190_v59 }
0x1049   : > { %v8873_v46 = vpop.eup %8872 }
0x104a   : > { %v4192_v47 = vmul.f32 %v8873_v46, %v4184_v48 }
0x104c   : > { %v4199_v63 = vmul.f32 %v7937_v60, %v4192_v47  ;;  %v7955_v47 = vld [vmem:[#allocation10 + $0x1] ss:$0 sm:$0xff] }
0x104e   : > { %v4206_v4 = vadd.f32 %v7938_v61, %v4199_v63 }
0x1050   : > { %v4207_v2 = vpack.c.bf16 %v4206_v4, %v4206_v4 }
0x1052   : > { %8361 = vmatmul.mubr.msk.bf16.vlgmr.msra.gmra.mrb[44].mxu0 %vm1318_vm1, %v4207_v2 }
0x1053   : > { %8380 = vmatprep.mubr.msk.bf16.mxu0 %vm9527_vm0, %v9526_v0  ;;  %8377 = vmatpush3.bf16.msra.mxu0 %v8817_v25 }
0x1054   : > { %8378 = vmatprep.subr.bf16.mxu0 %v9526_v0 }
0x1057   : > { %8379 = vmatpush3.bf16.msra.mxu0 %v8819_v27 }
0x1058   : > { %8384 = vmatprep.subr.bf16.mxu0 %v9526_v0 }
0x1125   : > { %v4268_v5 = vpop.f32.mrb[44].mxu0 }
0x1126   : > { %v4269_v6 = vadd.f32 %v7939_v1, %v4268_v5  ;;  %v8362_v12 = vpop.f32.mrb[45].mxu0 }
0x1127   : > { %v4271_v8 = vpop.f32.mrb[46].mxu0 }
0x1128   : > { %v4274_v15 = vmax.f32 %v4269_v6, 0.0  ;;  %v8363_v9 = vpop.f32.mrb[47].mxu0 }
0x112a   : > { %v4275_v10 = vpack.c.bf16 %v4274_v15, %v4274_v15 }
0x112c   : > { %8373 = vmatmul.mubr.msk.bf16.vlgmr.msra.gmra.mrb[52].mxu1 %vm4315_vm6, %v4275_v10 }
0x112d   : > { %8396 = vmatprep.mubr.msk.bf16.mxu1 %vm9527_vm0, %v9526_v0  ;;  %8393 = vmatpush3.bf16.msra.mxu1 %v8816_v24 }
0x112e   : > { %8394 = vmatprep.subr.bf16.mxu1 %v9526_v0 }
0x1131   : > { %8395 = vmatpush3.bf16.msra.mxu1 %v8818_v26 }
0x1132   : > { %8406 = vmatprep.subr.bf16.mxu1 %v9526_v0 }
0x11ff   : > { %v4353_v13 = vpop.f32.mrb[52].mxu1 }
0x1200   : > { %v4354_v14 = vadd.f32 %v7943_v11, %v4353_v13  ;;  %v8374_v16 = vpop.f32.mrb[53].mxu1 }
0x1201   : > { %v4356_v17 = vpop.f32.mrb[54].mxu1 }
0x1202   : > { %v8375_v18 = vpop.f32.mrb[55].mxu1  ;;  %v4359_v19 = vadd.f32 %v4354_v14, %v4206_v4 }
0x1204   : > { %v4362_v20 = vsel %vm1318_vm1, %v4359_v19, 0.0 }
0x1205   : > { %4363 = vadd.xlane.f32.xlu0 %v4362_v20 }
0x1292   : > { %v4364_v21 = vpop.xlane.xlu0 %4363 }
0x1293   : > { %v4365_v22 = vmul.f32 0.03125, %v4364_v21 }
0x1295   : > { %v4366_v23 = vsub.f32 %v4359_v19, %v4365_v22 }
0x1297   : > { %v4367_v38 = vmul.f32 %v4366_v23, %v4366_v23 }
0x1299   : > { %v4368_v39 = vsel %vm1318_vm1, %v4367_v38, 0.0 }
0x129a   : > { %4369 = vadd.xlane.f32.xlu0 %v4368_v39 }
0x1327   : > { %v4370_v28 = vpop.xlane.xlu0 %4369 }
0x1328   : > { %v4371_v29 = vmul.f32 0.03125, %v4370_v28 }
0x132a   : > { %v4372_v31 = vadd.f32 1e-05, %v4371_v29 }
0x132c   : > { %8874 = vrsqrt.f32 %v4372_v31 }
0x1336   : > { %v8875_v32 = vpop.eup %8874 }
0x1337   : > { %v4374_v37 = vmul.f32 %v8875_v32, %v4366_v23 }
0x1339   : > { %v4381_v49 = vmul.f32 %v7949_v33, %v4374_v37 }
0x133b   : > { %v10562_v42 = vadd.f32 %v7950_v40, %v4381_v49 }
0x133d   : > { %v4524_v50 = vpack.c.bf16 %v10562_v42, %v10562_v42  ;;  %v4389_v44 = vadd.f32 %v10567_v43, %v10562_v42 }
0x133f   : > { %8397 = vmatmul.mubr.msk.bf16.vlgmr.msra.gmra.mrb[56].mxu1 %vm1318_vm1, %v4524_v50  ;;  %v4390_v36 = vpack.c.bf16 %v4389_v44, %v4389_v44 }
0x1340   : > { %8408 = vmatprep.mubr.msk.bf16.mxu1 %vm9527_vm0, %v9526_v0 }
0x1341   : > { %8381 = vmatmul.mubr.msk.bf16.vlgmr.msra.gmra.mrb[48].mxu0 %vm1318_vm1, %v4390_v36 }
0x1342   : > { %8385 = vmatpush3.bf16.msra.mxu0 %v8820_v35  ;;  %8388 = vmatprep.mubr.msk.bf16.mxu0 %vm9527_vm0, %v9526_v0 }
0x1343   : > { %8386 = vmatprep.subr.bf16.mxu0 %v9526_v0 }
0x1346   : > { %8387 = vmatpush3.bf16.msra.mxu0 %v8821_v45 }
0x1347   : > { %8400 = vmatprep.subr.bf16.mxu0 %v9526_v0 }
0x1349   : > { %8389 = vmatmul.mubr.msk.bf16.vlgmr.msra.gmra.mrb[52].mxu0 %vm1318_vm1, %v4390_v36 }
0x134a   : > { %8402 = vmatprep.mubr.msk.bf16.mxu0 %vm9527_vm0, %v9526_v0 }
0x1412   : > { %v10582_v48 = vpop.f32.mrb[56].mxu1 }
0x1413   : > { %v8398_v51 = vpop.f32.mrb[57].mxu1 }
0x1414   : > { %v4453_v52 = vpop.f32.mrb[48].mxu0  ;;  %v4590_v53 = vpop.f32.mrb[58].mxu1 }
0x1415   : > { %v8382_v54 = vpop.f32.mrb[49].mxu0  ;;  %v8399_v30 = vpop.f32.mrb[59].mxu1  ;;  %v4454_v4 = vadd.f32 %v7955_v47, %v4453_v52 }
0x1416   : > { %v4456_v55 = vpop.f32.mrb[50].mxu0 }
0x1417   : > { %v8383_v56 = vpop.f32.mrb[51].mxu0 }
0x141c   : > { %v4518_v59 = vpop.f32.mrb[52].mxu0 }
0x141d   : > { %v4519_v46 = vadd.f32 %v7959_v58, %v4518_v59  ;;  %v8390_v60 = vpop.f32.mrb[53].mxu0 }
0x141e   : > { %v4521_v61 = vpop.f32.mrb[54].mxu0 }
0x141f   : > { %4747 = vrot.lane.b32.xlu0 %v4519_v46, %s11182_s15  ;;  %4744 = vrot.lane.b32.xlu1 %v4519_v46, %s11183_s26  ;;  %v8391_v63 = vpop.f32.mrb[55].mxu0 }
0x1423   : > { %4597 = vrot.lane.b32.xlu0 %v4454_v4, %s11182_s15  ;;  %4750 = vrot.lane.b32.xlu1 %v4519_v46, %s11184_s27 }
0x1427   : > { %4594 = vrot.lane.b32.xlu1 %v4454_v4, %s11183_s26 }
0x142b   : > { %4600 = vrot.lane.b32.xlu1 %v4454_v4, %s11184_s27 }
0x1491   : > { %v4748_v2 = vpop.permute.xlu0 %4747  ;;  %v4745_v3 = vpop.permute.xlu1 %4744 }
0x1492   : > { %v4753_v62 = vcombine.low %v4519_v46, %v4748_v2  ;;  %v4754_v1 = vcombine.high %v4519_v46, %v4748_v2 }
0x1494   : > { %v4761_v8 = vrot.slane %v4753_v62, %v10136_v34  ;;  %v4768_v15 = vrot.slane %v4754_v1, %v10136_v34 }
0x1495   : > { %v4751_v5 = vpop.permute.xlu1 %4750  ;;  %v4598_v13 = vpop.permute.xlu0 %4597 }
0x1496   : > { %v4769_v6 = vcombine.low %v4745_v3, %v4751_v5  ;;  %v4770_v12 = vcombine.high %v4745_v3, %v4751_v5  ;;  %v4603_v23 = vcombine.low %v4454_v4, %v4598_v13  ;;  %v4604_v38 = vcombine.high %v4454_v4, %v4598_v13 }
0x1498   : > { %v4777_v9 = vrot.slane %v4769_v6, %v10136_v34  ;;  %v4784_v10 = vrot.slane %v4770_v12, %v10136_v34  ;;  %v4611_v40 = vrot.slane %v4603_v23, %v10136_v34  ;;  %v4618_v49 = vrot.slane %v4604_v38, %v10136_v34 }
0x1499   : > { %v4595_v11 = vpop.permute.xlu1 %4594 }
0x149a   : > { %v4785_v14 = vcombine.low %v4761_v8, %v4777_v9  ;;  %v4786_v16 = vcombine.high %v4761_v8, %v4777_v9  ;;  %v4801_v17 = vcombine.low %v4768_v15, %v4784_v10  ;;  %v4802_v18 = vcombine.high %v4768_v15, %v4784_v10 }
0x149c   : > { %v4793_v19 = vrot.slane %v4785_v14, %v10138_v41  ;;  %v4800_v20 = vrot.slane %v4786_v16, %v10138_v41  ;;  %v4809_v21 = vrot.slane %v4801_v17, %v10138_v41  ;;  %v4816_v22 = vrot.slane %v4802_v18, %v10138_v41 }
0x149d   : > { %v4601_v39 = vpop.permute.xlu1 %4600 }
0x149e   : > { %v4821_v24 = vcombine.low %v4793_v19, %v4800_v20  ;;  %v7969_v25 = vcombine.high %v4793_v19, %v4800_v20  ;;  %v4837_v26 = vcombine.low %v4809_v21, %v4816_v22  ;;  %v7970_v27 = vcombine.high %v4809_v21, %v4816_v22 }
0x149f   : > { %v4619_v28 = vcombine.low %v4595_v11, %v4601_v39  ;;  %v4620_v29 = vcombine.high %v4595_v11, %v4601_v39 }
0x14a0   : > { %v4828_v31 = vrot.slane %v4821_v24, %v10136_v34  ;;  %v4836_v32 = vrot.slane %v7969_v25, %v10136_v34  ;;  %v4844_v33 = vrot.slane %v4837_v26, %v10136_v34  ;;  %v4852_v37 = vrot.slane %v7970_v27, %v10136_v34 }
0x14a1   : > { %v4627_v50 = vrot.slane %v4619_v28, %v10136_v34  ;;  %v4634_v44 = vrot.slane %v4620_v29, %v10136_v34 }
0x14a2   : > { %v4853_v35 = vcombine.low %v4828_v31, %v4836_v32  ;;  %v4869_v36 = vcombine.low %v4844_v33, %v4852_v37  ;;  %v4854_v45 = vcombine.high %v4828_v31, %v4836_v32  ;;  %v4870_v51 = vcombine.high %v4844_v33, %v4852_v37 }
0x14a3   : > { %v4635_v52 = vcombine.low %v4611_v40, %v4627_v50  ;;  %v4636_v53 = vcombine.high %v4611_v40, %v4627_v50  ;;  %v4651_v54 = vcombine.low %v4618_v49, %v4634_v44  ;;  %v4652_v30 = vcombine.high %v4618_v49, %v4634_v44 }
0x14a4   : > { %v4861_v55 = vrot.slane %v4853_v35, %v10138_v41  ;;  %v4877_v56 = vrot.slane %v4869_v36, %v10138_v41  ;;  %v4868_v63 = vrot.slane %v4854_v45, %v10138_v41  ;;  %v4884_v4 = vrot.slane %v4870_v51, %v10138_v41 }
0x14a5   : > { %v4643_v58 = vrot.slane %v4635_v52, %v10138_v41  ;;  %v4650_v59 = vrot.slane %v4636_v53, %v10138_v41  ;;  %v4659_v46 = vrot.slane %v4651_v54, %v10138_v41  ;;  %v4666_v60 = vrot.slane %v4652_v30, %v10138_v41 }
0x14a6   : > { %v4885_v47 = vcombine.low %v4861_v55, %v4877_v56  ;;  %v4886_v61 = vcombine.high %v4861_v55, %v4877_v56  ;;  %v4887_v16 = vcombine.low %v4868_v63, %v4884_v4  ;;  %v4888_v17 = vcombine.high %v4868_v63, %v4884_v4  ;;  %v7963_v63 = vld [vmem:[#allocation13 + $0x1] ss:$0 sm:$0xff] }
0x14a7   : > { %v4671_v2 = vcombine.low %v4643_v58, %v4650_v59  ;;  %v7967_v3 = vcombine.high %v4643_v58, %v4650_v59  ;;  %v4687_v62 = vcombine.low %v4659_v46, %v4666_v60  ;;  %v7968_v1 = vcombine.high %v4659_v46, %v4666_v60 }
0x14a8   : > { %v4889_v5 = vpack.c.bf16 %v4885_v47, %v4885_v47  ;;  %v4890_v6 = vpack.c.bf16 %v4886_v61, %v4886_v61  ;;  %v4891_v38 = vpack.c.bf16 %v4887_v16, %v4887_v16  ;;  %v4892_v39 = vpack.c.bf16 %v4888_v17, %v4888_v17 }
0x14a9   : > { %v4678_v12 = vrot.slane %v4671_v2, %v10136_v34  ;;  %v4686_v8 = vrot.slane %v7967_v3, %v10136_v34  ;;  %v4694_v15 = vrot.slane %v4687_v62, %v10136_v34  ;;  %v4702_v9 = vrot.slane %v7968_v1, %v10136_v34 }
0x14aa   : > { %v5047_v10 = vsel %vm1942_vm2, %v4889_v5, 0  ;;  %v5093_v11 = vsel %vm1942_vm2, %v4890_v6, 0  ;;  %v5139_v28 = vsel %vm1942_vm2, %v4891_v38, 0  ;;  %v5185_v29 = vsel %vm1942_vm2, %v4892_v39, 0 }
0x14ab   : > { %v4703_v13 = vcombine.low %v4678_v12, %v4686_v8  ;;  %v4719_v14 = vcombine.low %v4694_v15, %v4702_v9  ;;  %8401 = vmatpush3.bf16.xpose.msra.mxu0 %v5047_v10  ;;  %8407 = vmatpush3.bf16.xpose.msra.mxu1 %v5093_v11  ;;  %v4704_v18 = vcombine.high %v4678_v12, %v4686_v8 }
0x14ac   : > { %8412 = vmatprep.subr.bf16.mxu0 %v9526_v0  ;;  %v4720_v19 = vcombine.high %v4694_v15, %v4702_v9  ;;  %8418 = vmatprep.subr.bf16.mxu1 %v9526_v0  ;;  %v4588_v4 = vadd.f32 %v7963_v63, %v10582_v48 }
0x14ad   : > { %v4711_v20 = vrot.slane %v4703_v13, %v10138_v41  ;;  %v4727_v21 = vrot.slane %v4719_v14, %v10138_v41  ;;  %v4718_v26 = vrot.slane %v4704_v18, %v10138_v41 }
0x14ae   : > { %v4734_v27 = vrot.slane %v4720_v19, %v10138_v41 }
0x14af   : > { %v4735_v22 = vcombine.low %v4711_v20, %v4727_v21  ;;  %v4736_v23 = vcombine.high %v4711_v20, %v4727_v21 }
0x14b0   : > { %v4737_v31 = vcombine.low %v4718_v26, %v4734_v27  ;;  %v4738_v32 = vcombine.high %v4718_v26, %v4734_v27 }
0x14b1   : > { %v4739_v24 = vpack.c.bf16 %v4735_v22, %v4735_v22  ;;  %v4740_v25 = vpack.c.bf16 %v4736_v23, %v4736_v23 }
0x14b2   : > { %v4741_v33 = vpack.c.bf16 %v4737_v31, %v4737_v31  ;;  %v4742_v37 = vpack.c.bf16 %v4738_v32, %v4738_v32 }
0x14b3   : > { %8403 = vmatmul.mubr.msk.bf16.vlgmr.msra.gmra.mrb[56].mxu0 %vm1942_vm2, %v4739_v24  ;;  %8409 = vmatmul.mubr.msk.bf16.vlgmr.msra.gmra.mrb[60].mxu1 %vm1942_vm2, %v4740_v25 }
0x14b4   : > { %8413 = vmatpush3.bf16.xpose.msra.mxu0 %v5139_v28  ;;  %8419 = vmatpush3.bf16.xpose.msra.mxu1 %v5185_v29 }
0x14b5   : > { %8414 = vmatprep.mubr.msk.bf16.mxu0 %vm9527_vm0, %v9526_v0  ;;  %8420 = vmatprep.mubr.msk.bf16.mxu1 %vm9527_vm0, %v9526_v0 }
0x14b6   : > { %8424 = vmatprep.subr.bf16.mxu0 %v9526_v0  ;;  %8430 = vmatprep.subr.bf16.mxu1 %v9526_v0 }
0x14bb   : > { %8415 = vmatmul.mubr.msk.bf16.vlgmr.msra.gmra.mrb[60].mxu0 %vm1942_vm2, %v4741_v33  ;;  %8421 = vmatmul.mubr.msk.bf16.vlgmr.msra.gmra.mrb[64].mxu1 %vm1942_vm2, %v4742_v37 }
0x14bc   : > { %8426 = vmatprep.mubr.msk.bf16.mxu0 %vm9527_vm0, %v9526_v0  ;;  %8432 = vmatprep.mubr.msk.bf16.mxu1 %vm9527_vm0, %v9526_v0 }
0x1586   : > { %v5083_v40 = vpop.f32.mrb[56].mxu0  ;;  %v5129_v49 = vpop.f32.mrb[60].mxu1 }
0x1587   : > { %v8404_v50 = vpop.f32.mrb[57].mxu0  ;;  %v8410_v44 = vpop.f32.mrb[61].mxu1  ;;  %v5227_v35 = vsel %vm1942_vm2, %v5083_v40, -inf  ;;  %v5230_v36 = vsel %vm1942_vm2, %v5129_v49, -inf }
0x1588   : > { %5228 = vmax.xlane.f32.xlu0 %v5227_v35  ;;  %v5086_v45 = vpop.f32.mrb[58].mxu0  ;;  %5231 = vmax.xlane.f32.xlu1 %v5230_v36  ;;  %v5132_v51 = vpop.f32.mrb[62].mxu1 }
0x1589   : > { %v8405_v52 = vpop.f32.mrb[59].mxu0  ;;  %v8411_v53 = vpop.f32.mrb[63].mxu1 }
0x158e   : > { %v5175_v54 = vpop.f32.mrb[60].mxu0  ;;  %v5221_v30 = vpop.f32.mrb[64].mxu1 }
0x158f   : > { %v8416_v55 = vpop.f32.mrb[61].mxu0  ;;  %v8422_v56 = vpop.f32.mrb[65].mxu1  ;;  %v5233_v58 = vsel %vm1942_vm2, %v5175_v54, -inf  ;;  %v5236_v61 = vsel %vm1942_vm2, %v5221_v30, -inf }
0x1590   : > { %5234 = vmax.xlane.f32.xlu0 %v5233_v58  ;;  %v5178_v59 = vpop.f32.mrb[62].mxu0  ;;  %v5224_v46 = vpop.f32.mrb[66].mxu1 }
0x1591   : > { %v8417_v60 = vpop.f32.mrb[63].mxu0  ;;  %v8423_v47 = vpop.f32.mrb[67].mxu1 }
0x1594   : > { %5237 = vmax.xlane.f32.xlu0 %v5236_v61 }
0x1599   : > { %4894 = vrot.lane.b32.xlu1 %v4588_v4, %s11183_s26 }
0x1615   : > { %v5229_v2 = vpop.xlane.xlu0 %5228  ;;  %v5232_v3 = vpop.xlane.xlu1 %5231 }
0x1616   : > { %v5239_v62 = vsub.f32 %v5083_v40, %v5229_v2  ;;  %v5240_v1 = vsub.f32 %v5129_v49, %v5232_v3 }
0x1618   : > { %v5243_v5 = vmul.f32 1.442695, %v5239_v62  ;;  %v5245_v6 = vmul.f32 1.442695, %v5240_v1 }
0x1619   : > { %v4895_v21 = vpop.permute.xlu1 %4894 }
0x161a   : > { %8876 = vpow2.f32 %v5243_v5 }
0x161b   : > { %8878 = vpow2.f32 %v5245_v6 }
0x161d   : > { %v5235_v9 = vpop.xlane.xlu0 %5234 }
0x161e   : > { %v5241_v11 = vsub.f32 %v5175_v54, %v5235_v9 }
0x1620   : > { %v5247_v14 = vmul.f32 1.442695, %v5241_v11 }
0x1621   : > { %v5238_v10 = vpop.xlane.xlu0 %5237 }
0x1622   : > { %v5242_v13 = vsub.f32 %v5221_v30, %v5238_v10  ;;  %8880 = vpow2.f32 %v5247_v14 }
0x1624   : > { %v10648_v12 = vpop.eup %8876  ;;  %v5249_v16 = vmul.f32 1.442695, %v5242_v13 }
0x1625   : > { %v10650_v8 = vpop.eup %8878  ;;  %v5251_v15 = vsel %vm1942_vm2, %v10648_v12, 0.0 }
0x1626   : > { %5252 = vadd.xlane.f32.xlu1 %v5251_v15  ;;  %v5254_v48 = vsel %vm1942_vm2, %v10650_v8, 0.0  ;;  %8882 = vpow2.f32 %v5249_v16 }
0x1627   : > { %5255 = vadd.xlane.f32.xlu0 %v5254_v48 }
0x162c   : > { %v10658_v17 = vpop.eup %8880 }
0x162d   : > { %v5257_v19 = vsel %vm1942_vm2, %v10658_v17, 0.0 }
0x1630   : > { %v10660_v18 = vpop.eup %8882 }
0x1631   : > { %v5260_v20 = vsel %vm1942_vm2, %v10660_v18, 0.0 }
0x1637   : > { %4900 = vrot.lane.b32.xlu1 %v4588_v4, %s11184_s27 }
0x163d   : > { %4897 = vrot.lane.b32.xlu0 %v4588_v4, %s11182_s15 }
0x165b   : > { %5258 = vadd.xlane.f32.xlu1 %v5257_v19 }
0x165c   : > { %5261 = vadd.xlane.f32.xlu0 %v5260_v20 }
0x16b3   : > { %v5253_v22 = vpop.xlane.xlu1 %5252 }
0x16b4   : > { %v5256_v23 = vpop.xlane.xlu0 %5255  ;;  %8884 = vrcp.f32 %v5253_v22 }
0x16b5   : > { %8886 = vrcp.f32 %v5256_v23 }
0x16b7   : > { %v4901_v38 = vpop.permute.xlu1 %4900 }
0x16b8   : > { %v4919_v39 = vcombine.low %v4895_v21, %v4901_v38  ;;  %v4920_v24 = vcombine.high %v4895_v21, %v4901_v38  ;;  %v4898_v25 = vpop.permute.xlu0 %4897 }
0x16b9   : > { %v4903_v26 = vcombine.low %v4588_v4, %v4898_v25  ;;  %v4904_v27 = vcombine.high %v4588_v4, %v4898_v25 }
0x16ba   : > { %v4927_v28 = vrot.slane %v4919_v39, %v10136_v34  ;;  %v4934_v29 = vrot.slane %v4920_v24, %v10136_v34 }
0x16bb   : > { %v4911_v31 = vrot.slane %v4903_v26, %v10136_v34  ;;  %v4918_v32 = vrot.slane %v4904_v27, %v10136_v34 }
0x16bd   : > { %v4935_v33 = vcombine.low %v4911_v31, %v4927_v28  ;;  %v4936_v37 = vcombine.high %v4911_v31, %v4927_v28  ;;  %v4951_v40 = vcombine.low %v4918_v32, %v4934_v29  ;;  %v4952_v49 = vcombine.high %v4918_v32, %v4934_v29 }
0x16be   : > { %v8885_v63 = vpop.eup %8884 }
0x16bf   : > { %v4943_v50 = vrot.slane %v4935_v33, %v10138_v41  ;;  %v4950_v44 = vrot.slane %v4936_v37, %v10138_v41  ;;  %v4959_v35 = vrot.slane %v4951_v40, %v10138_v41  ;;  %v4966_v36 = vrot.slane %v4952_v49, %v10138_v41  ;;  %v8887_v3 = vpop.eup %8886 }
0x16c0   : > { %v5267_v15 = vmul.f32 %v8885_v63, %v10648_v12  ;;  %v5268_v48 = vmul.f32 %v8887_v3, %v10650_v8 }
0x16c1   : > { %v4971_v45 = vcombine.low %v4943_v50, %v4950_v44  ;;  %v7971_v51 = vcombine.high %v4943_v50, %v4950_v44  ;;  %v4987_v52 = vcombine.low %v4959_v35, %v4966_v36  ;;  %v7972_v53 = vcombine.high %v4959_v35, %v4966_v36 }
0x16c2   : > { %v5271_v19 = vpack.c.bf16 %v5267_v15, %v5267_v15  ;;  %v5272_v20 = vpack.c.bf16 %v5268_v48, %v5268_v48  ;;  %v8823_v15 = vld [vmem:[%s11167_s3 + $0x18] sm:$0xff]  }
0x16c3   : > { %v4978_v54 = vrot.slane %v4971_v45, %v10136_v34  ;;  %v4986_v30 = vrot.slane %v7971_v51, %v10136_v34  ;;  %v4994_v55 = vrot.slane %v4987_v52, %v10136_v34  ;;  %v5002_v56 = vrot.slane %v7972_v53, %v10136_v34 }
0x16c5   : > { %v5003_v58 = vcombine.low %v4978_v54, %v4986_v30  ;;  %v5004_v59 = vcombine.high %v4978_v54, %v4986_v30  ;;  %v5019_v46 = vcombine.low %v4994_v55, %v5002_v56  ;;  %v5020_v60 = vcombine.high %v4994_v55, %v5002_v56 }
0x16c7   : > { %v5011_v47 = vrot.slane %v5003_v58, %v10138_v41  ;;  %v5018_v61 = vrot.slane %v5004_v59, %v10138_v41  ;;  %v5027_v4 = vrot.slane %v5019_v46, %v10138_v41  ;;  %v5034_v2 = vrot.slane %v5020_v60, %v10138_v41 }
0x16c9   : > { %v5035_v62 = vcombine.low %v5011_v47, %v5027_v4  ;;  %v5036_v1 = vcombine.high %v5011_v47, %v5027_v4  ;;  %v5037_v5 = vcombine.low %v5018_v61, %v5034_v2  ;;  %v5038_v6 = vcombine.high %v5018_v61, %v5034_v2  ;;  %v8822_v61 = vld [vmem:[%s11167_s3 + $0x10] sm:$0xff]   ;;  %s7529_s3 = scalar_lea.sflag [#allocation4], %s10048_s19 }
0x16cb   : > { %v5039_v9 = vpack.c.bf16 %v5035_v62, %v5035_v62  ;;  %v5040_v10 = vpack.c.bf16 %v5036_v1, %v5036_v1  ;;  %v5041_v14 = vpack.c.bf16 %v5037_v5, %v5037_v5  ;;  %v5042_v16 = vpack.c.bf16 %v5038_v6, %v5038_v6 }
0x16cd   : > { %v5279_v11 = vsel %vm2178_vm3, %v5039_v9, 0  ;;  %v5325_v13 = vsel %vm2178_vm3, %v5040_v10, 0  ;;  %v5371_v12 = vsel %vm2178_vm3, %v5041_v14, 0  ;;  %v5417_v8 = vsel %vm2178_vm3, %v5042_v16, 0 }
0x16ce   : > { %8425 = vmatpush3.bf16.msra.mxu0 %v5279_v11  ;;  %8431 = vmatpush3.bf16.msra.mxu1 %v5325_v13 }
0x16cf   : > { %8436 = vmatprep.subr.bf16.mxu0 %v9526_v0  ;;  %8442 = vmatprep.subr.bf16.mxu1 %v9526_v0 }
0x16d1   : > { %8427 = vmatmul.mubr.msk.bf16.vlgmr.msra.gmra.mrb[64].mxu0 %vm1942_vm2, %v5271_v19  ;;  %8433 = vmatmul.mubr.msk.bf16.vlgmr.msra.gmra.mrb[68].mxu1 %vm1942_vm2, %v5272_v20 }
0x16d2   : > { %8437 = vmatpush3.bf16.msra.mxu0 %v5371_v12  ;;  %8443 = vmatpush3.bf16.msra.mxu1 %v5417_v8 }
0x16d3   : > { %8438 = vmatprep.mubr.msk.bf16.mxu0 %vm9527_vm0, %v9526_v0  ;;  %8444 = vmatprep.mubr.msk.bf16.mxu1 %vm9527_vm0, %v9526_v0 }
0x16d4   : > { %8448 = vmatprep.subr.bf16.mxu0 %v9526_v0  ;;  %8456 = vmatprep.subr.bf16.mxu1 %v9526_v0 }
0x16e8   : > { %v5259_v21 = vpop.xlane.xlu1 %5258 }
0x16e9   : > { %8888 = vrcp.f32 %v5259_v21  ;;  %v5262_v22 = vpop.xlane.xlu0 %5261 }
0x16ea   : > { %8890 = vrcp.f32 %v5262_v22 }
0x16f3   : > { %v8889_v23 = vpop.eup %8888 }
0x16f4   : > { %v8891_v38 = vpop.eup %8890  ;;  %v5269_v39 = vmul.f32 %v8889_v23, %v10658_v17 }
0x16f5   : > { %v5270_v24 = vmul.f32 %v8891_v38, %v10660_v18 }
0x16f6   : > { %v5273_v25 = vpack.c.bf16 %v5269_v39, %v5269_v39 }
0x16f7   : > { %v5274_v26 = vpack.c.bf16 %v5270_v24, %v5270_v24 }
0x16f8   : > { %8439 = vmatmul.mubr.msk.bf16.vlgmr.msra.gmra.mrb[68].mxu0 %vm1942_vm2, %v5273_v25 }
0x16f9   : > { %8445 = vmatmul.mubr.msk.bf16.vlgmr.msra.gmra.mrb[72].mxu1 %vm1942_vm2, %v5274_v26  ;;  %8452 = vmatprep.mubr.msk.bf16.mxu0 %vm9527_vm0, %v9526_v0 }
0x16fa   : > { %8460 = vmatprep.mubr.msk.bf16.mxu1 %vm9527_vm0, %v9526_v0  ;;  %8449 = vmatpush3.bf16.msra.mxu0 %v8822_v61 }
0x16fb   : > { %8450 = vmatprep.subr.bf16.mxu0 %v9526_v0 }
0x16fe   : > { %8451 = vmatpush3.bf16.msra.mxu0 %v8823_v15 }
0x16ff   : > { %8464 = vmatprep.subr.bf16.mxu0 %v9526_v0 }
0x17a4   : > { %v5315_v27 = vpop.f32.mrb[64].mxu0  ;;  %v5361_v28 = vpop.f32.mrb[68].mxu1 }
0x17a5   : > { %v8428_v29 = vpop.f32.mrb[65].mxu0  ;;  %v8434_v31 = vpop.f32.mrb[69].mxu1 }
0x17a6   : > { %v5318_v32 = vpop.f32.mrb[66].mxu0  ;;  %v5364_v17 = vpop.f32.mrb[70].mxu1 }
0x17a7   : > { %v8429_v33 = vpop.f32.mrb[67].mxu0  ;;  %v8435_v18 = vpop.f32.mrb[71].mxu1  ;;  %v7987_v32 = vld [vmem:[#allocation14 + $0x1] ss:$0 sm:$0xff] }
0x17cb   : > { %v5407_v37 = vpop.f32.mrb[68].mxu0 }
0x17cc   : > { %v5459_v40 = vcombine.low %v5315_v27, %v5407_v37  ;;  %v5460_v49 = vcombine.high %v5315_v27, %v5407_v37  ;;  %v5453_v50 = vpop.f32.mrb[72].mxu1  ;;  %v8440_v44 = vpop.f32.mrb[69].mxu0 }
0x17cd   : > { %v5475_v35 = vcombine.low %v5361_v28, %v5453_v50  ;;  %v5476_v36 = vcombine.high %v5361_v28, %v5453_v50  ;;  %v8446_v45 = vpop.f32.mrb[73].mxu1  ;;  %v5410_v51 = vpop.f32.mrb[70].mxu0  ;;  %v8824_v44 = vld [vmem:[#allocation17 + $0x10] sm:$0xff]  }
0x17ce   : > { %v5467_v52 = vrot.slane %v5459_v40, %v10136_v34  ;;  %v5474_v53 = vrot.slane %v5460_v49, %v10136_v34  ;;  %v5456_v54 = vpop.f32.mrb[74].mxu1  ;;  %v8441_v30 = vpop.f32.mrb[71].mxu0 }
0x17cf   : > { %v5483_v55 = vrot.slane %v5475_v35, %v10136_v34  ;;  %v5490_v56 = vrot.slane %v5476_v36, %v10136_v34  ;;  %v8447_v58 = vpop.f32.mrb[75].mxu1  ;;  %v8825_v35 = vld [vmem:[#allocation17 + $0x18] sm:$0xff]   ;;  %v7999_v30 = vld [vmem:[#allocation22 + $0x1] ss:$0 sm:$0xff] }
0x17d0   : > { %v8827_v54 = vld [vmem:[#allocation16 + $0x18] sm:$0xff]  }
0x17d1   : > { %v5491_v59 = vcombine.low %v5467_v52, %v5483_v55  ;;  %v5492_v46 = vcombine.high %v5467_v52, %v5483_v55  ;;  %v5507_v60 = vcombine.low %v5474_v53, %v5490_v56  ;;  %v5508_v47 = vcombine.high %v5474_v53, %v5490_v56  ;;  %v8826_v53 = vld [vmem:[#allocation16 + $0x10] sm:$0xff]  }
0x17d2   : > { %8457 = vmatpush3.bf16.msra.mxu1 %v8826_v53 }
0x17d3   : > { %v5499_v63 = vrot.slane %v5491_v59, %v10138_v41  ;;  %v5506_v4 = vrot.slane %v5492_v46, %v10138_v41  ;;  %v5515_v2 = vrot.slane %v5507_v60, %v10138_v41  ;;  %v5522_v3 = vrot.slane %v5508_v47, %v10138_v41  ;;  %8458 = vmatprep.subr.bf16.mxu1 %v9526_v0 }
0x17d5   : > { %v5527_v62 = vcombine.low %v5499_v63, %v5506_v4  ;;  %v7981_v1 = vcombine.high %v5499_v63, %v5506_v4  ;;  %v5543_v5 = vcombine.low %v5515_v2, %v5522_v3  ;;  %v7982_v6 = vcombine.high %v5515_v2, %v5522_v3  ;;  %v7993_v4 = vld [vmem:[%s11170_s18 + $0x1] ss:$0 sm:$0xff] }
0x17d6   : > { %8459 = vmatpush3.bf16.msra.mxu1 %v8827_v54  ;;  %v7994_v3 = vld [vmem:[%s11171_s6 + $0x1] ss:$0 sm:$0xff] }
0x17d7   : > { %v5534_v48 = vrot.slane %v5527_v62, %v10136_v34  ;;  %v5542_v9 = vrot.slane %v7981_v1, %v10136_v34  ;;  %v5550_v10 = vrot.slane %v5543_v5, %v10136_v34  ;;  %v5558_v11 = vrot.slane %v7982_v6, %v10136_v34  ;;  %8472 = vmatprep.subr.bf16.mxu1 %v9526_v0  ;;  %v8828_v6 = vld [vmem:[#allocation19 + $0x10] sm:$0xff]  }
0x17d9   : > { %v5560_v13 = vcombine.high %v5534_v48, %v5542_v9  ;;  %v5576_v14 = vcombine.high %v5550_v10, %v5558_v11  ;;  %v5559_v16 = vcombine.low %v5534_v48, %v5542_v9  ;;  %v5575_v19 = vcombine.low %v5550_v10, %v5558_v11 }
0x17db   : > { %v5574_v20 = vrot.slane %v5560_v13, %v10138_v41  ;;  %v5590_v12 = vrot.slane %v5576_v14, %v10138_v41  ;;  %v5567_v8 = vrot.slane %v5559_v16, %v10138_v41  ;;  %v5583_v21 = vrot.slane %v5575_v19, %v10138_v41 }
0x17dd   : > { %v5593_v22 = vcombine.low %v5574_v20, %v5590_v12  ;;  %v5592_v23 = vcombine.high %v5567_v8, %v5583_v21  ;;  %v5594_v38 = vcombine.high %v5574_v20, %v5590_v12  ;;  %v5591_v39 = vcombine.low %v5567_v8, %v5583_v21 }
0x17df   : > { %5600 = vrot.lane.b32.xlu1 %v5593_v22, %s11173_s8  ;;  %5596 = vrot.lane.b32.xlu0 %v5592_v23, %s11174_s12 }
0x17e3   : > { %5604 = vrot.lane.b32.xlu1 %v5594_v38, %s11175_s4 }
0x1851   : > { %v5601_v24 = vpop.permute.xlu1 %5600  ;;  %v5597_v25 = vpop.permute.xlu0 %5596 }
0x1852   : > { %v5607_v26 = vsel %vm1942_vm2, %v5591_v39, %v5597_v25 }
0x1853   : > { %v5608_v28 = vsel %vm2509_vm4, %v5607_v26, %v5601_v24 }
0x1855   : > { %v5605_v27 = vpop.permute.xlu1 %5604 }
0x1856   : > { %v5609_v29 = vsel %vm2511_vm5, %v5608_v28, %v5605_v27 }
0x1857   : > { %v5610_v31 = vpack.c.bf16 %v5609_v29, %v5609_v29 }
0x1859   : > { %8453 = vmatmul.mubr.msk.bf16.vlgmr.msra.gmra.mrb[72].mxu0 %vm1318_vm1, %v5610_v31 }
0x185a   : > { %8468 = vmatprep.mubr.msk.bf16.mxu0 %vm9527_vm0, %v9526_v0  ;;  %8465 = vmatpush3.bf16.msra.mxu0 %v8824_v44 }
0x185b   : > { %8466 = vmatprep.subr.bf16.mxu0 %v9526_v0 }
0x185e   : > { %8467 = vmatpush3.bf16.msra.mxu0 %v8825_v35 }
0x185f   : > { %8480 = vmatprep.subr.bf16.mxu0 %v9526_v0 }
0x1861   : > { %8469 = vmatmul.mubr.msk.bf16.vlgmr.msra.gmra.mrb[76].mxu0 %vm1318_vm1, %v10298_v7 }
0x1862   : > { %8482 = vmatprep.mubr.msk.bf16.mxu0 %vm9527_vm0, %v9526_v0 }
0x192c   : > { %v5673_v17 = vpop.f32.mrb[72].mxu0 }
0x192d   : > { %v5674_v33 = vadd.f32 %v7987_v32, %v5673_v17  ;;  %v8454_v18 = vpop.f32.mrb[73].mxu0 }
0x192e   : > { %v5676_v37 = vpop.f32.mrb[74].mxu0 }
0x192f   : > { %v8455_v40 = vpop.f32.mrb[75].mxu0  ;;  %v5679_v49 = vadd.f32 %v5674_v33, %v10562_v42 }
0x1931   : > { %v5684_v50 = vsel %vm1318_vm1, %v5679_v49, 0.0 }
0x1932   : > { %5685 = vadd.xlane.f32.xlu0 %v5684_v50 }
0x1934   : > { %v5840_v7 = vpop.f32.mrb[76].mxu0 }
0x1935   : > { %v5841_v55 = vadd.f32 %v7999_v30, %v5840_v7  ;;  %v8470_v56 = vpop.f32.mrb[77].mxu0 }
0x1936   : > { %v5843_v58 = vpop.f32.mrb[78].mxu0 }
0x1937   : > { %v5844_v59 = vadd.f32 %v7999_v30, %v5843_v58  ;;  %v8471_v46 = vpop.f32.mrb[79].mxu0 }
0x1948   : > { %6065 = vrot.lane.b32.xlu0 %v5841_v55, %s11183_s26 }
0x194c   : > { %6071 = vrot.lane.b32.xlu0 %v5841_v55, %s11182_s15 }
0x1950   : > { %6077 = vrot.lane.b32.xlu0 %v5841_v55, %s11184_s27 }
0x19bf   : > { %v5686_v36 = vpop.xlane.xlu0 %5685 }
0x19c0   : > { %v5687_v45 = vmul.f32 0.03125, %v5686_v36 }
0x19c2   : > { %v5688_v42 = vsub.f32 %v5679_v49, %v5687_v45 }
0x19c3   : > { %v6066_v48 = vpop.permute.xlu0 %6065 }
0x19c4   : > { %v5689_v51 = vmul.f32 %v5688_v42, %v5688_v42 }
0x19c6   : > { %v5690_v52 = vsel %vm1318_vm1, %v5689_v51, 0.0 }
0x19c7   : > { %5691 = vadd.xlane.f32.xlu1 %v5690_v52  ;;  %v6072_v10 = vpop.permute.xlu0 %6071 }
0x19c8   : > { %v6083_v16 = vcombine.low %v5841_v55, %v6072_v10  ;;  %v6084_v19 = vcombine.high %v5841_v55, %v6072_v10 }
0x19ca   : > { %v6091_v23 = vrot.slane %v6083_v16, %v10136_v34  ;;  %v6098_v38 = vrot.slane %v6084_v19, %v10136_v34 }
0x19cb   : > { %v6078_v13 = vpop.permute.xlu0 %6077 }
0x19cc   : > { %v6099_v20 = vcombine.low %v6066_v48, %v6078_v13 }
0x19ce   : > { %v6107_v39 = vrot.slane %v6099_v20, %v10136_v34 }
0x19d0   : > { %v6115_v29 = vcombine.low %v6091_v23, %v6107_v39  ;;  %v6116_v31 = vcombine.high %v6091_v23, %v6107_v39 }
0x19d2   : > { %v6123_v49 = vrot.slane %v6115_v29, %v10138_v41  ;;  %v6130_v50 = vrot.slane %v6116_v31, %v10138_v41 }
0x19d4   : > { %v6219_v52 = vcombine.low %v6123_v49, %v6130_v50  ;;  %v8009_v53 = vcombine.high %v6123_v49, %v6130_v50  ;;  %v8003_v50 = vld [vmem:[#allocation23 + $0x1] ss:$0 sm:$0xff] }
0x19d6   : > { %v6234_v46 = vrot.slane %v8009_v53, %v10136_v34 }
0x19d8   : > { %6067 = vrot.lane.b32.xlu1 %v5844_v59, %s11183_s26 }
0x19dc   : > { %6073 = vrot.lane.b32.xlu1 %v5844_v59, %s11182_s15 }
0x19e0   : > { %6079 = vrot.lane.b32.xlu1 %v5844_v59, %s11184_s27 }
0x1a54   : > { %v5692_v60 = vpop.xlane.xlu1 %5691 }
0x1a55   : > { %v5693_v47 = vmul.f32 0.03125, %v5692_v60 }
0x1a57   : > { %v5694_v61 = vadd.f32 1e-05, %v5693_v47 }
0x1a58   : > { %v6068_v9 = vpop.permute.xlu1 %6067 }
0x1a59   : > { %8892 = vrsqrt.f32 %v5694_v61 }
0x1a5c   : > { %v6074_v11 = vpop.permute.xlu1 %6073 }
0x1a5d   : > { %v6151_v12 = vcombine.low %v5844_v59, %v6074_v11  ;;  %v6152_v8 = vcombine.high %v5844_v59, %v6074_v11  ;;  %v6226_v59 = vrot.slane %v6219_v52, %v10136_v34 }
0x1a5f   : > { %v6159_v25 = vrot.slane %v6151_v12, %v10136_v34  ;;  %v6166_v26 = vrot.slane %v6152_v8, %v10136_v34 }
0x1a60   : > { %v6080_v14 = vpop.permute.xlu1 %6079 }
0x1a61   : > { %v6167_v21 = vcombine.low %v6068_v9, %v6080_v14  ;;  %v6168_v22 = vcombine.high %v6068_v9, %v6080_v14 }
0x1a63   : > { %v8893_v63 = vpop.eup %8892  ;;  %v6175_v27 = vrot.slane %v6167_v21, %v10136_v34  ;;  %v6182_v28 = vrot.slane %v6168_v22, %v10136_v34 }
0x1a64   : > { %v5696_v2 = vmul.f32 %v8893_v63, %v5688_v42 }
0x1a65   : > { %v6183_v33 = vcombine.low %v6159_v25, %v6175_v27  ;;  %v6184_v18 = vcombine.high %v6159_v25, %v6175_v27  ;;  %v6199_v37 = vcombine.low %v6166_v26, %v6182_v28  ;;  %v6200_v40 = vcombine.high %v6166_v26, %v6182_v28 }
0x1a66   : > { %v5703_v62 = vmul.f32 %v7993_v4, %v5696_v2 }
0x1a67   : > { %v6191_v36 = vrot.slane %v6183_v33, %v10138_v41  ;;  %v6198_v45 = vrot.slane %v6184_v18, %v10138_v41  ;;  %v6207_v42 = vrot.slane %v6199_v37, %v10138_v41  ;;  %v6214_v51 = vrot.slane %v6200_v40, %v10138_v41 }
0x1a68   : > { %v10754_v1 = vadd.f32 %v7994_v3, %v5703_v62  ;;  %v8829_v3 = vld [vmem:[#allocation19 + $0x18] sm:$0xff]   ;;  %v6251_v62 = vcombine.low %v6226_v59, %v6234_v46 }
0x1a69   : > { %v6287_v7 = vcombine.low %v6191_v36, %v6198_v45  ;;  %v8011_v55 = vcombine.high %v6191_v36, %v6198_v45  ;;  %v6303_v56 = vcombine.low %v6207_v42, %v6214_v51  ;;  %v8012_v58 = vcombine.high %v6207_v42, %v6214_v51 }
0x1a6a   : > { %v5711_v5 = vadd.f32 %v10567_v43, %v10754_v1  ;;  %v6100_v43 = vcombine.high %v6066_v48, %v6078_v13  ;;  %v6252_v48 = vcombine.high %v6226_v59, %v6234_v46  ;;  %v6259_v13 = vrot.slane %v6251_v62, %v10138_v41 }
0x1a6b   : > { %v6294_v61 = vrot.slane %v6287_v7, %v10136_v34  ;;  %v6302_v63 = vrot.slane %v8011_v55, %v10136_v34  ;;  %v6310_v4 = vrot.slane %v6303_v56, %v10136_v34  ;;  %v6318_v2 = vrot.slane %v8012_v58, %v10136_v34 }
0x1a6c   : > { %v5712_v15 = vpack.c.bf16 %v5711_v5, %v5711_v5  ;;  %v6114_v24 = vrot.slane %v6100_v43, %v10136_v34  ;;  %v6266_v20 = vrot.slane %v6252_v48, %v10138_v41 }
0x1a6d   : > { %v6320_v10 = vcombine.high %v6294_v61, %v6302_v63  ;;  %v6336_v11 = vcombine.high %v6310_v4, %v6318_v2 }
0x1a6e   : > { %8461 = vmatmul.mubr.msk.bf16.vlgmr.msra.gmra.mrb[76].mxu1 %vm1318_vm1, %v5712_v15  ;;  %v6131_v32 = vcombine.low %v6098_v38, %v6114_v24  ;;  %v6132_v17 = vcombine.high %v6098_v38, %v6114_v24  ;;  %v6335_v15 = vcombine.low %v6310_v4, %v6318_v2 }
0x1a6f   : > { %8473 = vmatpush3.bf16.msra.mxu1 %v8828_v6  ;;  %8476 = vmatprep.mubr.msk.bf16.mxu1 %vm9527_vm0, %v9526_v0  ;;  %v6319_v6 = vcombine.low %v6294_v61, %v6302_v63  ;;  %v6334_v12 = vrot.slane %v6320_v10, %v10138_v41  ;;  %v6350_v8 = vrot.slane %v6336_v11, %v10138_v41 }
0x1a70   : > { %8474 = vmatprep.subr.bf16.mxu1 %v9526_v0  ;;  %v6139_v44 = vrot.slane %v6131_v32, %v10138_v41  ;;  %v6146_v35 = vrot.slane %v6132_v17, %v10138_v41  ;;  %v6343_v19 = vrot.slane %v6335_v15, %v10138_v41  ;;  %v7995_v17 = vld [vmem:[#allocation20 + $0x1] ss:$0 sm:$0xff] }
0x1a71   : > { %v6327_v16 = vrot.slane %v6319_v6, %v10138_v41  ;;  %v6353_v24 = vcombine.low %v6334_v12, %v6350_v8  ;;  %v6354_v26 = vcombine.high %v6334_v12, %v6350_v8 }
0x1a72   : > { %v6235_v54 = vcombine.low %v6139_v44, %v6146_v35  ;;  %v8010_v30 = vcombine.high %v6139_v44, %v6146_v35 }
0x1a73   : > { %8475 = vmatpush3.bf16.msra.mxu1 %v8829_v3  ;;  %v6351_v22 = vcombine.low %v6327_v16, %v6343_v19  ;;  %v6352_v38 = vcombine.high %v6327_v16, %v6343_v19 }
0x1a74   : > { %v6242_v60 = vrot.slane %v6235_v54, %v10136_v34  ;;  %v6250_v47 = vrot.slane %v8010_v30, %v10136_v34  ;;  %8486 = vmatprep.subr.bf16.mxu1 %v9526_v0 }
0x1a76   : > { %v6267_v5 = vcombine.low %v6242_v60, %v6250_v47  ;;  %v6268_v9 = vcombine.high %v6242_v60, %v6250_v47  ;;  %8477 = vmatmul.mubr.msk.bf16.vlgmr.msra.gmra.mrb[80].mxu1 %vm1318_vm1, %v10358_v57 }
0x1a77   : > { %8488 = vmatprep.mubr.msk.bf16.mxu1 %vm9527_vm0, %v9526_v0 }
0x1a78   : > { %v6275_v14 = vrot.slane %v6267_v5, %v10138_v41  ;;  %v6282_v43 = vrot.slane %v6268_v9, %v10138_v41 }
0x1a7a   : > { %v6283_v21 = vcombine.low %v6259_v13, %v6275_v14  ;;  %v6284_v23 = vcombine.high %v6259_v13, %v6275_v14  ;;  %v6285_v39 = vcombine.low %v6266_v20, %v6282_v43  ;;  %v6286_v25 = vcombine.high %v6266_v20, %v6282_v43 }
0x1a7c   : > { %v6355_v57 = vpack.c.bf16 %v6351_v22, %v6283_v21  ;;  %v6356_v27 = vpack.c.bf16 %v6352_v38, %v6284_v23  ;;  %v10799_v28 = vpack.c.bf16 %v6353_v24, %v6285_v39  ;;  %v10801_v29 = vpack.c.bf16 %v6354_v26, %v6286_v25 }
0x1a7e   : > { %v6659_v31 = vsel %vm1942_vm2, %v6355_v57, 0  ;;  %v6705_v32 = vsel %vm1942_vm2, %v6356_v27, 0  ;;  %v6751_v25 = vsel %vm1942_vm2, %v10799_v28, 0  ;;  %v6797_v26 = vsel %vm1942_vm2, %v10801_v29, 0 }
0x1a7f   : > { %8481 = vmatpush3.bf16.xpose.msra.mxu0 %v6659_v31  ;;  %8487 = vmatpush3.bf16.xpose.msra.mxu1 %v6705_v32 }
0x1a80   : > { %8492 = vmatprep.subr.bf16.mxu0 %v9526_v0  ;;  %8498 = vmatprep.subr.bf16.mxu1 %v9526_v0 }
0x1b41   : > { %v5775_v33 = vpop.f32.mrb[76].mxu1 }
0x1b42   : > { %v5776_v18 = vadd.f32 %v7995_v17, %v5775_v33  ;;  %v8462_v37 = vpop.f32.mrb[77].mxu1 }
0x1b43   : > { %v5778_v40 = vpop.f32.mrb[78].mxu1 }
0x1b44   : > { %5917 = vrot.lane.b32.xlu1 %v5776_v18, %s11182_s15  ;;  %5914 = vrot.lane.b32.xlu0 %v5776_v18, %s11183_s26  ;;  %v8463_v49 = vpop.f32.mrb[79].mxu1 }
0x1b48   : > { %5920 = vrot.lane.b32.xlu0 %v5776_v18, %s11184_s27 }
0x1b49   : > { %v5906_v44 = vpop.f32.mrb[80].mxu1 }
0x1b4a   : > { %v10810_v35 = vadd.f32 %v8003_v50, %v5906_v44  ;;  %v8478_v36 = vpop.f32.mrb[81].mxu1 }
0x1b4b   : > { %v5909_v45 = vpop.f32.mrb[82].mxu1 }
0x1b4c   : > { %v10812_v42 = vadd.f32 %v8003_v50, %v5909_v45  ;;  %v8479_v51 = vpop.f32.mrb[83].mxu1  ;;  %6361 = vrot.lane.b32.xlu0 %v10810_v35, %s11183_s26 }
0x1b4e   : > { %6363 = vrot.lane.b32.xlu1 %v10812_v42, %s11183_s26  ;;  %s11186_s26 = sld [smem:[#allocation69_spill]] }
0x1bb6   : > { %v5918_v52 = vpop.permute.xlu1 %5917  ;;  %v5915_v53 = vpop.permute.xlu0 %5914 }
0x1bb7   : > { %v5923_v54 = vcombine.low %v5776_v18, %v5918_v52  ;;  %v5924_v30 = vcombine.high %v5776_v18, %v5918_v52 }
0x1bb9   : > { %v5931_v58 = vrot.slane %v5923_v54, %v10136_v34  ;;  %v5938_v59 = vrot.slane %v5924_v30, %v10136_v34 }
0x1bba   : > { %v5921_v7 = vpop.permute.xlu0 %5920 }
0x1bbb   : > { %v5939_v55 = vcombine.low %v5915_v53, %v5921_v7  ;;  %v5940_v56 = vcombine.high %v5915_v53, %v5921_v7 }
0x1bbd   : > { %v5947_v46 = vrot.slane %v5939_v55, %v10136_v34  ;;  %v5954_v60 = vrot.slane %v5940_v56, %v10136_v34 }
0x1bbf   : > { %v5955_v47 = vcombine.low %v5931_v58, %v5947_v46  ;;  %v5956_v61 = vcombine.high %v5931_v58, %v5947_v46  ;;  %v5971_v63 = vcombine.low %v5938_v59, %v5954_v60  ;;  %v5972_v4 = vcombine.high %v5938_v59, %v5954_v60  ;;  %v6362_v58 = vpop.permute.xlu0 %6361 }
0x1bc0   : > { %v6364_v59 = vpop.permute.xlu1 %6363 }
0x1bc1   : > { %v5963_v2 = vrot.slane %v5955_v47, %v10138_v41  ;;  %v5970_v3 = vrot.slane %v5956_v61, %v10138_v41  ;;  %v5979_v62 = vrot.slane %v5971_v63, %v10138_v41  ;;  %v5986_v5 = vrot.slane %v5972_v4, %v10138_v41 }
0x1bc3   : > { %v5991_v6 = vcombine.low %v5963_v2, %v5970_v3  ;;  %v8007_v15 = vcombine.high %v5963_v2, %v5970_v3  ;;  %v6007_v48 = vcombine.low %v5979_v62, %v5986_v5  ;;  %v8008_v9 = vcombine.high %v5979_v62, %v5986_v5 }
0x1bc5   : > { %v5998_v10 = vrot.slane %v5991_v6, %v10136_v34  ;;  %v6006_v11 = vrot.slane %v8007_v15, %v10136_v34  ;;  %v6014_v13 = vrot.slane %v6007_v48, %v10136_v34  ;;  %v6022_v14 = vrot.slane %v8008_v9, %v10136_v34 }
0x1bc7   : > { %v6023_v16 = vcombine.low %v5998_v10, %v6006_v11  ;;  %v6039_v19 = vcombine.low %v6014_v13, %v6022_v14  ;;  %v6024_v20 = vcombine.high %v5998_v10, %v6006_v11  ;;  %v6040_v43 = vcombine.high %v6014_v13, %v6022_v14 }
0x1bc9   : > { %v6031_v12 = vrot.slane %v6023_v16, %v10138_v41  ;;  %v6047_v8 = vrot.slane %v6039_v19, %v10138_v41  ;;  %v6038_v39 = vrot.slane %v6024_v20, %v10138_v41  ;;  %v6054_v24 = vrot.slane %v6040_v43, %v10138_v41 }
0x1bcb   : > { %v6055_v21 = vcombine.low %v6031_v12, %v6047_v8  ;;  %v6056_v22 = vcombine.high %v6031_v12, %v6047_v8  ;;  %v6057_v57 = vcombine.low %v6038_v39, %v6054_v24  ;;  %v6058_v27 = vcombine.high %v6038_v39, %v6054_v24 }
0x1bcd   : > { %v6059_v23 = vpack.c.bf16 %v6055_v21, %v6055_v21  ;;  %v6060_v38 = vpack.c.bf16 %v6056_v22, %v6056_v22  ;;  %v6061_v31 = vpack.c.bf16 %v6057_v57, %v6057_v57  ;;  %v6062_v32 = vpack.c.bf16 %v6058_v27, %v6058_v27 }
0x1bcf   : > { %8483 = vmatmul.mubr.msk.bf16.vlgmr.msra.gmra.mrb[80].mxu0 %vm1942_vm2, %v6059_v23  ;;  %8489 = vmatmul.mubr.msk.bf16.vlgmr.msra.gmra.mrb[84].mxu1 %vm1942_vm2, %v6060_v38 }
0x1bd0   : > { %8493 = vmatpush3.bf16.xpose.msra.mxu0 %v6751_v25  ;;  %8499 = vmatpush3.bf16.xpose.msra.mxu1 %v6797_v26 }
0x1bd1   : > { %8494 = vmatprep.mubr.msk.bf16.mxu0 %vm9527_vm0, %v9526_v0  ;;  %8500 = vmatprep.mubr.msk.bf16.mxu1 %vm9527_vm0, %v9526_v0 }
0x1bd2   : > { %8504 = vmatprep.subr.bf16.mxu0 %v9526_v0  ;;  %8510 = vmatprep.subr.bf16.mxu1 %v9526_v0 }
0x1bd7   : > { %8495 = vmatmul.mubr.msk.bf16.vlgmr.msra.gmra.mrb[84].mxu0 %vm1942_vm2, %v6061_v31  ;;  %8501 = vmatmul.mubr.msk.bf16.vlgmr.msra.gmra.mrb[88].mxu1 %vm1942_vm2, %v6062_v32 }
0x1bd8   : > { %8506 = vmatprep.mubr.msk.bf16.mxu0 %vm9527_vm0, %v9526_v0  ;;  %8512 = vmatprep.mubr.msk.bf16.mxu1 %vm9527_vm0, %v9526_v0 }
0x1ca2   : > { %v6695_v28 = vpop.f32.mrb[80].mxu0  ;;  %v6741_v29 = vpop.f32.mrb[84].mxu1 }
0x1ca3   : > { %v8484_v17 = vpop.f32.mrb[81].mxu0  ;;  %v8490_v33 = vpop.f32.mrb[85].mxu1  ;;  %v6839_v18 = vsel %vm2509_vm4, %v6695_v28, -inf  ;;  %v6842_v37 = vsel %vm2509_vm4, %v6741_v29, -inf }
0x1ca4   : > { %v6698_v40 = vpop.f32.mrb[82].mxu0  ;;  %6840 = vmax.xlane.f32.xlu1 %v6839_v18  ;;  %6843 = vmax.xlane.f32.xlu0 %v6842_v37  ;;  %v6744_v49 = vpop.f32.mrb[86].mxu1 }
0x1ca5   : > { %v8485_v50 = vpop.f32.mrb[83].mxu0  ;;  %v8491_v44 = vpop.f32.mrb[87].mxu1 }
0x1caa   : > { %v6787_v36 = vpop.f32.mrb[84].mxu0  ;;  %v6833_v45 = vpop.f32.mrb[88].mxu1 }
0x1cab   : > { %v8496_v51 = vpop.f32.mrb[85].mxu0  ;;  %v8502_v52 = vpop.f32.mrb[89].mxu1  ;;  %v6845_v53 = vsel %vm2509_vm4, %v6787_v36, -inf  ;;  %v6848_v54 = vsel %vm2509_vm4, %v6833_v45, -inf }
0x1cac   : > { %v6790_v30 = vpop.f32.mrb[86].mxu0  ;;  %6846 = vmax.xlane.f32.xlu0 %v6845_v53  ;;  %6849 = vmax.xlane.f32.xlu1 %v6848_v54  ;;  %v6836_v7 = vpop.f32.mrb[90].mxu1 }
0x1cad   : > { %v8497_v55 = vpop.f32.mrb[87].mxu0  ;;  %v8503_v56 = vpop.f32.mrb[91].mxu1 }
0x1cbd   : > { %6367 = vrot.lane.b32.xlu1 %v10810_v35, %s11182_s15 }
0x1cc2   : > { %6369 = vrot.lane.b32.xlu0 %v10812_v42, %s11182_s15 }
0x1d31   : > { %v6841_v46 = vpop.xlane.xlu1 %6840  ;;  %v6844_v60 = vpop.xlane.xlu0 %6843 }
0x1d32   : > { %v6851_v47 = vsub.f32 %v6695_v28, %v6841_v46  ;;  %v6852_v61 = vsub.f32 %v6741_v29, %v6844_v60 }
0x1d34   : > { %v6855_v63 = vmul.f32 1.442695, %v6851_v47  ;;  %v6857_v4 = vmul.f32 1.442695, %v6852_v61 }
0x1d36   : > { %8894 = vpow2.f32 %v6855_v63 }
0x1d37   : > { %8896 = vpow2.f32 %v6857_v4 }
0x1d39   : > { %v6850_v6 = vpop.xlane.xlu1 %6849  ;;  %v6847_v15 = vpop.xlane.xlu0 %6846 }
0x1d3a   : > { %v6854_v48 = vsub.f32 %v6833_v45, %v6850_v6  ;;  %v6853_v9 = vsub.f32 %v6787_v36, %v6847_v15 }
0x1d3c   : > { %v6861_v10 = vmul.f32 1.442695, %v6854_v48  ;;  %v6859_v11 = vmul.f32 1.442695, %v6853_v9 }
0x1d3d   : > { %v6370_v20 = vpop.permute.xlu0 %6369  ;;  %v6368_v43 = vpop.permute.xlu1 %6367 }
0x1d3e   : > { %8898 = vpow2.f32 %v6861_v10  ;;  %v6447_v21 = vcombine.low %v10812_v42, %v6370_v20  ;;  %v6448_v22 = vcombine.high %v10812_v42, %v6370_v20  ;;  %v6379_v23 = vcombine.low %v10810_v35, %v6368_v43 }
0x1d3f   : > { %8900 = vpow2.f32 %v6859_v11  ;;  %v6380_v38 = vcombine.high %v10810_v35, %v6368_v43 }
0x1d40   : > { %v10860_v2 = vpop.eup %8894  ;;  %v6455_v31 = vrot.slane %v6447_v21, %v10136_v34  ;;  %v6462_v32 = vrot.slane %v6448_v22, %v10136_v34 }
0x1d41   : > { %v10862_v3 = vpop.eup %8896  ;;  %v6863_v62 = vsel %vm2509_vm4, %v10860_v2, 0.0  ;;  %v6394_v17 = vrot.slane %v6380_v38, %v10136_v34 }
0x1d42   : > { %6864 = vadd.xlane.f32.xlu0 %v6863_v62  ;;  %v6866_v5 = vsel %vm2509_vm4, %v10862_v3, 0.0 }
0x1d43   : > { %6867 = vadd.xlane.f32.xlu1 %v6866_v5 }
0x1d48   : > { %v10872_v13 = vpop.eup %8898 }
0x1d49   : > { %v10874_v14 = vpop.eup %8900  ;;  %v6872_v16 = vsel %vm2509_vm4, %v10872_v13, 0.0 }
0x1d4a   : > { %v6869_v19 = vsel %vm2509_vm4, %v10874_v14, 0.0 }
0x1d54   : > { %6373 = vrot.lane.b32.xlu1 %v10810_v35, %s11184_s27 }
0x1d58   : > { %6375 = vrot.lane.b32.xlu0 %v10812_v42, %s11184_s27  ;;  %v6387_v42 = vrot.slane %v6379_v23, %v10136_v34  ;;  %s11185_s27 = sld [smem:[#allocation68_spill]] }
0x1d77   : > { %6873 = vadd.xlane.f32.xlu0 %v6872_v16 }
0x1d78   : > { %6870 = vadd.xlane.f32.xlu1 %v6869_v19 }
0x1dcf   : > { %v6865_v12 = vpop.xlane.xlu0 %6864 }
0x1dd0   : > { %v6868_v8 = vpop.xlane.xlu1 %6867  ;;  %8902 = vrcp.f32 %v6865_v12 }
0x1dd1   : > { %8904 = vrcp.f32 %v6868_v8 }
0x1dd3   : > { %v6376_v39 = vpop.permute.xlu0 %6375 }
0x1dd4   : > { %v6463_v24 = vcombine.low %v6364_v59, %v6376_v39  ;;  %v6464_v25 = vcombine.high %v6364_v59, %v6376_v39  ;;  %v6374_v26 = vpop.permute.xlu1 %6373 }
0x1dd5   : > { %v6395_v57 = vcombine.low %v6362_v58, %v6374_v26  ;;  %v6396_v27 = vcombine.high %v6362_v58, %v6374_v26 }
0x1dd6   : > { %v6471_v28 = vrot.slane %v6463_v24, %v10136_v34  ;;  %v6478_v29 = vrot.slane %v6464_v25, %v10136_v34 }
0x1dd7   : > { %v6403_v35 = vrot.slane %v6395_v57, %v10136_v34  ;;  %v6410_v33 = vrot.slane %v6396_v27, %v10136_v34 }
0x1dd8   : > { %v6479_v18 = vcombine.low %v6455_v31, %v6471_v28  ;;  %v6480_v37 = vcombine.high %v6455_v31, %v6471_v28  ;;  %v6495_v40 = vcombine.low %v6462_v32, %v6478_v29  ;;  %v6496_v49 = vcombine.high %v6462_v32, %v6478_v29 }
0x1dd9   : > { %v6411_v50 = vcombine.low %v6387_v42, %v6403_v35  ;;  %v6412_v44 = vcombine.high %v6387_v42, %v6403_v35  ;;  %v6427_v36 = vcombine.low %v6394_v17, %v6410_v33  ;;  %v6428_v45 = vcombine.high %v6394_v17, %v6410_v33 }
0x1dda   : > { %v6487_v51 = vrot.slane %v6479_v18, %v10138_v41  ;;  %v6494_v52 = vrot.slane %v6480_v37, %v10138_v41  ;;  %v6503_v53 = vrot.slane %v6495_v40, %v10138_v41  ;;  %v6510_v54 = vrot.slane %v6496_v49, %v10138_v41  ;;  %v8903_v24 = vpop.eup %8902 }
0x1ddb   : > { %v6419_v30 = vrot.slane %v6411_v50, %v10138_v41  ;;  %v6426_v7 = vrot.slane %v6412_v44, %v10138_v41  ;;  %v6435_v55 = vrot.slane %v6427_v36, %v10138_v41  ;;  %v6442_v60 = vrot.slane %v6428_v45, %v10138_v41  ;;  %v8905_v27 = vpop.eup %8904 }
0x1ddc   : > { %v6583_v56 = vcombine.low %v6487_v51, %v6494_v52  ;;  %v8015_v58 = vcombine.high %v6487_v51, %v6494_v52  ;;  %v6599_v59 = vcombine.low %v6503_v53, %v6510_v54  ;;  %v8016_v46 = vcombine.high %v6503_v53, %v6510_v54 }
0x1ddd   : > { %v6515_v47 = vcombine.low %v6419_v30, %v6426_v7  ;;  %v8013_v61 = vcombine.high %v6419_v30, %v6426_v7  ;;  %v6531_v48 = vcombine.low %v6435_v55, %v6442_v60  ;;  %v8014_v9 = vcombine.high %v6435_v55, %v6442_v60 }
0x1dde   : > { %v6590_v63 = vrot.slane %v6583_v56, %v10136_v34  ;;  %v6598_v4 = vrot.slane %v8015_v58, %v10136_v34  ;;  %v6606_v62 = vrot.slane %v6599_v59, %v10136_v34  ;;  %v6614_v5 = vrot.slane %v8016_v46, %v10136_v34 }
0x1ddf   : > { %v6522_v6 = vrot.slane %v6515_v47, %v10136_v34  ;;  %v6530_v15 = vrot.slane %v8013_v61, %v10136_v34  ;;  %v6538_v16 = vrot.slane %v6531_v48, %v10136_v34  ;;  %v6546_v12 = vrot.slane %v8014_v9, %v10136_v34 }
0x1de0   : > { %v6615_v10 = vcombine.low %v6590_v63, %v6598_v4  ;;  %v6616_v11 = vcombine.high %v6590_v63, %v6598_v4  ;;  %v6631_v20 = vcombine.low %v6606_v62, %v6614_v5  ;;  %v6632_v21 = vcombine.high %v6606_v62, %v6614_v5 }
0x1de1   : > { %v6547_v19 = vcombine.low %v6522_v6, %v6530_v15  ;;  %v6548_v43 = vcombine.high %v6522_v6, %v6530_v15  ;;  %v6563_v38 = vcombine.low %v6538_v16, %v6546_v12  ;;  %v6564_v39 = vcombine.high %v6538_v16, %v6546_v12 }
0x1de2   : > { %v6623_v8 = vrot.slane %v6615_v10, %v10138_v41  ;;  %v6639_v22 = vrot.slane %v6631_v20, %v10138_v41  ;;  %v6630_v26 = vrot.slane %v6616_v11, %v10138_v41  ;;  %v6646_v57 = vrot.slane %v6632_v21, %v10138_v41 }
0x1de3   : > { %v6555_v23 = vrot.slane %v6547_v19, %v10138_v41  ;;  %v6562_v25 = vrot.slane %v6548_v43, %v10138_v41  ;;  %v6571_v31 = vrot.slane %v6563_v38, %v10138_v41  ;;  %v6578_v29 = vrot.slane %v6564_v39, %v10138_v41  ;;  %v8830_v39 = vld [vmem:[#allocation25 + $0x10] sm:$0xff]  }
0x1de4   : > { %v6647_v32 = vcombine.low %v6623_v8, %v6639_v22  ;;  %v6648_v28 = vcombine.high %v6623_v8, %v6639_v22  ;;  %v6879_v35 = vmul.f32 %v8903_v24, %v10860_v2  ;;  %v6880_v33 = vmul.f32 %v8905_v27, %v10862_v3 }
0x1de5   : > { %v6579_v42 = vcombine.low %v6555_v23, %v6571_v31  ;;  %v6580_v17 = vcombine.high %v6555_v23, %v6571_v31  ;;  %v6649_v18 = vcombine.low %v6630_v26, %v6646_v57  ;;  %v6650_v37 = vcombine.high %v6630_v26, %v6646_v57 }
0x1de6   : > { %v6581_v50 = vcombine.low %v6562_v25, %v6578_v29  ;;  %v6582_v44 = vcombine.high %v6562_v25, %v6578_v29  ;;  %v6883_v36 = vpack.c.bf16 %v6879_v35, %v6879_v35  ;;  %v6884_v45 = vpack.c.bf16 %v6880_v33, %v6880_v33  ;;  %v8831_v33 = vld [vmem:[#allocation25 + $0x18] sm:$0xff]  }
0x1de7   : > { %v6651_v40 = vpack.c.bf16 %v6647_v32, %v6579_v42  ;;  %v6652_v49 = vpack.c.bf16 %v6648_v28, %v6580_v17 }
0x1de8   : > { %v6653_v51 = vpack.c.bf16 %v6649_v18, %v6581_v50  ;;  %v6654_v52 = vpack.c.bf16 %v6650_v37, %v6582_v44 }
0x1de9   : > { %8505 = vmatpush3.bf16.msra.mxu0 %v6651_v40  ;;  %8511 = vmatpush3.bf16.msra.mxu1 %v6652_v49 }
0x1dea   : > { %8516 = vmatprep.subr.bf16.mxu0 %v9526_v0  ;;  %8522 = vmatprep.subr.bf16.mxu1 %v9526_v0 }
0x1dec   : > { %8507 = vmatmul.mubr.msk.bf16.vlgmr.msra.gmra.mrb[88].mxu0 %vm2509_vm4, %v6883_v36  ;;  %8513 = vmatmul.mubr.msk.bf16.vlgmr.msra.gmra.mrb[92].mxu1 %vm2509_vm4, %v6884_v45 }
0x1ded   : > { %8517 = vmatpush3.bf16.msra.mxu0 %v6653_v51  ;;  %8523 = vmatpush3.bf16.msra.mxu1 %v6654_v52 }
0x1dee   : > { %8518 = vmatprep.mubr.msk.bf16.mxu0 %vm9527_vm0, %v9526_v0  ;;  %8524 = vmatprep.mubr.msk.bf16.mxu1 %vm9527_vm0, %v9526_v0 }
0x1def   : > { %8528 = vmatprep.subr.bf16.mxu0 %v9526_v0  ;;  %8536 = vmatprep.subr.bf16.mxu1 %v9526_v0 }
0x1e04   : > { %v6874_v2 = vpop.xlane.xlu0 %6873 }
0x1e05   : > { %8906 = vrcp.f32 %v6874_v2  ;;  %v6871_v3 = vpop.xlane.xlu1 %6870 }
0x1e06   : > { %8908 = vrcp.f32 %v6871_v3 }
0x1e0f   : > { %v8907_v53 = vpop.eup %8906 }
0x1e10   : > { %v8909_v54 = vpop.eup %8908  ;;  %v6882_v30 = vmul.f32 %v8907_v53, %v10872_v13 }
0x1e11   : > { %v6881_v7 = vmul.f32 %v8909_v54, %v10874_v14 }
0x1e12   : > { %v6886_v55 = vpack.c.bf16 %v6882_v30, %v6882_v30 }
0x1e13   : > { %v6885_v56 = vpack.c.bf16 %v6881_v7, %v6881_v7 }
0x1e14   : > { %8525 = vmatmul.mubr.msk.bf16.vlgmr.msra.gmra.mrb[96].mxu1 %vm2509_vm4, %v6886_v55 }
0x1e15   : > { %8519 = vmatmul.mubr.msk.bf16.vlgmr.msra.gmra.mrb[92].mxu0 %vm2509_vm4, %v6885_v56  ;;  %8540 = vmatprep.mubr.msk.bf16.mxu1 %vm9527_vm0, %v9526_v0  ;;  %v8028_v56 = vld [vmem:[%s11172_s23 + $0x1] ss:$0 sm:$0xff] }
0x1e16   : > { %8532 = vmatprep.mubr.msk.bf16.mxu0 %vm9527_vm0, %v9526_v0  ;;  %8529 = vmatpush3.bf16.msra.mxu0 %v8830_v39 }
0x1e17   : > { %8530 = vmatprep.subr.bf16.mxu0 %v9526_v0 }
0x1e1a   : > { %8531 = vmatpush3.bf16.msra.mxu0 %v8831_v33 }
0x1e1b   : > { %8544 = vmatprep.subr.bf16.mxu0 %v9526_v0 }
0x1ebf   : > { %v6924_v58 = vpop.f32.mrb[88].mxu0  ;;  %v6967_v59 = vpop.f32.mrb[92].mxu1 }
0x1ec0   : > { %v8508_v46 = vpop.f32.mrb[89].mxu0  ;;  %v8514_v60 = vpop.f32.mrb[93].mxu1 }
0x1ec1   : > { %v6927_v47 = vpop.f32.mrb[90].mxu0  ;;  %v6970_v13 = vpop.f32.mrb[94].mxu1 }
0x1ec2   : > { %v8509_v61 = vpop.f32.mrb[91].mxu0  ;;  %v8515_v14 = vpop.f32.mrb[95].mxu1 }
0x1ee7   : > { %v7053_v63 = vpop.f32.mrb[96].mxu1 }
0x1ee8   : > { %v7010_v4 = vpop.f32.mrb[92].mxu0  ;;  %v7075_v62 = vcombine.low %v6967_v59, %v7053_v63  ;;  %v7076_v5 = vcombine.high %v6967_v59, %v7053_v63  ;;  %v8526_v6 = vpop.f32.mrb[97].mxu1 }
0x1ee9   : > { %v7059_v15 = vcombine.low %v6924_v58, %v7010_v4  ;;  %v7060_v48 = vcombine.high %v6924_v58, %v7010_v4  ;;  %v8520_v9 = vpop.f32.mrb[93].mxu0  ;;  %v7056_v10 = vpop.f32.mrb[98].mxu1  ;;  %v8832_v6 = vld [vmem:[#allocation26 + $0x10] sm:$0xff]  }
0x1eea   : > { %v7083_v11 = vrot.slane %v7075_v62, %v10136_v34  ;;  %v7090_v16 = vrot.slane %v7076_v5, %v10136_v34  ;;  %v7013_v19 = vpop.f32.mrb[94].mxu0  ;;  %v8527_v20 = vpop.f32.mrb[99].mxu1  ;;  %8537 = vmatpush3.bf16.msra.mxu1 %v8832_v6 }
0x1eeb   : > { %v7067_v43 = vrot.slane %v7059_v15, %v10136_v34  ;;  %v7074_v12 = vrot.slane %v7060_v48, %v10136_v34  ;;  %v8521_v8 = vpop.f32.mrb[95].mxu0  ;;  %v8833_v15 = vld [vmem:[#allocation26 + $0x18] sm:$0xff]   ;;  %8538 = vmatprep.subr.bf16.mxu1 %v9526_v0  ;;  %v8034_v19 = vld [vmem:[%s11177_s7 + $0x1] ss:$0 sm:$0xff] }
0x1eec   : > { %v8835_v48 = vld [vmem:[%s11176_s5 + $0x28] sm:$0xff]  }
0x1eed   : > { %v7091_v21 = vcombine.low %v7067_v43, %v7083_v11  ;;  %v7092_v22 = vcombine.high %v7067_v43, %v7083_v11  ;;  %v7107_v23 = vcombine.low %v7074_v12, %v7090_v16  ;;  %v7108_v38 = vcombine.high %v7074_v12, %v7090_v16  ;;  %v8035_v43 = vld [vmem:[%s11178_s17 + $0x1] ss:$0 sm:$0xff] }
0x1eee   : > { %8539 = vmatpush3.bf16.msra.mxu1 %v8833_v15 }
0x1eef   : > { %v7099_v24 = vrot.slane %v7091_v21, %v10138_v41  ;;  %v7106_v25 = vrot.slane %v7092_v22, %v10138_v41  ;;  %v7115_v26 = vrot.slane %v7107_v23, %v10138_v41  ;;  %v7122_v57 = vrot.slane %v7108_v38, %v10138_v41  ;;  %v8836_v22 = vld [vmem:[%s11176_s5 + $0x30] sm:$0xff]   ;;  %v8837_v23 = vld [vmem:[%s11176_s5 + $0x38] sm:$0xff]   ;;  %v8037_v38 = vld [vmem:[%s11179_s10 + $0x1] ss:$0 sm:$0xff] }
0x1ef1   : > { %v7127_v27 = vcombine.low %v7099_v24, %v7106_v25  ;;  %v8025_v31 = vcombine.high %v7099_v24, %v7106_v25  ;;  %v7143_v32 = vcombine.low %v7115_v26, %v7122_v57  ;;  %v8026_v28 = vcombine.high %v7115_v26, %v7122_v57 }
0x1ef3   : > { %v7134_v29 = vrot.slane %v7127_v27, %v10136_v34  ;;  %v7142_v42 = vrot.slane %v8025_v31, %v10136_v34  ;;  %v7150_v17 = vrot.slane %v7143_v32, %v10136_v34  ;;  %v7158_v35 = vrot.slane %v8026_v28, %v10136_v34  ;;  %v8050_v32 = vld [vmem:[%s11180_s20 + $0x1] ss:$0 sm:$0xff] }
0x1ef5   : > { %v7160_v18 = vcombine.high %v7134_v29, %v7142_v42  ;;  %v7176_v37 = vcombine.high %v7150_v17, %v7158_v35  ;;  %v7159_v40 = vcombine.low %v7134_v29, %v7142_v42  ;;  %v7175_v49 = vcombine.low %v7150_v17, %v7158_v35 }
0x1ef7   : > { %v7174_v50 = vrot.slane %v7160_v18, %v10138_v41  ;;  %v7190_v44 = vrot.slane %v7176_v37, %v10138_v41  ;;  %v7167_v36 = vrot.slane %v7159_v40, %v10138_v41  ;;  %v7183_v45 = vrot.slane %v7175_v49, %v10138_v41 }
0x1ef9   : > { %v7193_v51 = vcombine.low %v7174_v50, %v7190_v44  ;;  %v7192_v52 = vcombine.high %v7167_v36, %v7183_v45  ;;  %v7194_v34 = vcombine.high %v7174_v50, %v7190_v44  ;;  %v7191_v2 = vcombine.low %v7167_v36, %v7183_v45 }
0x1efb   : > { %7200 = vrot.lane.b32.xlu1 %v7193_v51, %s11173_s8  ;;  %7196 = vrot.lane.b32.xlu0 %v7192_v52, %s11174_s12  ;;  %v8058_v52 = vld [vmem:[%s11181_s24 + $0x1] ss:$0 sm:$0xff]  ;;  %s8063_s8 = sshll.u32 %s9728_s11, 7  ;;  %s1271_s12 = scalar_lea.vmem [#allocation28], %s10051_s14 }
0x1efc   : > { %s10992_s15 = scalar_lea.hbm %s11186_s26, %s8063_s8  ;;  %s9536_s11 = smov [#allocation28]  }
0x1efd   : > { %s9374_s14 = sshll.u32 %s9536_s11, 4  ;;  %s9375_s14 = int_to_ptr.vmem [resolvable:$false] %s9374_s14 }
0x1eff   : > { %7204 = vrot.lane.b32.xlu1 %v7194_v34, %s11175_s4  ;;  %s7542_s4 = sshll.u32 %s1271_s12, 4  ;;  %s10994_s4 = int_to_ptr.vmem [resolvable:$true] %s7542_s4 }
0x1f00   : > { %p9377_p3 = scmp.lt.s32.totalorder %s10994_s4, %s9375_s14 }
0x1f6d   : > { %v7201_v3 = vpop.permute.xlu1 %7200  ;;  %v7197_v53 = vpop.permute.xlu0 %7196 }
0x1f6e   : > { %v7207_v54 = vsel %vm1942_vm2, %v7191_v2, %v7197_v53  ;;  %v8059_v2 = vld [vmem:[%s9690_s21 + $0x1] ss:$0 sm:$0xff] }
0x1f6f   : > { %v7208_v7 = vsel %vm2509_vm4, %v7207_v54, %v7201_v3 }
0x1f71   : > { %v7205_v30 = vpop.permute.xlu1 %7204 }
0x1f72   : > { %v7209_v41 = vsel %vm2511_vm5, %v7208_v7, %v7205_v30 }
0x1f73   : > { %v7210_v55 = vpack.c.bf16 %v7209_v41, %v7209_v41 }
0x1f75   : > { %8533 = vmatmul.mubr.msk.bf16.vlgmr.msra.gmra.mrb[96].mxu0 %vm1318_vm1, %v7210_v55 }
0x1f76   : > { %8552 = vmatprep.mubr.msk.bf16.mxu0 %vm9527_vm0, %v9526_v0 }
0x2048   : > { %v7273_v58 = vpop.f32.mrb[96].mxu0 }
0x2049   : > { %v7274_v59 = vadd.f32 %v8028_v56, %v7273_v58  ;;  %v8534_v46 = vpop.f32.mrb[97].mxu0 }
0x204a   : > { %v7276_v60 = vpop.f32.mrb[98].mxu0 }
0x204b   : > { %v7279_v47 = vadd.f32 %v7274_v59, %v10754_v1  ;;  %v8535_v13 = vpop.f32.mrb[99].mxu0  ;;  %v8834_v1 = vld [vmem:[%s11176_s5 + $0x20] sm:$0xff]   ;;  %s9370_s5 = scalar_lea.vmem %s10994_s4, 128 }
0x204c   : > { %8545 = vmatpush3.bf16.msra.mxu0 %v8834_v1  ;;  %p9371_p12 = scmp.ne.s32.totalorder %s10994_s4, %s9370_s5 }
0x204d   : > { %v7284_v61 = vsel %vm1318_vm1, %v7279_v47, 0.0  ;;  %8546 = vmatprep.subr.bf16.mxu0 %v9526_v0 }
0x204e   : > { %7285 = vadd.xlane.f32.xlu0 %v7284_v61  ;;  %v8061_v61 = vld [vmem:[%s11185_s27] ss:$0 sm:$0xff]  ;;  %p9372_p7 = pnand %p9371_p12, %p11187_p5  ;;  %s9376_s27 = scalar_lea.vmem %s9375_s14, 256 }
0x204f   : > { %p9378_p9 = scmp.lt.s32.totalorder %s9376_s27, %s9370_s5 }
0x2050   : > { %8547 = vmatpush3.bf16.msra.mxu0 %v8835_v48  ;;  %p9373_p1 = pneg %p9372_p7 }
0x2051   : > { %8548 = vmatprep.subr.bf16.mxu0 %v9526_v0  ;;  %p9379_p13 = por %p9378_p9, %p9377_p3 }
0x2053   : > { %p9380_p4 = pnand %p9379_p13, %p9373_p1 }
0x2054   : > { %8549 = vmatpush3.bf16.msra.mxu0 %v8836_v22 }
0x2055   : > { %8550 = vmatprep.subr.bf16.mxu0 %v9526_v0 }
0x2058   : > { %8551 = vmatpush3.bf16.msra.mxu0 %v8837_v23 }
0x20db   : > { %v7286_v14 = vpop.xlane.xlu0 %7285 }
0x20dc   : > { %v7287_v63 = vmul.f32 0.03125, %v7286_v14 }
0x20de   : > { %v7288_v4 = vsub.f32 %v7279_v47, %v7287_v63  ;;  %v8060_v47 = vld [vmem:[%s9695_s13] ss:$0 sm:$0xff] }
0x20e0   : > { %v7289_v62 = vmul.f32 %v7288_v4, %v7288_v4 }
0x20e2   : > { %v7290_v5 = vsel %vm1318_vm1, %v7289_v62, 0.0 }
0x20e3   : > { %7291 = vadd.xlane.f32.xlu1 %v7290_v5 }
0x2170   : > { %v7292_v9 = vpop.xlane.xlu1 %7291 }
0x2171   : > { %v7293_v10 = vmul.f32 0.03125, %v7292_v9 }
0x2173   : > { %v7294_v11 = vadd.f32 1e-05, %v7293_v10 }
0x2175   : > { %8910 = vrsqrt.f32 %v7294_v11 }
0x217f   : > { %v8911_v16 = vpop.eup %8910 }
0x2180   : > { %v7296_v20 = vmul.f32 %v8911_v16, %v7288_v4 }
0x2182   : > { %v7303_v12 = vmul.f32 %v8034_v19, %v7296_v20 }
0x2184   : > { %v7310_v8 = vadd.f32 %v8035_v43, %v7303_v12 }
0x2186   : > { %v7311_v21 = vpack.c.bf16 %v7310_v8, %v7310_v8 }
0x2188   : > { %8541 = vmatmul.mubr.msk.bf16.vlgmr.msra.gmra.mrb[100].mxu1 %vm1318_vm1, %v7311_v21 }
0x225b   : > { %v7374_v39 = vpop.f32.mrb[100].mxu1 }
0x225c   : > { %v7375_v24 = vadd.f32 %v8037_v38, %v7374_v39  ;;  %v8542_v25 = vpop.f32.mrb[101].mxu1 }
0x225d   : > { %v7377_v26 = vpop.f32.mrb[102].mxu1 }
0x225e   : > { %v7380_v57 = vmax.f32 %v7375_v24, 0.0  ;;  %v8543_v27 = vpop.f32.mrb[103].mxu1 }
0x2260   : > { %v7381_v31 = vpack.c.bf16 %v7380_v57, %v7380_v57 }
0x2262   : > { %8553 = vmatmul.mubr.msk.bf16.vlgmr.msra.gmra.mrb[100].mxu0 %vm4315_vm6, %v7381_v31 }
0x2335   : > { %v7460_v28 = vpop.f32.mrb[100].mxu0 }
0x2336   : > { %v7461_v29 = vadd.f32 %v8050_v32, %v7460_v28  ;;  %v8554_v42 = vpop.f32.mrb[101].mxu0 }
0x2337   : > { %v7463_v17 = vpop.f32.mrb[102].mxu0 }
0x2338   : > { %v7466_v35 = vadd.f32 %v7461_v29, %v7310_v8  ;;  %v8555_v0 = vpop.f32.mrb[103].mxu0 }
0x233a   : > { %v7471_v33 = vsel %vm1318_vm1, %v7466_v35, 0.0 }
0x233b   : > { %7472 = vadd.xlane.f32.xlu0 %v7471_v33 }
0x23c8   : > { %v7473_v18 = vpop.xlane.xlu0 %7472 }
0x23c9   : > { %v7474_v37 = vmul.f32 0.03125, %v7473_v18 }
0x23cb   : > { %v7475_v40 = vsub.f32 %v7466_v35, %v7474_v37 }
0x23cd   : > { %v7476_v49 = vmul.f32 %v7475_v40, %v7475_v40 }
0x23cf   : > { %v7477_v50 = vsel %vm1318_vm1, %v7476_v49, 0.0 }
0x23d0   : > { %7478 = vadd.xlane.f32.xlu0 %v7477_v50 }
0x245d   : > { %v7479_v44 = vpop.xlane.xlu0 %7478 }
0x245e   : > { %v7480_v36 = vmul.f32 0.03125, %v7479_v44 }
0x2460   : > { %v7481_v45 = vadd.f32 1e-05, %v7480_v36 }
0x2462   : > { %8912 = vrsqrt.f32 %v7481_v45 }
0x246c   : > { %v8913_v51 = vpop.eup %8912 }
0x246d   : > { %v7483_v34 = vmul.f32 %v8913_v51, %v7475_v40 }
0x246f   : > { %v7490_v3 = vmul.f32 %v8058_v52, %v7483_v34 }
0x2471   : > { %v7497_v53 = vadd.f32 %v8059_v2, %v7490_v3 }
0x2473   : > { %v7500_v54 = vsel %vm1318_vm1, %v7497_v53, 0.0 }
0x2474   : > { %7501 = vadd.xlane.f32.xlu1 %v7500_v54 }
0x2501   : > { %v7502_v30 = vpop.xlane.xlu1 %7501 }
0x2502   : > { %v7503_v7 = vmul.f32 0.03125, %v7502_v30 }
0x2504   : > { %v7504_v41 = vsub.f32 %v7497_v53, %v7503_v7 }
0x2506   : > { %v7505_v55 = vmul.f32 %v7504_v41, %v7504_v41 }
0x2508   : > { %v7506_v56 = vsel %vm1318_vm1, %v7505_v55, 0.0 }
0x2509   : > { %7507 = vadd.xlane.f32.xlu0 %v7506_v56 }
0x2596   : > { %v7508_v58 = vpop.xlane.xlu0 %7507 }
0x2597   : > { %v7509_v59 = vmul.f32 0.03125, %v7508_v58 }
0x2599   : > { %v7510_v46 = vadd.f32 1e-05, %v7509_v59 }
0x259b   : > { %8914 = vrsqrt.f32 %v7510_v46 }
0x25a5   : > { %v8915_v60 = vpop.eup %8914 }
0x25a6   : > { %v7512_v13 = vmul.f32 %v8915_v60, %v7504_v41 }
0x25a8   : > { %v7519_v14 = vmul.f32 %v8060_v47, %v7512_v13 }
0x25aa   : > { %v7526_v63 = vadd.f32 %v8061_v61, %v7519_v14 }
0x25ac   : > { %7527 = vst.msk [vmem:[%s1271_s12] sm:$0xff] %vm1318_vm1, %v7526_v63 }
0x25ad   : > { %9383 = shalt.err (!%p9380_p4)
}
0x25ae   : > { %s9384_s19 = scalar_lea.hbm %s10992_s15, 128  ;;  %s9388_s8 = scalar_lea.hbm %s11186_s26, 256 }
0x25af   : > { %p9385_p6 = scmp.ne.s32.totalorder %s10992_s15, %s9384_s19  ;;  %p9389_p2 = scmp.lt.u32.totalorder %s10992_s15, %s11186_s26 }
0x25b0   : > { %p9390_p10 = scmp.lt.u32.totalorder %s9388_s8, %s9384_s19  ;;  %p9392_p12 = scmp.lt.u32.totalorder %s9384_s19, %s10992_s15 }
0x25b1   : > { %p9386_p0 = pnand %p9385_p6, %p11187_p5 }
0x25b2   : > { %p9391_p11 = por %p9390_p10, %p9389_p2 }
0x25b3   : > { %p9387_p8 = pneg %p9386_p0 }
0x25b4   : > { %p9393_p7 = por %p9392_p12, %p9391_p11 }
0x25b6   : > { %p9394_p1 = pnand %p9393_p7, %p9387_p8 }
0x25b8   : > { %9397 = shalt.err (!%p9394_p1)
}
0x25b9   : > { %8616 = dma.vmem_to_hbm [thread:$0]  (%p11187_p5), %s10994_s4, 128, %s10992_s15, %s7529_s3  }
0x25ba PF: > { %s7554_s5 = sand.u32 1, %s9460_s28   ;;  %p11188_p3 = scmp.ne.s32.totalorder %s11145_s25, 0 }
0x25bb   : > { %p11189_p9 = scmp.ge.s32.totalorder %s9472_s0, 2  ;;  %s7555_s12 = scalar_lea.sflag [#allocation4], %s7554_s5 }
0x25bd   : > { %p8669_p13 = pnand %p11189_p9, %p11188_p3 }
0x25bf   : > { %9455 = dma.done.wait (!%p8669_p13), %s7555_s12, 128  }
0x25c0   : > { %9457 = vsyncadd (!%p8669_p13), %s7555_s12, 4294967168  ;;  %p88_p4 = scmp.ge.s32.totalorder %s9953_s22, 4   ;;  %s11190_s28 = smov %s9464_s1 }
0x25c1   : > { %s11191_s1 = smov %s9468_s2  ;;  %s11192_s2 = smov %s9964_s16 }
0x25c2   : > { %s11193_s0 = smov %s9953_s22  ;;  %90 = sbr.rel (!%p88_p4) target bundleno = 84 (0x54), region = 326 }
0x25c9   :  { %7560 = vsyncpa [#allocation3], 1 }
0x25ca   :  { %7562 = vsyncpa [#allocation3 + $0x1], 1 }
0x25cb   :  { %7563 = vsyncpa [#allocation6], 1 }
0x25cc   :  { %7565 = vsyncpa [#allocation6 + $0x1], 1 }
0x25cd   :  { %7566 = vsyncpa [#allocation9], 1 }
0x25ce   :  { %7567 = vsyncpa [#allocation12], 1 }
0x25cf   :  { %7568 = vsyncpa [#allocation15], 1 }
0x25d0   :  { %7569 = vsyncpa [#allocation18], 1 }
0x25d1   :  { %7570 = vsyncpa [#allocation21], 1 }
0x25d2   :  { %7571 = vsyncpa [#allocation24], 1 }
0x25d3   :  { %7572 = vsyncpa [#allocation27], 1 }
0x25d4   :  { %7573 = vsyncpa [#allocation4], 1 }
0x25d5   :  { %7575 = vsyncpa [#allocation4 + $0x1], 1 }

</bundles_post_ra>
